<compile_context>
chip_gen: v5e
topology: v5e:2x2
jax: 0.10.0
libtpu: 0.0.40
codegen_flags: <defaults>
</compile_context>

<pallas_src>
import functools
import math

import jax
import jax.numpy as jnp
from jax.experimental import pallas as pl
from jax.experimental.pallas import tpu as pltpu


# ------------------------------ small helpers -------------------------------

def _round_up(x, m):
    return (x + m - 1) // m * m


def _pick_div(dim, quantum, cap):
    """Largest tile = quantum*j <= cap that divides `dim` (dim % quantum == 0)."""
    if dim <= cap:
        return dim
    units = dim // quantum
    best = 1
    for j in range(1, cap // quantum + 1):
        if units % j == 0:
            best = j
    return best * quantum


def _pick_tile_m(m, cap=512):
    """Return (padded_M, tile_M) with tile_M | padded_M, tile_M % 8 == 0."""
    mp = _round_up(max(m, 1), 8)
    if mp <= cap:
        return mp, mp
    tm = _pick_div(mp, 8, cap)
    if tm < 128:                      # degenerate divisor -> pad rows instead
        mp = _round_up(m, cap)
        tm = cap
    return mp, tm


def _pick_hw_tile(hw, c, itemsize=2):
    """Row tile over the HW axis: a multiple-of-8 divisor of hw (or full hw)."""
    cap = max(8, min(2048, (1 << 20) // max(1, c * itemsize)))
    cap -= cap % 8
    cap = max(cap, 8)
    if hw <= cap:
        return hw
    for j in range(cap, 7, -1):
        if hw % j == 0 and j % 8 == 0:
            return j
    return hw                         # fallback: full dim (always legal)


# --------------------------- tiled matmul kernel -----------------------------
# out[g-slab] = act(A[g] @ W[g] + bias[g]); grid = (G, Mt, Nt, Kt), K innermost.

def _mm_kernel(a_ref, b_ref, bias_ref, o_ref, acc_ref, *, act):
    @pl.when(pl.program_id(3) == 0)
    def _():
        acc_ref[...] = jnp.zeros_like(acc_ref)

    acc_ref[...] += jnp.dot(a_ref[...], b_ref[...],
                            preferred_element_type=jnp.float32)

    @pl.when(pl.program_id(3) == pl.num_programs(3) - 1)
    def _():
        r = acc_ref[...] + bias_ref[...]          # f32 epilogue (v5e-friendly)
        if act == "relu":
            r = jnp.maximum(r, 0.0)
        elif act == "sigmoid":
            r = jax.nn.sigmoid(r)
        o_ref[...] = r.astype(o_ref.dtype)


def matmul_bias_act(a, w, b, act=None, out_dtype=jnp.bfloat16):
    """a: (G, M, Kg) float; w: (G, Kp, Npg) bf16 (pre-padded); b: (1, G*Npg) f32.
    Returns (Mp, G*Npg) in `out_dtype` (padded rows / group columns included)."""
    G, M, Kg = a.shape
    Gw, Kp, Npg = w.shape
    assert G == Gw
    Mp, tm = _pick_tile_m(M, cap=512)
    tk = _pick_div(Kp, 128, 512)
    tn = _pick_div(Npg, 128, 256)
    if (Mp != M) or (Kp != Kg):
        a = jnp.pad(a, ((0, 0), (0, Mp - M), (0, Kp - Kg)))
    a = a.astype(jnp.bfloat16)

    gm, gn, gk = Mp // tm, Npg // tn, Kp // tk
    out = pl.pallas_call(
        functools.partial(_mm_kernel, act=act),
        out_shape=jax.ShapeDtypeStruct((Mp, G * Npg), out_dtype),
        grid=(G, gm, gn, gk),
        in_specs=[
            pl.BlockSpec((None, tm, tk), lambda g, i, j, k: (g, i, k)),
            pl.BlockSpec((None, tk, tn), lambda g, i, j, k: (g, k, j)),
            pl.BlockSpec((1, tn), lambda g, i, j, k: (0, g * gn + j)),
        ],
        out_specs=pl.BlockSpec((tm, tn), lambda g, i, j, k: (i, g * gn + j)),
        scratch_shapes=[pltpu.VMEM((tm, tn), jnp.float32)],
        compiler_params=pltpu.CompilerParams(
            dimension_semantics=("parallel", "parallel", "parallel", "arbitrary")),
    )(a, w, b)
    return out


# --------------------------- conv (im2col + matmul) --------------------------

def conv_block(x, p, c, act):
    """PyTorch-semantics Conv2d + folded BN + activation, NHWC layout."""
    N, H, W, Cin = x.shape
    k, s, pad, G, cout = c["k"], c["stride"], c["pad"], c["groups"], c["cout"]
    Ho = (H + 2 * pad - k) // s + 1
    Wo = (W + 2 * pad - k) // s + 1

    if k == 1:                                     # 1x1 conv: no patches needed
        xs = x if s == 1 else x[:, ::s, ::s, :]
        p_im = xs.reshape(N * Ho * Wo, 1, Cin)
        ntaps = 1
    else:
        xp = jnp.pad(x, ((0, 0), (pad, pad), (pad, pad), (0, 0)))
        taps = []
        for di in range(k):
            for dj in range(k):
                taps.append(xp[:, di:di + s * (Ho - 1) + 1:s,
                                dj:dj + s * (Wo - 1) + 1:s, :])
        p_im = jnp.stack(taps, axis=3).reshape(N * Ho * Wo, k * k, Cin)
        ntaps = k * k

    M = N * Ho * Wo
    cin_g = Cin // G
    Kg = ntaps * cin_g
    if G == 1:
        a = p_im.reshape(1, M, Kg)
    else:  # group-major K layout matching the pre-transposed weights
        a = p_im.reshape(M, ntaps, G, cin_g).transpose(2, 0, 1, 3).reshape(G, M, Kg)

    out = matmul_bias_act(a, p["w"], p["b"], act=act, out_dtype=jnp.bfloat16)
    npg = p["w"].shape[2]
    cout_g = cout // G
    out = out[:M].reshape(M, G, npg)[:, :, :cout_g].reshape(M, cout)
    return out.reshape(N, Ho, Wo, cout)


# ------------------------- fused SE block (GAP+FC+FC) ------------------------

def _se_kernel(y_ref, w1_ref, b1_ref, w2_ref, b2_ref, s_ref, acc_ref, *, inv_hw):
    t = pl.program_id(1)

    @pl.when(t == 0)
    def _():
        acc_ref[...] = jnp.zeros_like(acc_ref)

    acc_ref[...] += jnp.sum(y_ref[...].astype(jnp.float32), axis=0, keepdims=True)

    @pl.when(t == pl.num_programs(1) - 1)
    def _():
        pooled = (acc_ref[...] * inv_hw).astype(jnp.bfloat16)          # (1, C)
        z = jnp.dot(pooled, w1_ref[...],
                    preferred_element_type=jnp.float32) + b1_ref[...]
        z = jnp.maximum(z, 0.0).astype(jnp.bfloat16)
        sc = jnp.dot(z, w2_ref[...],
                     preferred_element_type=jnp.float32) + b2_ref[...]
        s_ref[...] = jax.nn.sigmoid(sc)


def se_block(y, p_se):
    """y: (N,H,W,C) bf16 -> per-(n,c) sigmoid scale of shape (N,1,C) f32."""
    N, H, W, C = y.shape
    HW = H * W
    y3 = y.reshape(N, HW, C)
    t_hw = _pick_hw_tile(HW, C)
    midp = p_se["w1"].shape[1]
    return pl.pallas_call(
        functools.partial(_se_kernel, inv_hw=1.0 / HW),
        out_shape=jax.ShapeDtypeStruct((N, 1, C), jnp.float32),
        grid=(N, HW // t_hw),
        in_specs=[
            pl.BlockSpec((None, t_hw, C), lambda n, t: (n, t, 0)),
            pl.BlockSpec((C, midp), lambda n, t: (0, 0)),
            pl.BlockSpec((1, midp), lambda n, t: (0, 0)),
            pl.BlockSpec((midp, C), lambda n, t: (0, 0)),
            pl.BlockSpec((1, C), lambda n, t: (0, 0)),
        ],
        out_specs=pl.BlockSpec((None, 1, C), lambda n, t: (n, 0, 0)),
        scratch_shapes=[pltpu.VMEM((1, C), jnp.float32)],
        compiler_params=pltpu.CompilerParams(
            dimension_semantics=("parallel", "arbitrary")),
    )(y3, p_se["w1"], p_se["b1"], p_se["w2"], p_se["b2"])


# ------------------- fused SE scale + residual + ReLU kernel -----------------

def _scale_res_kernel(x_ref, s_ref, id_ref, o_ref):
    x = x_ref[...].astype(jnp.float32)
    idn = id_ref[...].astype(jnp.float32)
    o_ref[...] = jnp.maximum(x * s_ref[...] + idn, 0.0).astype(o_ref.dtype)


def se_scale_residual_relu(y, s, identity):
    N, H, W, C = y.shape
    HW = H * W
    y3 = y.reshape(N, HW, C)
    id3 = identity.reshape(N, HW, C)
    t_hw = _pick_hw_tile(HW, C)
    out = pl.pallas_call(
        _scale_res_kernel,
        out_shape=jax.ShapeDtypeStruct((N, HW, C), jnp.bfloat16),
        grid=(N, HW // t_hw),
        in_specs=[
            pl.BlockSpec((None, t_hw, C), lambda n, t: (n, t, 0)),
            pl.BlockSpec((None, 1, C), lambda n, t: (n, 0, 0)),
            pl.BlockSpec((None, t_hw, C), lambda n, t: (n, t, 0)),
        ],
        out_specs=pl.BlockSpec((None, t_hw, C), lambda n, t: (n, t, 0)),
        compiler_params=pltpu.CompilerParams(
            dimension_semantics=("parallel", "parallel")),
    )(y3, s, id3)
    return out.reshape(N, H, W, C)


# ------------------------------ pooling kernels ------------------------------

def _gap_kernel(y_ref, o_ref, acc_ref, *, inv_hw):
    t = pl.program_id(1)

    @pl.when(t == 0)
    def _():
        acc_ref[...] = jnp.zeros_like(acc_ref)

    acc_ref[...] += jnp.sum(y_ref[...].astype(jnp.float32), axis=0, keepdims=True)

    @pl.when(t == pl.num_programs(1) - 1)
    def _():
        o_ref[...] = acc_ref[...] * inv_hw


def global_avg_pool(x):
    """x: (N,H,W,C) -> (N,C) f32 mean over spatial dims."""
    N, H, W, C = x.shape
    HW = H * W
    x3 = x.reshape(N, HW, C)
    t_hw = _pick_hw_tile(HW, C)
    out = pl.pallas_call(
        functools.partial(_gap_kernel, inv_hw=1.0 / HW),
        out_shape=jax.ShapeDtypeStruct((N, 1, C), jnp.float32),
        grid=(N, HW // t_hw),
        in_specs=[pl.BlockSpec((None, t_hw, C), lambda n, t: (n, t, 0))],
        out_specs=pl.BlockSpec((None, 1, C), lambda n, t: (n, 0, 0)),
        scratch_shapes=[pltpu.VMEM((1, C), jnp.float32)],
        compiler_params=pltpu.CompilerParams(
            dimension_semantics=("parallel", "arbitrary")),
    )(x3)
    return out.reshape(N, C)


def max_pool_3x3_s2_p1(x):
    # Fused plain-JAX running max over the 9 strided views (per perf review:
    # avoids materializing a 9x stacked tensor and the single-block VMEM blowup).
    N, H, W, C = x.shape
    Ho = (H + 2 - 3) // 2 + 1
    Wo = (W + 2 - 3) // 2 + 1
    xp = jnp.pad(x, ((0, 0), (1, 1), (1, 1), (0, 0)), constant_values=-jnp.inf)
    out = None
    for di in range(3):
        for dj in range(3):
            v = xp[:, di:di + 2 * (Ho - 1) + 1:2, dj:dj + 2 * (Wo - 1) + 1:2, :]
            out = v if out is None else jnp.maximum(out, v)
    return out


# ----------------------------- parameter init --------------------------------

def _conv_bn_params(key, in_c, out_c, k, stride, pad, groups=1):
    """Conv (no bias) + inference BatchNorm folded, stored in matmul layout:
    w: (G, Kp, Npg) bf16 (pre-transposed + padded), b: (1, G*Npg) f32."""
    k_w, k_g, k_b, k_m, k_v = jax.random.split(key, 5)
    cin_g = in_c // groups
    cout_g = out_c // groups
    fan = cin_g * k * k
    w = jax.random.normal(k_w, (out_c, cin_g, k, k), jnp.float32)
    w = w * math.sqrt(2.0 / fan)
    gamma = jax.random.uniform(k_g, (out_c,), minval=0.5, maxval=1.5)
    beta = jax.random.normal(k_b, (out_c,)) * 0.05
    mean = jax.random.normal(k_m, (out_c,)) * 0.05
    var = jax.random.uniform(k_v, (out_c,), minval=0.5, maxval=1.5)
    scale = gamma / jnp.sqrt(var + 1e-5)
    w = w * scale[:, None, None, None]
    bias = beta - mean * scale

    kg_dim = k * k * cin_g
    kp = _round_up(kg_dim, 128)
    npg = _round_up(cout_g, 128)
    wt = jnp.transpose(w.reshape(groups, cout_g, cin_g, k, k), (0, 3, 4, 2, 1))
    wt = wt.reshape(groups, kg_dim, cout_g)
    w_pad = jnp.zeros((groups, kp, npg), jnp.bfloat16)
    w_pad = w_pad.at[:, :kg_dim, :cout_g].set(wt.astype(jnp.bfloat16))
    b_pad = jnp.zeros((groups, npg), jnp.float32)
    b_pad = b_pad.at[:, :cout_g].set(bias.reshape(groups, cout_g))
    b_pad = b_pad.reshape(1, groups * npg)
    params = {"w": w_pad, "b": b_pad}
    cfg = {"k": k, "stride": stride, "pad": pad, "groups": groups, "cout": out_c}
    return params, cfg


def _se_params(key, channels):
    k1, k2, k3, k4 = jax.random.split(key, 4)
    mid = max(1, channels // 16)
    midp = _round_up(mid, 8)
    w1 = jax.random.normal(k1, (channels, mid), jnp.float32) * math.sqrt(2.0 / channels)
    b1 = jax.random.normal(k3, (mid,), jnp.float32) * 0.05
    w2 = jax.random.normal(k2, (mid, channels), jnp.float32) * math.sqrt(2.0 / mid)
    b2 = jax.random.normal(k4, (channels,), jnp.float32) * 0.05
    w1p = jnp.zeros((channels, midp), jnp.bfloat16).at[:, :mid].set(w1.astype(jnp.bfloat16))
    b1p = jnp.zeros((1, midp), jnp.float32).at[0, :mid].set(b1)
    w2p = jnp.zeros((midp, channels), jnp.bfloat16).at[:mid, :].set(w2.astype(jnp.bfloat16))
    b2p = b2.reshape(1, channels)
    return {"w1": w1p, "b1": b1p, "w2": w2p, "b2": b2p}


def _fc_params(key, in_c, out_c):
    k1, k2 = jax.random.split(key)
    w = jax.random.normal(k1, (in_c, out_c), jnp.float32) * math.sqrt(1.0 / in_c)
    b = jax.random.normal(k2, (out_c,), jnp.float32) * 0.05
    kp = _round_up(in_c, 128)
    np_p = _round_up(out_c, 128)
    w_pad = jnp.zeros((1, kp, np_p), jnp.bfloat16)
    w_pad = w_pad.at[0, :in_c, :out_c].set(w.astype(jnp.bfloat16))
    b_pad = jnp.zeros((1, np_p), jnp.float32).at[0, :out_c].set(b)
    return {"w": w_pad, "b": b_pad}, {"cout": out_c}


def init_senet(key, channels, init_block_channels, cardinality, bottleneck_width,
               in_channels, num_classes):
    """Returns (params, cfg).  `params` contains ONLY arrays (safe to jit over);
    `cfg` is plain Python (strides / flags / shapes) and must be closed over."""
    n_units = sum(len(s) for s in channels)
    keys = iter(jax.random.split(key, 16 + 8 * max(n_units, 1)))
    params, cfg = {}, {}

    mid = init_block_channels // 2
    p1, c1 = _conv_bn_params(next(keys), in_channels, mid, 3, 2, 1)
    p2, c2 = _conv_bn_params(next(keys), mid, mid, 3, 1, 1)
    p3, c3 = _conv_bn_params(next(keys), mid, init_block_channels, 3, 1, 1)
    params["init"] = {"conv1": p1, "conv2": p2, "conv3": p3}
    cfg["init"] = {"conv1": c1, "conv2": c2, "conv3": c3}

    stage_params, stage_cfg = [], []
    in_c = init_block_channels
    for i, stage_chs in enumerate(channels):
        unit_params, unit_cfg = [], []
        identity_conv3x3 = (i != 0)
        for j, out_c in enumerate(stage_chs):
            stride = 2 if (j == 0 and i != 0) else 1
            mid_c = out_c // 4
            D = int(math.floor(mid_c * (bottleneck_width / 64.0)))
            gw = cardinality * D
            gw2 = gw // 2
            pc1, cc1 = _conv_bn_params(next(keys), in_c, gw2, 1, 1, 0)
            pc2, cc2 = _conv_bn_params(next(keys), gw2, gw, 3, stride, 1,
                                       groups=cardinality)
            pc3, cc3 = _conv_bn_params(next(keys), gw, out_c, 1, 1, 0)
            p_se = _se_params(next(keys), out_c)
            resize = (in_c != out_c) or (stride != 1)
            up = {"conv1": pc1, "conv2": pc2, "conv3": pc3, "se": p_se}
            uc = {"conv1": cc1, "conv2": cc2, "conv3": cc3, "resize": resize}
            if resize:
                k_id = 3 if identity_conv3x3 else 1
                pad_id = 1 if identity_conv3x3 else 0
                pid, cid = _conv_bn_params(next(keys), in_c, out_c, k_id,
                                           stride, pad_id)
                up["identity_conv"] = pid
                uc["identity_conv"] = cid
            unit_params.append(up)
            unit_cfg.append(uc)
            in_c = out_c
        stage_params.append(unit_params)
        stage_cfg.append(unit_cfg)
    params["stages"] = stage_params
    cfg["stages"] = stage_cfg

    p_fc, c_fc = _fc_params(next(keys), in_c, num_classes)
    params["fc"] = p_fc
    cfg["fc"] = c_fc
    return params, cfg


# ------------------------------- model forward -------------------------------

def senet_unit_forward(x, p, c):
    if c["resize"]:
        identity = conv_block(x, p["identity_conv"], c["identity_conv"], act=None)
    else:
        identity = x
    y = conv_block(x, p["conv1"], c["conv1"], act="relu")
    y = conv_block(y, p["conv2"], c["conv2"], act="relu")
    y = conv_block(y, p["conv3"], c["conv3"], act=None)
    s = se_block(y, p["se"])                      # (N, 1, C) f32 sigmoid scale
    return se_scale_residual_relu(y, s, identity)


def senet_forward(x_nchw, params, cfg):
    # NCHW (PyTorch) -> NHWC (kernel layout), bf16 activations
    x = jnp.transpose(x_nchw, (0, 2, 3, 1)).astype(jnp.bfloat16)

    # --- init block ---
    x = conv_block(x, params["init"]["conv1"], cfg["init"]["conv1"], act="relu")
    x = conv_block(x, params["init"]["conv2"], cfg["init"]["conv2"], act="relu")
    x = conv_block(x, params["init"]["conv3"], cfg["init"]["conv3"], act="relu")
    x = max_pool_3x3_s2_p1(x)

    # --- stages ---
    for i in range(len(cfg["stages"])):
        for j in range(len(cfg["stages"][i])):
            x = senet_unit_forward(x, params["stages"][i][j], cfg["stages"][i][j])

    # --- final AvgPool2d(kernel_size=7, stride=1) on a 7x7 map == GAP ---
    assert x.shape[1] == 7 and x.shape[2] == 7, "final pool expects 7x7 input"
    pooled = global_avg_pool(x)                                   # (N, C) f32

    # view(N,-1) is a no-op; Dropout(p=0.2) is identity at inference time.
    # TODO(synk): train-mode dropout RNG not reproduced (inference semantics).
    a = pooled.astype(jnp.bfloat16).reshape(1, *pooled.shape)
    logits = matmul_bias_act(a, params["fc"]["w"], params["fc"]["b"],
                             act=None, out_dtype=jnp.float32)
    return logits[:pooled.shape[0], :cfg["fc"]["cout"]]


# ------------------------------------ main ------------------------------------

if __name__ == "__main__":
    # Small SENet configuration (same module structure, scaled-down widths):
    channels = [[16], [32]]          # two stages, one unit each
    init_block_channels = 16
    cardinality = 2                  # exercises the grouped-conv grid axis
    bottleneck_width = 64
    in_channels = 3
    in_size = (56, 56)               # -> 7x7 before the final AvgPool(7)
    num_classes = 10

    key = jax.random.PRNGKey(0)
    k_param, k_input = jax.random.split(key)
    params, cfg = init_senet(k_param, channels, init_block_channels,
                             cardinality, bottleneck_width,
                             in_channels, num_classes)

    x = jax.random.normal(k_input, (2, in_channels, *in_size), jnp.float32)

    fwd = jax.jit(lambda xx, pp: senet_forward(xx, pp, cfg))
    out = fwd(x, params)
    jax.block_until_ready(out)
    assert out.shape == (2, num_classes), out.shape
    assert bool(jnp.all(jnp.isfinite(out)))
    print("KERNEL_OK")
</pallas_src>

<mosaic_0001>
module attributes {stable_mosaic.version = 11 : i64} {
  func.func @_mm_kernel(%arg0: i32, %arg1: i32, %arg2: i32, %arg3: i32, %arg4: memref<1x392x128xbf16, #tpu.memory_space<vmem>>, %arg5: memref<1x128x128xbf16, #tpu.memory_space<vmem>>, %arg6: memref<1x128xf32, #tpu.memory_space<vmem>>, %arg7: memref<392x128xbf16, #tpu.memory_space<vmem>>, %arg8: memref<392x128xf32, #tpu.memory_space<vmem>>) attributes {dimension_semantics = [#tpu.dimension_semantics<parallel>, #tpu.dimension_semantics<parallel>, #tpu.dimension_semantics<parallel>, #tpu.dimension_semantics<arbitrary>], iteration_bounds = array<i64: 1, 4, 1, 1>, scalar_prefetch = 0 : i64, scratch_operands = 1 : i64, tpu.core_type = #tpu.core_type<tc>, window_params = [{transform_indices = @transform_0, window_bounds = array<i64: 1, 392, 128>}, {transform_indices = @transform_1, window_bounds = array<i64: 1, 128, 128>}, {transform_indices = @transform_2, window_bounds = array<i64: 1, 128>}, {transform_indices = @transform_3, window_bounds = array<i64: 392, 128>}]} {
    %c0_i32 = arith.constant 0 : i32
    %0 = arith.cmpi eq, %arg3, %c0_i32 : i32
    %1 = arith.extui %0 : i1 to i32
    %c0_i32_0 = arith.constant 0 : i32
    %2 = arith.cmpi ne, %1, %c0_i32_0 : i32
    scf.if %2 {
      %cst_12 = arith.constant 0.000000e+00 : f32
      %14 = vector.broadcast %cst_12 : f32 to vector<392x128xf32>
      %c0_13 = arith.constant 0 : index
      %c0_14 = arith.constant 0 : index
      %15 = vector.load %arg8[%c0_13, %c0_14] : memref<392x128xf32, #tpu.memory_space<vmem>>, vector<392x128xf32>
      tpu.vector_store %arg8[%c0_13, %c0_14], %14 {strides = array<i32>} : memref<392x128xf32, #tpu.memory_space<vmem>>, vector<392x128xf32>,
    } else {
    }
    %c0 = arith.constant 0 : index
    %c0_1 = arith.constant 0 : index
    %3 = vector.load %arg8[%c0, %c0_1] : memref<392x128xf32, #tpu.memory_space<vmem>>, vector<392x128xf32>
    %c0_2 = arith.constant 0 : index
    %c0_3 = arith.constant 0 : index
    %c0_4 = arith.constant 0 : index
    %4 = vector.load %arg4[%c0_2, %c0_3, %c0_4] : memref<1x392x128xbf16, #tpu.memory_space<vmem>>, vector<1x392x128xbf16>
    %5 = vector.shape_cast %4 : vector<1x392x128xbf16> to vector<392x128xbf16>
    %c0_5 = arith.constant 0 : index
    %c0_6 = arith.constant 0 : index
    %c0_7 = arith.constant 0 : index
    %6 = vector.load %arg5[%c0_5, %c0_6, %c0_7] : memref<1x128x128xbf16, #tpu.memory_space<vmem>>, vector<1x128x128xbf16>
    %7 = vector.shape_cast %6 : vector<1x128x128xbf16> to vector<128x128xbf16>
    %cst = arith.constant dense<0.000000e+00> : vector<392x128xf32>
    %8 = tpu.matmul %5, %7, %cst {dimension_numbers = #tpu.dot_dimension_numbers<[1], [0], [0], [1], [0, 0, 1, 1], [], []>} : vector<392x128xbf16>, vector<128x128xbf16>, vector<392x128xf32> -> vector<392x128xf32>
    %9 = arith.addf %3, %8 : vector<392x128xf32>
    %c0_8 = arith.constant 0 : index
    %c0_9 = arith.constant 0 : index
    %10 = vector.load %arg8[%c0_8, %c0_9] : memref<392x128xf32, #tpu.memory_space<vmem>>, vector<392x128xf32>
    tpu.vector_store %arg8[%c0_8, %c0_9], %9 {strides = array<i32>} : memref<392x128xf32, #tpu.memory_space<vmem>>, vector<392x128xf32>,
    %c0_i32_10 = arith.constant 0 : i32
    %11 = arith.cmpi eq, %arg3, %c0_i32_10 : i32
    %12 = arith.extui %11 : i1 to i32
    %c0_i32_11 = arith.constant 0 : i32
    %13 = arith.cmpi ne, %12, %c0_i32_11 : i32
    scf.if %13 {
      %c0_12 = arith.constant 0 : index
      %c0_13 = arith.constant 0 : index
      %14 = vector.load %arg8[%c0_12, %c0_13] : memref<392x128xf32, #tpu.memory_space<vmem>>, vector<392x128xf32>
      %c0_14 = arith.constant 0 : index
      %c0_15 = arith.constant 0 : index
      %15 = vector.load %arg6[%c0_14, %c0_15] : memref<1x128xf32, #tpu.memory_space<vmem>>, vector<1x128xf32>
      %16 = vector.broadcast %15 : vector<1x128xf32> to vector<392x128xf32>
      %17 = arith.addf %14, %16 : vector<392x128xf32>
      %cst_16 = arith.constant 0.000000e+00 : f32
      %18 = vector.broadcast %cst_16 : f32 to vector<392x128xf32>
      %19 = arith.maximumf %17, %18 : vector<392x128xf32>
      %20 = arith.truncf %19 : vector<392x128xf32> to vector<392x128xbf16>
      %c0_17 = arith.constant 0 : index
      %c0_18 = arith.constant 0 : index
      %21 = vector.load %arg7[%c0_17, %c0_18] : memref<392x128xbf16, #tpu.memory_space<vmem>>, vector<392x128xbf16>
      tpu.vector_store %arg7[%c0_17, %c0_18], %20 {strides = array<i32>} : memref<392x128xbf16, #tpu.memory_space<vmem>>, vector<392x128xbf16>,
    } else {
    }
    return
  }
  func.func @transform_0(%arg0: i32, %arg1: i32, %arg2: i32, %arg3: i32) -> (i32, i32, i32) {
    %c0_i32 = arith.constant 0 : i32
    return %arg0, %arg1, %arg3 : i32, i32, i32
  }
  func.func @transform_1(%arg0: i32, %arg1: i32, %arg2: i32, %arg3: i32) -> (i32, i32, i32) {
    %c0_i32 = arith.constant 0 : i32
    return %arg0, %arg3, %arg2 : i32, i32, i32
  }
  func.func @transform_2(%arg0: i32, %arg1: i32, %arg2: i32, %arg3: i32) -> (i32, i32) {
    %c1_i32 = arith.constant 1 : i32
    %0 = arith.muli %arg0, %c1_i32 : i32
    %1 = arith.addi %0, %arg2 : i32
    %c0_i32 = arith.constant 0 : i32
    %c0_i32_0 = arith.constant 0 : i32
    return %c0_i32, %1 : i32, i32
  }
  func.func @transform_3(%arg0: i32, %arg1: i32, %arg2: i32, %arg3: i32) -> (i32, i32) {
    %c1_i32 = arith.constant 1 : i32
    %0 = arith.muli %arg0, %c1_i32 : i32
    %1 = arith.addi %0, %arg2 : i32
    %c0_i32 = arith.constant 0 : i32
    return %arg1, %1 : i32, i32
  }
}

module attributes {stable_mosaic.version = 11 : i64} {
  func.func @_mm_kernel(%arg0: i32, %arg1: i32, %arg2: i32, %arg3: i32, %arg4: memref<1x392x128xbf16, #tpu.memory_space<vmem>>, %arg5: memref<1x128x128xbf16, #tpu.memory_space<vmem>>, %arg6: memref<1x128xf32, #tpu.memory_space<vmem>>, %arg7: memref<392x128xbf16, #tpu.memory_space<vmem>>, %arg8: memref<392x128xf32, #tpu.memory_space<vmem>>) attributes {dimension_semantics = [#tpu.dimension_semantics<parallel>, #tpu.dimension_semantics<parallel>, #tpu.dimension_semantics<parallel>, #tpu.dimension_semantics<arbitrary>], iteration_bounds = array<i64: 1, 1, 1, 1>, scalar_prefetch = 0 : i64, scratch_operands = 1 : i64, tpu.core_type = #tpu.core_type<tc>, window_params = [{transform_indices = @transform_0, window_bounds = array<i64: 1, 392, 128>}, {transform_indices = @transform_1, window_bounds = array<i64: 1, 128, 128>}, {transform_indices = @transform_2, window_bounds = array<i64: 1, 128>}, {transform_indices = @transform_3, window_bounds = array<i64: 392, 128>}]} {
    %c0_i32 = arith.constant 0 : i32
    %0 = arith.cmpi eq, %arg3, %c0_i32 : i32
    %1 = arith.extui %0 : i1 to i32
    %c0_i32_0 = arith.constant 0 : i32
    %2 = arith.cmpi ne, %1, %c0_i32_0 : i32
    scf.if %2 {
      %cst_12 = arith.constant 0.000000e+00 : f32
      %14 = vector.broadcast %cst_12 : f32 to vector<392x128xf32>
      %c0_13 = arith.constant 0 : index
      %c0_14 = arith.constant 0 : index
      %15 = vector.load %arg8[%c0_13, %c0_14] : memref<392x128xf32, #tpu.memory_space<vmem>>, vector<392x128xf32>
      tpu.vector_store %arg8[%c0_13, %c0_14], %14 {strides = array<i32>} : memref<392x128xf32, #tpu.memory_space<vmem>>, vector<392x128xf32>,
    } else {
    }
    %c0 = arith.constant 0 : index
    %c0_1 = arith.constant 0 : index
    %3 = vector.load %arg8[%c0, %c0_1] : memref<392x128xf32, #tpu.memory_space<vmem>>, vector<392x128xf32>
    %c0_2 = arith.constant 0 : index
    %c0_3 = arith.constant 0 : index
    %c0_4 = arith.constant 0 : index
    %4 = vector.load %arg4[%c0_2, %c0_3, %c0_4] : memref<1x392x128xbf16, #tpu.memory_space<vmem>>, vector<1x392x128xbf16>
    %5 = vector.shape_cast %4 : vector<1x392x128xbf16> to vector<392x128xbf16>
    %c0_5 = arith.constant 0 : index
    %c0_6 = arith.constant 0 : index
    %c0_7 = arith.constant 0 : index
    %6 = vector.load %arg5[%c0_5, %c0_6, %c0_7] : memref<1x128x128xbf16, #tpu.memory_space<vmem>>, vector<1x128x128xbf16>
    %7 = vector.shape_cast %6 : vector<1x128x128xbf16> to vector<128x128xbf16>
    %cst = arith.constant dense<0.000000e+00> : vector<392x128xf32>
    %8 = tpu.matmul %5, %7, %cst {dimension_numbers = #tpu.dot_dimension_numbers<[1], [0], [0], [1], [0, 0, 1, 1], [], []>} : vector<392x128xbf16>, vector<128x128xbf16>, vector<392x128xf32> -> vector<392x128xf32>
    %9 = arith.addf %3, %8 : vector<392x128xf32>
    %c0_8 = arith.constant 0 : index
    %c0_9 = arith.constant 0 : index
    %10 = vector.load %arg8[%c0_8, %c0_9] : memref<392x128xf32, #tpu.memory_space<vmem>>, vector<392x128xf32>
    tpu.vector_store %arg8[%c0_8, %c0_9], %9 {strides = array<i32>} : memref<392x128xf32, #tpu.memory_space<vmem>>, vector<392x128xf32>,
    %c0_i32_10 = arith.constant 0 : i32
    %11 = arith.cmpi eq, %arg3, %c0_i32_10 : i32
    %12 = arith.extui %11 : i1 to i32
    %c0_i32_11 = arith.constant 0 : i32
    %13 = arith.cmpi ne, %12, %c0_i32_11 : i32
    scf.if %13 {
      %c0_12 = arith.constant 0 : index
      %c0_13 = arith.constant 0 : index
      %14 = vector.load %arg8[%c0_12, %c0_13] : memref<392x128xf32, #tpu.memory_space<vmem>>, vector<392x128xf32>
      %c0_14 = arith.constant 0 : index
      %c0_15 = arith.constant 0 : index
      %15 = vector.load %arg6[%c0_14, %c0_15] : memref<1x128xf32, #tpu.memory_space<vmem>>, vector<1x128xf32>
      %16 = vector.broadcast %15 : vector<1x128xf32> to vector<392x128xf32>
      %17 = arith.addf %14, %16 : vector<392x128xf32>
      %cst_16 = arith.constant 0.000000e+00 : f32
      %18 = vector.broadcast %cst_16 : f32 to vector<392x128xf32>
      %19 = arith.maximumf %17, %18 : vector<392x128xf32>
      %20 = arith.truncf %19 : vector<392x128xf32> to vector<392x128xbf16>
      %c0_17 = arith.constant 0 : index
      %c0_18 = arith.constant 0 : index
      %21 = vector.load %arg7[%c0_17, %c0_18] : memref<392x128xbf16, #tpu.memory_space<vmem>>, vector<392x128xbf16>
      tpu.vector_store %arg7[%c0_17, %c0_18], %20 {strides = array<i32>} : memref<392x128xbf16, #tpu.memory_space<vmem>>, vector<392x128xbf16>,
    } else {
    }
    return
  }
  func.func @transform_0(%arg0: i32, %arg1: i32, %arg2: i32, %arg3: i32) -> (i32, i32, i32) {
    %c0_i32 = arith.constant 0 : i32
    return %arg0, %arg1, %arg3 : i32, i32, i32
  }
  func.func @transform_1(%arg0: i32, %arg1: i32, %arg2: i32, %arg3: i32) -> (i32, i32, i32) {
    %c0_i32 = arith.constant 0 : i32
    return %arg0, %arg3, %arg2 : i32, i32, i32
  }
  func.func @transform_2(%arg0: i32, %arg1: i32, %arg2: i32, %arg3: i32) -> (i32, i32) {
    %c1_i32 = arith.constant 1 : i32
    %0 = arith.muli %arg0, %c1_i32 : i32
    %1 = arith.addi %0, %arg2 : i32
    %c0_i32 = arith.constant 0 : i32
    %c0_i32_0 = arith.constant 0 : i32
    return %c0_i32, %1 : i32, i32
  }
  func.func @transform_3(%arg0: i32, %arg1: i32, %arg2: i32, %arg3: i32) -> (i32, i32) {
    %c1_i32 = arith.constant 1 : i32
    %0 = arith.muli %arg0, %c1_i32 : i32
    %1 = arith.addi %0, %arg2 : i32
    %c0_i32 = arith.constant 0 : i32
    return %arg1, %1 : i32, i32
  }
}

module attributes {stable_mosaic.version = 11 : i64} {
  func.func @_mm_kernel(%arg0: i32, %arg1: i32, %arg2: i32, %arg3: i32, %arg4: memref<1x392x128xbf16, #tpu.memory_space<vmem>>, %arg5: memref<1x128x128xbf16, #tpu.memory_space<vmem>>, %arg6: memref<1x128xf32, #tpu.memory_space<vmem>>, %arg7: memref<392x128xbf16, #tpu.memory_space<vmem>>, %arg8: memref<392x128xf32, #tpu.memory_space<vmem>>) attributes {dimension_semantics = [#tpu.dimension_semantics<parallel>, #tpu.dimension_semantics<parallel>, #tpu.dimension_semantics<parallel>, #tpu.dimension_semantics<arbitrary>], iteration_bounds = array<i64: 2, 1, 1, 1>, scalar_prefetch = 0 : i64, scratch_operands = 1 : i64, tpu.core_type = #tpu.core_type<tc>, window_params = [{transform_indices = @transform_0, window_bounds = array<i64: 1, 392, 128>}, {transform_indices = @transform_1, window_bounds = array<i64: 1, 128, 128>}, {transform_indices = @transform_2, window_bounds = array<i64: 1, 128>}, {transform_indices = @transform_3, window_bounds = array<i64: 392, 128>}]} {
    %c0_i32 = arith.constant 0 : i32
    %0 = arith.cmpi eq, %arg3, %c0_i32 : i32
    %1 = arith.extui %0 : i1 to i32
    %c0_i32_0 = arith.constant 0 : i32
    %2 = arith.cmpi ne, %1, %c0_i32_0 : i32
    scf.if %2 {
      %cst_12 = arith.constant 0.000000e+00 : f32
      %14 = vector.broadcast %cst_12 : f32 to vector<392x128xf32>
      %c0_13 = arith.constant 0 : index
      %c0_14 = arith.constant 0 : index
      %15 = vector.load %arg8[%c0_13, %c0_14] : memref<392x128xf32, #tpu.memory_space<vmem>>, vector<392x128xf32>
      tpu.vector_store %arg8[%c0_13, %c0_14], %14 {strides = array<i32>} : memref<392x128xf32, #tpu.memory_space<vmem>>, vector<392x128xf32>,
    } else {
    }
    %c0 = arith.constant 0 : index
    %c0_1 = arith.constant 0 : index
    %3 = vector.load %arg8[%c0, %c0_1] : memref<392x128xf32, #tpu.memory_space<vmem>>, vector<392x128xf32>
    %c0_2 = arith.constant 0 : index
    %c0_3 = arith.constant 0 : index
    %c0_4 = arith.constant 0 : index
    %4 = vector.load %arg4[%c0_2, %c0_3, %c0_4] : memref<1x392x128xbf16, #tpu.memory_space<vmem>>, vector<1x392x128xbf16>
    %5 = vector.shape_cast %4 : vector<1x392x128xbf16> to vector<392x128xbf16>
    %c0_5 = arith.constant 0 : index
    %c0_6 = arith.constant 0 : index
    %c0_7 = arith.constant 0 : index
    %6 = vector.load %arg5[%c0_5, %c0_6, %c0_7] : memref<1x128x128xbf16, #tpu.memory_space<vmem>>, vector<1x128x128xbf16>
    %7 = vector.shape_cast %6 : vector<1x128x128xbf16> to vector<128x128xbf16>
    %cst = arith.constant dense<0.000000e+00> : vector<392x128xf32>
    %8 = tpu.matmul %5, %7, %cst {dimension_numbers = #tpu.dot_dimension_numbers<[1], [0], [0], [1], [0, 0, 1, 1], [], []>} : vector<392x128xbf16>, vector<128x128xbf16>, vector<392x128xf32> -> vector<392x128xf32>
    %9 = arith.addf %3, %8 : vector<392x128xf32>
    %c0_8 = arith.constant 0 : index
    %c0_9 = arith.constant 0 : index
    %10 = vector.load %arg8[%c0_8, %c0_9] : memref<392x128xf32, #tpu.memory_space<vmem>>, vector<392x128xf32>
    tpu.vector_store %arg8[%c0_8, %c0_9], %9 {strides = array<i32>} : memref<392x128xf32, #tpu.memory_space<vmem>>, vector<392x128xf32>,
    %c0_i32_10 = arith.constant 0 : i32
    %11 = arith.cmpi eq, %arg3, %c0_i32_10 : i32
    %12 = arith.extui %11 : i1 to i32
    %c0_i32_11 = arith.constant 0 : i32
    %13 = arith.cmpi ne, %12, %c0_i32_11 : i32
    scf.if %13 {
      %c0_12 = arith.constant 0 : index
      %c0_13 = arith.constant 0 : index
      %14 = vector.load %arg8[%c0_12, %c0_13] : memref<392x128xf32, #tpu.memory_space<vmem>>, vector<392x128xf32>
      %c0_14 = arith.constant 0 : index
      %c0_15 = arith.constant 0 : index
      %15 = vector.load %arg6[%c0_14, %c0_15] : memref<1x128xf32, #tpu.memory_space<vmem>>, vector<1x128xf32>
      %16 = vector.broadcast %15 : vector<1x128xf32> to vector<392x128xf32>
      %17 = arith.addf %14, %16 : vector<392x128xf32>
      %cst_16 = arith.constant 0.000000e+00 : f32
      %18 = vector.broadcast %cst_16 : f32 to vector<392x128xf32>
      %19 = arith.maximumf %17, %18 : vector<392x128xf32>
      %20 = arith.truncf %19 : vector<392x128xf32> to vector<392x128xbf16>
      %c0_17 = arith.constant 0 : index
      %c0_18 = arith.constant 0 : index
      %21 = vector.load %arg7[%c0_17, %c0_18] : memref<392x128xbf16, #tpu.memory_space<vmem>>, vector<392x128xbf16>
      tpu.vector_store %arg7[%c0_17, %c0_18], %20 {strides = array<i32>} : memref<392x128xbf16, #tpu.memory_space<vmem>>, vector<392x128xbf16>,
    } else {
    }
    return
  }
  func.func @transform_0(%arg0: i32, %arg1: i32, %arg2: i32, %arg3: i32) -> (i32, i32, i32) {
    %c0_i32 = arith.constant 0 : i32
    return %arg0, %arg1, %arg3 : i32, i32, i32
  }
  func.func @transform_1(%arg0: i32, %arg1: i32, %arg2: i32, %arg3: i32) -> (i32, i32, i32) {
    %c0_i32 = arith.constant 0 : i32
    return %arg0, %arg3, %arg2 : i32, i32, i32
  }
  func.func @transform_2(%arg0: i32, %arg1: i32, %arg2: i32, %arg3: i32) -> (i32, i32) {
    %c1_i32 = arith.constant 1 : i32
    %0 = arith.muli %arg0, %c1_i32 : i32
    %1 = arith.addi %0, %arg2 : i32
    %c0_i32 = arith.constant 0 : i32
    %c0_i32_0 = arith.constant 0 : i32
    return %c0_i32, %1 : i32, i32
  }
  func.func @transform_3(%arg0: i32, %arg1: i32, %arg2: i32, %arg3: i32) -> (i32, i32) {
    %c1_i32 = arith.constant 1 : i32
    %0 = arith.muli %arg0, %c1_i32 : i32
    %1 = arith.addi %0, %arg2 : i32
    %c0_i32 = arith.constant 0 : i32
    return %arg1, %1 : i32, i32
  }
}

module attributes {stable_mosaic.version = 11 : i64} {
  func.func @_mm_kernel(%arg0: i32, %arg1: i32, %arg2: i32, %arg3: i32, %arg4: memref<1x392x128xbf16, #tpu.memory_space<vmem>>, %arg5: memref<1x128x128xbf16, #tpu.memory_space<vmem>>, %arg6: memref<1x128xf32, #tpu.memory_space<vmem>>, %arg7: memref<392x128xbf16, #tpu.memory_space<vmem>>, %arg8: memref<392x128xf32, #tpu.memory_space<vmem>>) attributes {dimension_semantics = [#tpu.dimension_semantics<parallel>, #tpu.dimension_semantics<parallel>, #tpu.dimension_semantics<parallel>, #tpu.dimension_semantics<arbitrary>], iteration_bounds = array<i64: 1, 1, 1, 1>, scalar_prefetch = 0 : i64, scratch_operands = 1 : i64, tpu.core_type = #tpu.core_type<tc>, window_params = [{transform_indices = @transform_0, window_bounds = array<i64: 1, 392, 128>}, {transform_indices = @transform_1, window_bounds = array<i64: 1, 128, 128>}, {transform_indices = @transform_2, window_bounds = array<i64: 1, 128>}, {transform_indices = @transform_3, window_bounds = array<i64: 392, 128>}]} {
    %c0_i32 = arith.constant 0 : i32
    %0 = arith.cmpi eq, %arg3, %c0_i32 : i32
    %1 = arith.extui %0 : i1 to i32
    %c0_i32_0 = arith.constant 0 : i32
    %2 = arith.cmpi ne, %1, %c0_i32_0 : i32
    scf.if %2 {
      %cst_12 = arith.constant 0.000000e+00 : f32
      %14 = vector.broadcast %cst_12 : f32 to vector<392x128xf32>
      %c0_13 = arith.constant 0 : index
      %c0_14 = arith.constant 0 : index
      %15 = vector.load %arg8[%c0_13, %c0_14] : memref<392x128xf32, #tpu.memory_space<vmem>>, vector<392x128xf32>
      tpu.vector_store %arg8[%c0_13, %c0_14], %14 {strides = array<i32>} : memref<392x128xf32, #tpu.memory_space<vmem>>, vector<392x128xf32>,
    } else {
    }
    %c0 = arith.constant 0 : index
    %c0_1 = arith.constant 0 : index
    %3 = vector.load %arg8[%c0, %c0_1] : memref<392x128xf32, #tpu.memory_space<vmem>>, vector<392x128xf32>
    %c0_2 = arith.constant 0 : index
    %c0_3 = arith.constant 0 : index
    %c0_4 = arith.constant 0 : index
    %4 = vector.load %arg4[%c0_2, %c0_3, %c0_4] : memref<1x392x128xbf16, #tpu.memory_space<vmem>>, vector<1x392x128xbf16>
    %5 = vector.shape_cast %4 : vector<1x392x128xbf16> to vector<392x128xbf16>
    %c0_5 = arith.constant 0 : index
    %c0_6 = arith.constant 0 : index
    %c0_7 = arith.constant 0 : index
    %6 = vector.load %arg5[%c0_5, %c0_6, %c0_7] : memref<1x128x128xbf16, #tpu.memory_space<vmem>>, vector<1x128x128xbf16>
    %7 = vector.shape_cast %6 : vector<1x128x128xbf16> to vector<128x128xbf16>
    %cst = arith.constant dense<0.000000e+00> : vector<392x128xf32>
    %8 = tpu.matmul %5, %7, %cst {dimension_numbers = #tpu.dot_dimension_numbers<[1], [0], [0], [1], [0, 0, 1, 1], [], []>} : vector<392x128xbf16>, vector<128x128xbf16>, vector<392x128xf32> -> vector<392x128xf32>
    %9 = arith.addf %3, %8 : vector<392x128xf32>
    %c0_8 = arith.constant 0 : index
    %c0_9 = arith.constant 0 : index
    %10 = vector.load %arg8[%c0_8, %c0_9] : memref<392x128xf32, #tpu.memory_space<vmem>>, vector<392x128xf32>
    tpu.vector_store %arg8[%c0_8, %c0_9], %9 {strides = array<i32>} : memref<392x128xf32, #tpu.memory_space<vmem>>, vector<392x128xf32>,
    %c0_i32_10 = arith.constant 0 : i32
    %11 = arith.cmpi eq, %arg3, %c0_i32_10 : i32
    %12 = arith.extui %11 : i1 to i32
    %c0_i32_11 = arith.constant 0 : i32
    %13 = arith.cmpi ne, %12, %c0_i32_11 : i32
    scf.if %13 {
      %c0_12 = arith.constant 0 : index
      %c0_13 = arith.constant 0 : index
      %14 = vector.load %arg8[%c0_12, %c0_13] : memref<392x128xf32, #tpu.memory_space<vmem>>, vector<392x128xf32>
      %c0_14 = arith.constant 0 : index
      %c0_15 = arith.constant 0 : index
      %15 = vector.load %arg6[%c0_14, %c0_15] : memref<1x128xf32, #tpu.memory_space<vmem>>, vector<1x128xf32>
      %16 = vector.broadcast %15 : vector<1x128xf32> to vector<392x128xf32>
      %17 = arith.addf %14, %16 : vector<392x128xf32>
      %18 = arith.truncf %17 : vector<392x128xf32> to vector<392x128xbf16>
      %c0_16 = arith.constant 0 : index
      %c0_17 = arith.constant 0 : index
      %19 = vector.load %arg7[%c0_16, %c0_17] : memref<392x128xbf16, #tpu.memory_space<vmem>>, vector<392x128xbf16>
      tpu.vector_store %arg7[%c0_16, %c0_17], %18 {strides = array<i32>} : memref<392x128xbf16, #tpu.memory_space<vmem>>, vector<392x128xbf16>,
    } else {
    }
    return
  }
  func.func @transform_0(%arg0: i32, %arg1: i32, %arg2: i32, %arg3: i32) -> (i32, i32, i32) {
    %c0_i32 = arith.constant 0 : i32
    return %arg0, %arg1, %arg3 : i32, i32, i32
  }
  func.func @transform_1(%arg0: i32, %arg1: i32, %arg2: i32, %arg3: i32) -> (i32, i32, i32) {
    %c0_i32 = arith.constant 0 : i32
    return %arg0, %arg3, %arg2 : i32, i32, i32
  }
  func.func @transform_2(%arg0: i32, %arg1: i32, %arg2: i32, %arg3: i32) -> (i32, i32) {
    %c1_i32 = arith.constant 1 : i32
    %0 = arith.muli %arg0, %c1_i32 : i32
    %1 = arith.addi %0, %arg2 : i32
    %c0_i32 = arith.constant 0 : i32
    %c0_i32_0 = arith.constant 0 : i32
    return %c0_i32, %1 : i32, i32
  }
  func.func @transform_3(%arg0: i32, %arg1: i32, %arg2: i32, %arg3: i32) -> (i32, i32) {
    %c1_i32 = arith.constant 1 : i32
    %0 = arith.muli %arg0, %c1_i32 : i32
    %1 = arith.addi %0, %arg2 : i32
    %c0_i32 = arith.constant 0 : i32
    return %arg1, %1 : i32, i32
  }
}

module attributes {stable_mosaic.version = 11 : i64} {
  func.func @_se_kernel(%arg0: i32, %arg1: i32, %arg2: memref<1x196x16xbf16, #tpu.memory_space<vmem>>, %arg3: memref<16x8xbf16, #tpu.memory_space<vmem>>, %arg4: memref<1x8xf32, #tpu.memory_space<vmem>>, %arg5: memref<8x16xbf16, #tpu.memory_space<vmem>>, %arg6: memref<1x16xf32, #tpu.memory_space<vmem>>, %arg7: memref<1x1x16xf32, #tpu.memory_space<vmem>>, %arg8: memref<1x16xf32, #tpu.memory_space<vmem>>) attributes {dimension_semantics = [#tpu.dimension_semantics<parallel>, #tpu.dimension_semantics<arbitrary>], iteration_bounds = array<i64: 2, 1>, scalar_prefetch = 0 : i64, scratch_operands = 1 : i64, tpu.core_type = #tpu.core_type<tc>, window_params = [{transform_indices = @transform_0, window_bounds = array<i64: 1, 196, 16>}, {pipeline_mode = #tpu.pipeline_mode<synchronous>, transform_indices = @transform_1, window_bounds = array<i64: 16, 8>}, {pipeline_mode = #tpu.pipeline_mode<synchronous>, transform_indices = @transform_2, window_bounds = array<i64: 1, 8>}, {pipeline_mode = #tpu.pipeline_mode<synchronous>, transform_indices = @transform_3, window_bounds = array<i64: 8, 16>}, {pipeline_mode = #tpu.pipeline_mode<synchronous>, transform_indices = @transform_4, window_bounds = array<i64: 1, 16>}, {transform_indices = @transform_5, window_bounds = array<i64: 1, 1, 16>}]} {
    %c0_i32 = arith.constant 0 : i32
    %0 = arith.cmpi eq, %arg1, %c0_i32 : i32
    %1 = arith.extui %0 : i1 to i32
    %c0_i32_0 = arith.constant 0 : i32
    %2 = arith.cmpi ne, %1, %c0_i32_0 : i32
    scf.if %2 {
      %cst_9 = arith.constant 0.000000e+00 : f32
      %14 = vector.broadcast %cst_9 : f32 to vector<1x16xf32>
      %c0_10 = arith.constant 0 : index
      %c0_11 = arith.constant 0 : index
      %15 = vector.load %arg8[%c0_10, %c0_11] : memref<1x16xf32, #tpu.memory_space<vmem>>, vector<1x16xf32>
      tpu.vector_store %arg8[%c0_10, %c0_11], %14 {strides = array<i32>} : memref<1x16xf32, #tpu.memory_space<vmem>>, vector<1x16xf32>,
    } else {
    }
    %c0 = arith.constant 0 : index
    %c0_1 = arith.constant 0 : index
    %3 = vector.load %arg8[%c0, %c0_1] : memref<1x16xf32, #tpu.memory_space<vmem>>, vector<1x16xf32>
    %c0_2 = arith.constant 0 : index
    %c0_3 = arith.constant 0 : index
    %c0_4 = arith.constant 0 : index
    %4 = vector.load %arg2[%c0_2, %c0_3, %c0_4] : memref<1x196x16xbf16, #tpu.memory_space<vmem>>, vector<1x196x16xbf16>
    %5 = vector.shape_cast %4 : vector<1x196x16xbf16> to vector<196x16xbf16>
    %6 = arith.extf %5 : vector<196x16xbf16> to vector<196x16xf32>
    %cst = arith.constant dense<0.000000e+00> : vector<16xf32>
    %7 = vector.multi_reduction <add>, %6, %cst [0] : vector<196x16xf32> to vector<16xf32>
    %8 = vector.shape_cast %7 : vector<16xf32> to vector<1x16xf32>
    %9 = arith.addf %3, %8 : vector<1x16xf32>
    %c0_5 = arith.constant 0 : index
    %c0_6 = arith.constant 0 : index
    %10 = vector.load %arg8[%c0_5, %c0_6] : memref<1x16xf32, #tpu.memory_space<vmem>>, vector<1x16xf32>
    tpu.vector_store %arg8[%c0_5, %c0_6], %9 {strides = array<i32>} : memref<1x16xf32, #tpu.memory_space<vmem>>, vector<1x16xf32>,
    %c0_i32_7 = arith.constant 0 : i32
    %11 = arith.cmpi eq, %arg1, %c0_i32_7 : i32
    %12 = arith.extui %11 : i1 to i32
    %c0_i32_8 = arith.constant 0 : i32
    %13 = arith.cmpi ne, %12, %c0_i32_8 : i32
    scf.if %13 {
      %c0_9 = arith.constant 0 : index
      %c0_10 = arith.constant 0 : index
      %14 = vector.load %arg8[%c0_9, %c0_10] : memref<1x16xf32, #tpu.memory_space<vmem>>, vector<1x16xf32>
      %cst_11 = arith.constant 0.00510204071 : f32
      %15 = vector.broadcast %cst_11 : f32 to vector<1x16xf32>
      %16 = arith.mulf %14, %15 : vector<1x16xf32>
      %17 = arith.truncf %16 : vector<1x16xf32> to vector<1x16xbf16>
      %c0_12 = arith.constant 0 : index
      %c0_13 = arith.constant 0 : index
      %18 = vector.load %arg3[%c0_12, %c0_13] : memref<16x8xbf16, #tpu.memory_space<vmem>>, vector<16x8xbf16>
      %cst_14 = arith.constant dense<0.000000e+00> : vector<1x8xf32>
      %19 = tpu.matmul %17, %18, %cst_14 {dimension_numbers = #tpu.dot_dimension_numbers<[1], [0], [0], [1], [0, 0, 1, 1], [], []>} : vector<1x16xbf16>, vector<16x8xbf16>, vector<1x8xf32> -> vector<1x8xf32>
      %c0_15 = arith.constant 0 : index
      %c0_16 = arith.constant 0 : index
      %20 = vector.load %arg4[%c0_15, %c0_16] : memref<1x8xf32, #tpu.memory_space<vmem>>, vector<1x8xf32>
      %21 = arith.addf %19, %20 : vector<1x8xf32>
      %cst_17 = arith.constant 0.000000e+00 : f32
      %22 = vector.broadcast %cst_17 : f32 to vector<1x8xf32>
      %23 = arith.maximumf %21, %22 : vector<1x8xf32>
      %24 = arith.truncf %23 : vector<1x8xf32> to vector<1x8xbf16>
      %c0_18 = arith.constant 0 : index
      %c0_19 = arith.constant 0 : index
      %25 = vector.load %arg5[%c0_18, %c0_19] : memref<8x16xbf16, #tpu.memory_space<vmem>>, vector<8x16xbf16>
      %cst_20 = arith.constant dense<0.000000e+00> : vector<1x16xf32>
      %26 = tpu.matmul %24, %25, %cst_20 {dimension_numbers = #tpu.dot_dimension_numbers<[1], [0], [0], [1], [0, 0, 1, 1], [], []>} : vector<1x8xbf16>, vector<8x16xbf16>, vector<1x16xf32> -> vector<1x16xf32>
      %c0_21 = arith.constant 0 : index
      %c0_22 = arith.constant 0 : index
      %27 = vector.load %arg6[%c0_21, %c0_22] : memref<1x16xf32, #tpu.memory_space<vmem>>, vector<1x16xf32>
      %28 = arith.addf %26, %27 : vector<1x16xf32>
      %29 = arith.negf %28 : vector<1x16xf32>
      %30 = math.exp %29 : vector<1x16xf32>
      %cst_23 = arith.constant 1.000000e+00 : f32
      %31 = vector.broadcast %cst_23 : f32 to vector<1x16xf32>
      %32 = arith.addf %31, %30 : vector<1x16xf32>
      %33 = arith.divf %31, %32 : vector<1x16xf32>
      %c0_24 = arith.constant 0 : index
      %c0_25 = arith.constant 0 : index
      %c0_26 = arith.constant 0 : index
      %34 = vector.load %arg7[%c0_24, %c0_25, %c0_26] : memref<1x1x16xf32, #tpu.memory_space<vmem>>, vector<1x1x16xf32>
      %35 = vector.shape_cast %34 : vector<1x1x16xf32> to vector<1x16xf32>
      %36 = vector.shape_cast %33 : vector<1x16xf32> to vector<1x1x16xf32>
      tpu.vector_store %arg7[%c0_24, %c0_25, %c0_26], %36 {strides = array<i32>} : memref<1x1x16xf32, #tpu.memory_space<vmem>>, vector<1x1x16xf32>,
    } else {
    }
    return
  }
  func.func @transform_0(%arg0: i32, %arg1: i32) -> (i32, i32, i32) {
    %c0_i32 = arith.constant 0 : i32
    %c0_i32_0 = arith.constant 0 : i32
    return %arg0, %arg1, %c0_i32 : i32, i32, i32
  }
  func.func @transform_1(%arg0: i32, %arg1: i32) -> (i32, i32) {
    %c0_i32 = arith.constant 0 : i32
    %c0_i32_0 = arith.constant 0 : i32
    %c0_i32_1 = arith.constant 0 : i32
    return %c0_i32, %c0_i32_0 : i32, i32
  }
  func.func @transform_2(%arg0: i32, %arg1: i32) -> (i32, i32) {
    %c0_i32 = arith.constant 0 : i32
    %c0_i32_0 = arith.constant 0 : i32
    %c0_i32_1 = arith.constant 0 : i32
    return %c0_i32, %c0_i32_0 : i32, i32
  }
  func.func @transform_3(%arg0: i32, %arg1: i32) -> (i32, i32) {
    %c0_i32 = arith.constant 0 : i32
    %c0_i32_0 = arith.constant 0 : i32
    %c0_i32_1 = arith.constant 0 : i32
    return %c0_i32, %c0_i32_0 : i32, i32
  }
  func.func @transform_4(%arg0: i32, %arg1: i32) -> (i32, i32) {
    %c0_i32 = arith.constant 0 : i32
    %c0_i32_0 = arith.constant 0 : i32
    %c0_i32_1 = arith.constant 0 : i32
    return %c0_i32, %c0_i32_0 : i32, i32
  }
  func.func @transform_5(%arg0: i32, %arg1: i32) -> (i32, i32, i32) {
    %c0_i32 = arith.constant 0 : i32
    %c0_i32_0 = arith.constant 0 : i32
    %c0_i32_1 = arith.constant 0 : i32
    return %arg0, %c0_i32, %c0_i32_0 : i32, i32, i32
  }
}

module attributes {stable_mosaic.version = 11 : i64} {
  func.func @_scale_res_kernel(%arg0: i32, %arg1: i32, %arg2: memref<1x196x16xbf16, #tpu.memory_space<vmem>>, %arg3: memref<1x1x16xf32, #tpu.memory_space<vmem>>, %arg4: memref<1x196x16xbf16, #tpu.memory_space<vmem>>, %arg5: memref<1x196x16xbf16, #tpu.memory_space<vmem>>) attributes {dimension_semantics = [#tpu.dimension_semantics<parallel>, #tpu.dimension_semantics<parallel>], iteration_bounds = array<i64: 2, 1>, scalar_prefetch = 0 : i64, scratch_operands = 0 : i64, tpu.core_type = #tpu.core_type<tc>, window_params = [{transform_indices = @transform_0, window_bounds = array<i64: 1, 196, 16>}, {transform_indices = @transform_1, window_bounds = array<i64: 1, 1, 16>}, {transform_indices = @transform_2, window_bounds = array<i64: 1, 196, 16>}, {transform_indices = @transform_3, window_bounds = array<i64: 1, 196, 16>}]} {
    %c0 = arith.constant 0 : index
    %c0_0 = arith.constant 0 : index
    %c0_1 = arith.constant 0 : index
    %0 = vector.load %arg2[%c0, %c0_0, %c0_1] : memref<1x196x16xbf16, #tpu.memory_space<vmem>>, vector<1x196x16xbf16>
    %1 = vector.shape_cast %0 : vector<1x196x16xbf16> to vector<196x16xbf16>
    %2 = arith.extf %1 : vector<196x16xbf16> to vector<196x16xf32>
    %c0_2 = arith.constant 0 : index
    %c0_3 = arith.constant 0 : index
    %c0_4 = arith.constant 0 : index
    %3 = vector.load %arg4[%c0_2, %c0_3, %c0_4] : memref<1x196x16xbf16, #tpu.memory_space<vmem>>, vector<1x196x16xbf16>
    %4 = vector.shape_cast %3 : vector<1x196x16xbf16> to vector<196x16xbf16>
    %5 = arith.extf %4 : vector<196x16xbf16> to vector<196x16xf32>
    %c0_5 = arith.constant 0 : index
    %c0_6 = arith.constant 0 : index
    %c0_7 = arith.constant 0 : index
    %6 = vector.load %arg3[%c0_5, %c0_6, %c0_7] : memref<1x1x16xf32, #tpu.memory_space<vmem>>, vector<1x1x16xf32>
    %7 = vector.shape_cast %6 : vector<1x1x16xf32> to vector<1x16xf32>
    %8 = vector.broadcast %7 : vector<1x16xf32> to vector<196x16xf32>
    %9 = arith.mulf %2, %8 : vector<196x16xf32>
    %10 = arith.addf %9, %5 : vector<196x16xf32>
    %cst = arith.constant 0.000000e+00 : f32
    %11 = vector.broadcast %cst : f32 to vector<196x16xf32>
    %12 = arith.maximumf %10, %11 : vector<196x16xf32>
    %13 = arith.truncf %12 : vector<196x16xf32> to vector<196x16xbf16>
    %c0_8 = arith.constant 0 : index
    %c0_9 = arith.constant 0 : index
    %c0_10 = arith.constant 0 : index
    %14 = vector.load %arg5[%c0_8, %c0_9, %c0_10] : memref<1x196x16xbf16, #tpu.memory_space<vmem>>, vector<1x196x16xbf16>
    %15 = vector.shape_cast %14 : vector<1x196x16xbf16> to vector<196x16xbf16>
    %16 = vector.shape_cast %13 : vector<196x16xbf16> to vector<1x196x16xbf16>
    tpu.vector_store %arg5[%c0_8, %c0_9, %c0_10], %16 {strides = array<i32>} : memref<1x196x16xbf16, #tpu.memory_space<vmem>>, vector<1x196x16xbf16>,
    return
  }
  func.func @transform_0(%arg0: i32, %arg1: i32) -> (i32, i32, i32) {
    %c0_i32 = arith.constant 0 : i32
    %c0_i32_0 = arith.constant 0 : i32
    return %arg0, %arg1, %c0_i32 : i32, i32, i32
  }
  func.func @transform_1(%arg0: i32, %arg1: i32) -> (i32, i32, i32) {
    %c0_i32 = arith.constant 0 : i32
    %c0_i32_0 = arith.constant 0 : i32
    %c0_i32_1 = arith.constant 0 : i32
    return %arg0, %c0_i32, %c0_i32_0 : i32, i32, i32
  }
  func.func @transform_2(%arg0: i32, %arg1: i32) -> (i32, i32, i32) {
    %c0_i32 = arith.constant 0 : i32
    %c0_i32_0 = arith.constant 0 : i32
    return %arg0, %arg1, %c0_i32 : i32, i32, i32
  }
  func.func @transform_3(%arg0: i32, %arg1: i32) -> (i32, i32, i32) {
    %c0_i32 = arith.constant 0 : i32
    %c0_i32_0 = arith.constant 0 : i32
    return %arg0, %arg1, %c0_i32 : i32, i32, i32
  }
}

module attributes {stable_mosaic.version = 11 : i64} {
  func.func @_mm_kernel(%arg0: i32, %arg1: i32, %arg2: i32, %arg3: i32, %arg4: memref<1x104x256xbf16, #tpu.memory_space<vmem>>, %arg5: memref<1x256x128xbf16, #tpu.memory_space<vmem>>, %arg6: memref<1x128xf32, #tpu.memory_space<vmem>>, %arg7: memref<104x128xbf16, #tpu.memory_space<vmem>>, %arg8: memref<104x128xf32, #tpu.memory_space<vmem>>) attributes {dimension_semantics = [#tpu.dimension_semantics<parallel>, #tpu.dimension_semantics<parallel>, #tpu.dimension_semantics<parallel>, #tpu.dimension_semantics<arbitrary>], iteration_bounds = array<i64: 1, 1, 1, 1>, scalar_prefetch = 0 : i64, scratch_operands = 1 : i64, tpu.core_type = #tpu.core_type<tc>, window_params = [{transform_indices = @transform_0, window_bounds = array<i64: 1, 104, 256>}, {transform_indices = @transform_1, window_bounds = array<i64: 1, 256, 128>}, {transform_indices = @transform_2, window_bounds = array<i64: 1, 128>}, {transform_indices = @transform_3, window_bounds = array<i64: 104, 128>}]} {
    %c0_i32 = arith.constant 0 : i32
    %0 = arith.cmpi eq, %arg3, %c0_i32 : i32
    %1 = arith.extui %0 : i1 to i32
    %c0_i32_0 = arith.constant 0 : i32
    %2 = arith.cmpi ne, %1, %c0_i32_0 : i32
    scf.if %2 {
      %cst_12 = arith.constant 0.000000e+00 : f32
      %14 = vector.broadcast %cst_12 : f32 to vector<104x128xf32>
      %c0_13 = arith.constant 0 : index
      %c0_14 = arith.constant 0 : index
      %15 = vector.load %arg8[%c0_13, %c0_14] : memref<104x128xf32, #tpu.memory_space<vmem>>, vector<104x128xf32>
      tpu.vector_store %arg8[%c0_13, %c0_14], %14 {strides = array<i32>} : memref<104x128xf32, #tpu.memory_space<vmem>>, vector<104x128xf32>,
    } else {
    }
    %c0 = arith.constant 0 : index
    %c0_1 = arith.constant 0 : index
    %3 = vector.load %arg8[%c0, %c0_1] : memref<104x128xf32, #tpu.memory_space<vmem>>, vector<104x128xf32>
    %c0_2 = arith.constant 0 : index
    %c0_3 = arith.constant 0 : index
    %c0_4 = arith.constant 0 : index
    %4 = vector.load %arg4[%c0_2, %c0_3, %c0_4] : memref<1x104x256xbf16, #tpu.memory_space<vmem>>, vector<1x104x256xbf16>
    %5 = vector.shape_cast %4 : vector<1x104x256xbf16> to vector<104x256xbf16>
    %c0_5 = arith.constant 0 : index
    %c0_6 = arith.constant 0 : index
    %c0_7 = arith.constant 0 : index
    %6 = vector.load %arg5[%c0_5, %c0_6, %c0_7] : memref<1x256x128xbf16, #tpu.memory_space<vmem>>, vector<1x256x128xbf16>
    %7 = vector.shape_cast %6 : vector<1x256x128xbf16> to vector<256x128xbf16>
    %cst = arith.constant dense<0.000000e+00> : vector<104x128xf32>
    %8 = tpu.matmul %5, %7, %cst {dimension_numbers = #tpu.dot_dimension_numbers<[1], [0], [0], [1], [0, 0, 1, 1], [], []>} : vector<104x256xbf16>, vector<256x128xbf16>, vector<104x128xf32> -> vector<104x128xf32>
    %9 = arith.addf %3, %8 : vector<104x128xf32>
    %c0_8 = arith.constant 0 : index
    %c0_9 = arith.constant 0 : index
    %10 = vector.load %arg8[%c0_8, %c0_9] : memref<104x128xf32, #tpu.memory_space<vmem>>, vector<104x128xf32>
    tpu.vector_store %arg8[%c0_8, %c0_9], %9 {strides = array<i32>} : memref<104x128xf32, #tpu.memory_space<vmem>>, vector<104x128xf32>,
    %c0_i32_10 = arith.constant 0 : i32
    %11 = arith.cmpi eq, %arg3, %c0_i32_10 : i32
    %12 = arith.extui %11 : i1 to i32
    %c0_i32_11 = arith.constant 0 : i32
    %13 = arith.cmpi ne, %12, %c0_i32_11 : i32
    scf.if %13 {
      %c0_12 = arith.constant 0 : index
      %c0_13 = arith.constant 0 : index
      %14 = vector.load %arg8[%c0_12, %c0_13] : memref<104x128xf32, #tpu.memory_space<vmem>>, vector<104x128xf32>
      %c0_14 = arith.constant 0 : index
      %c0_15 = arith.constant 0 : index
      %15 = vector.load %arg6[%c0_14, %c0_15] : memref<1x128xf32, #tpu.memory_space<vmem>>, vector<1x128xf32>
      %16 = vector.broadcast %15 : vector<1x128xf32> to vector<104x128xf32>
      %17 = arith.addf %14, %16 : vector<104x128xf32>
      %18 = arith.truncf %17 : vector<104x128xf32> to vector<104x128xbf16>
      %c0_16 = arith.constant 0 : index
      %c0_17 = arith.constant 0 : index
      %19 = vector.load %arg7[%c0_16, %c0_17] : memref<104x128xbf16, #tpu.memory_space<vmem>>, vector<104x128xbf16>
      tpu.vector_store %arg7[%c0_16, %c0_17], %18 {strides = array<i32>} : memref<104x128xbf16, #tpu.memory_space<vmem>>, vector<104x128xbf16>,
    } else {
    }
    return
  }
  func.func @transform_0(%arg0: i32, %arg1: i32, %arg2: i32, %arg3: i32) -> (i32, i32, i32) {
    %c0_i32 = arith.constant 0 : i32
    return %arg0, %arg1, %arg3 : i32, i32, i32
  }
  func.func @transform_1(%arg0: i32, %arg1: i32, %arg2: i32, %arg3: i32) -> (i32, i32, i32) {
    %c0_i32 = arith.constant 0 : i32
    return %arg0, %arg3, %arg2 : i32, i32, i32
  }
  func.func @transform_2(%arg0: i32, %arg1: i32, %arg2: i32, %arg3: i32) -> (i32, i32) {
    %c1_i32 = arith.constant 1 : i32
    %0 = arith.muli %arg0, %c1_i32 : i32
    %1 = arith.addi %0, %arg2 : i32
    %c0_i32 = arith.constant 0 : i32
    %c0_i32_0 = arith.constant 0 : i32
    return %c0_i32, %1 : i32, i32
  }
  func.func @transform_3(%arg0: i32, %arg1: i32, %arg2: i32, %arg3: i32) -> (i32, i32) {
    %c1_i32 = arith.constant 1 : i32
    %0 = arith.muli %arg0, %c1_i32 : i32
    %1 = arith.addi %0, %arg2 : i32
    %c0_i32 = arith.constant 0 : i32
    return %arg1, %1 : i32, i32
  }
}

module attributes {stable_mosaic.version = 11 : i64} {
  func.func @_mm_kernel(%arg0: i32, %arg1: i32, %arg2: i32, %arg3: i32, %arg4: memref<1x104x128xbf16, #tpu.memory_space<vmem>>, %arg5: memref<1x128x128xbf16, #tpu.memory_space<vmem>>, %arg6: memref<1x128xf32, #tpu.memory_space<vmem>>, %arg7: memref<104x128xbf16, #tpu.memory_space<vmem>>, %arg8: memref<104x128xf32, #tpu.memory_space<vmem>>) attributes {dimension_semantics = [#tpu.dimension_semantics<parallel>, #tpu.dimension_semantics<parallel>, #tpu.dimension_semantics<parallel>, #tpu.dimension_semantics<arbitrary>], iteration_bounds = array<i64: 2, 1, 1, 1>, scalar_prefetch = 0 : i64, scratch_operands = 1 : i64, tpu.core_type = #tpu.core_type<tc>, window_params = [{transform_indices = @transform_0, window_bounds = array<i64: 1, 104, 128>}, {transform_indices = @transform_1, window_bounds = array<i64: 1, 128, 128>}, {transform_indices = @transform_2, window_bounds = array<i64: 1, 128>}, {transform_indices = @transform_3, window_bounds = array<i64: 104, 128>}]} {
    %c0_i32 = arith.constant 0 : i32
    %0 = arith.cmpi eq, %arg3, %c0_i32 : i32
    %1 = arith.extui %0 : i1 to i32
    %c0_i32_0 = arith.constant 0 : i32
    %2 = arith.cmpi ne, %1, %c0_i32_0 : i32
    scf.if %2 {
      %cst_12 = arith.constant 0.000000e+00 : f32
      %14 = vector.broadcast %cst_12 : f32 to vector<104x128xf32>
      %c0_13 = arith.constant 0 : index
      %c0_14 = arith.constant 0 : index
      %15 = vector.load %arg8[%c0_13, %c0_14] : memref<104x128xf32, #tpu.memory_space<vmem>>, vector<104x128xf32>
      tpu.vector_store %arg8[%c0_13, %c0_14], %14 {strides = array<i32>} : memref<104x128xf32, #tpu.memory_space<vmem>>, vector<104x128xf32>,
    } else {
    }
    %c0 = arith.constant 0 : index
    %c0_1 = arith.constant 0 : index
    %3 = vector.load %arg8[%c0, %c0_1] : memref<104x128xf32, #tpu.memory_space<vmem>>, vector<104x128xf32>
    %c0_2 = arith.constant 0 : index
    %c0_3 = arith.constant 0 : index
    %c0_4 = arith.constant 0 : index
    %4 = vector.load %arg4[%c0_2, %c0_3, %c0_4] : memref<1x104x128xbf16, #tpu.memory_space<vmem>>, vector<1x104x128xbf16>
    %5 = vector.shape_cast %4 : vector<1x104x128xbf16> to vector<104x128xbf16>
    %c0_5 = arith.constant 0 : index
    %c0_6 = arith.constant 0 : index
    %c0_7 = arith.constant 0 : index
    %6 = vector.load %arg5[%c0_5, %c0_6, %c0_7] : memref<1x128x128xbf16, #tpu.memory_space<vmem>>, vector<1x128x128xbf16>
    %7 = vector.shape_cast %6 : vector<1x128x128xbf16> to vector<128x128xbf16>
    %cst = arith.constant dense<0.000000e+00> : vector<104x128xf32>
    %8 = tpu.matmul %5, %7, %cst {dimension_numbers = #tpu.dot_dimension_numbers<[1], [0], [0], [1], [0, 0, 1, 1], [], []>} : vector<104x128xbf16>, vector<128x128xbf16>, vector<104x128xf32> -> vector<104x128xf32>
    %9 = arith.addf %3, %8 : vector<104x128xf32>
    %c0_8 = arith.constant 0 : index
    %c0_9 = arith.constant 0 : index
    %10 = vector.load %arg8[%c0_8, %c0_9] : memref<104x128xf32, #tpu.memory_space<vmem>>, vector<104x128xf32>
    tpu.vector_store %arg8[%c0_8, %c0_9], %9 {strides = array<i32>} : memref<104x128xf32, #tpu.memory_space<vmem>>, vector<104x128xf32>,
    %c0_i32_10 = arith.constant 0 : i32
    %11 = arith.cmpi eq, %arg3, %c0_i32_10 : i32
    %12 = arith.extui %11 : i1 to i32
    %c0_i32_11 = arith.constant 0 : i32
    %13 = arith.cmpi ne, %12, %c0_i32_11 : i32
    scf.if %13 {
      %c0_12 = arith.constant 0 : index
      %c0_13 = arith.constant 0 : index
      %14 = vector.load %arg8[%c0_12, %c0_13] : memref<104x128xf32, #tpu.memory_space<vmem>>, vector<104x128xf32>
      %c0_14 = arith.constant 0 : index
      %c0_15 = arith.constant 0 : index
      %15 = vector.load %arg6[%c0_14, %c0_15] : memref<1x128xf32, #tpu.memory_space<vmem>>, vector<1x128xf32>
      %16 = vector.broadcast %15 : vector<1x128xf32> to vector<104x128xf32>
      %17 = arith.addf %14, %16 : vector<104x128xf32>
      %cst_16 = arith.constant 0.000000e+00 : f32
      %18 = vector.broadcast %cst_16 : f32 to vector<104x128xf32>
      %19 = arith.maximumf %17, %18 : vector<104x128xf32>
      %20 = arith.truncf %19 : vector<104x128xf32> to vector<104x128xbf16>
      %c0_17 = arith.constant 0 : index
      %c0_18 = arith.constant 0 : index
      %21 = vector.load %arg7[%c0_17, %c0_18] : memref<104x128xbf16, #tpu.memory_space<vmem>>, vector<104x128xbf16>
      tpu.vector_store %arg7[%c0_17, %c0_18], %20 {strides = array<i32>} : memref<104x128xbf16, #tpu.memory_space<vmem>>, vector<104x128xbf16>,
    } else {
    }
    return
  }
  func.func @transform_0(%arg0: i32, %arg1: i32, %arg2: i32, %arg3: i32) -> (i32, i32, i32) {
    %c0_i32 = arith.constant 0 : i32
    return %arg0, %arg1, %arg3 : i32, i32, i32
  }
  func.func @transform_1(%arg0: i32, %arg1: i32, %arg2: i32, %arg3: i32) -> (i32, i32, i32) {
    %c0_i32 = arith.constant 0 : i32
    return %arg0, %arg3, %arg2 : i32, i32, i32
  }
  func.func @transform_2(%arg0: i32, %arg1: i32, %arg2: i32, %arg3: i32) -> (i32, i32) {
    %c1_i32 = arith.constant 1 : i32
    %0 = arith.muli %arg0, %c1_i32 : i32
    %1 = arith.addi %0, %arg2 : i32
    %c0_i32 = arith.constant 0 : i32
    %c0_i32_0 = arith.constant 0 : i32
    return %c0_i32, %1 : i32, i32
  }
  func.func @transform_3(%arg0: i32, %arg1: i32, %arg2: i32, %arg3: i32) -> (i32, i32) {
    %c1_i32 = arith.constant 1 : i32
    %0 = arith.muli %arg0, %c1_i32 : i32
    %1 = arith.addi %0, %arg2 : i32
    %c0_i32 = arith.constant 0 : i32
    return %arg1, %1 : i32, i32
  }
}

module attributes {stable_mosaic.version = 11 : i64} {
  func.func @_se_kernel(%arg0: i32, %arg1: i32, %arg2: memref<1x49x32xbf16, #tpu.memory_space<vmem>>, %arg3: memref<32x8xbf16, #tpu.memory_space<vmem>>, %arg4: memref<1x8xf32, #tpu.memory_space<vmem>>, %arg5: memref<8x32xbf16, #tpu.memory_space<vmem>>, %arg6: memref<1x32xf32, #tpu.memory_space<vmem>>, %arg7: memref<1x1x32xf32, #tpu.memory_space<vmem>>, %arg8: memref<1x32xf32, #tpu.memory_space<vmem>>) attributes {dimension_semantics = [#tpu.dimension_semantics<parallel>, #tpu.dimension_semantics<arbitrary>], iteration_bounds = array<i64: 2, 1>, scalar_prefetch = 0 : i64, scratch_operands = 1 : i64, tpu.core_type = #tpu.core_type<tc>, window_params = [{transform_indices = @transform_0, window_bounds = array<i64: 1, 49, 32>}, {pipeline_mode = #tpu.pipeline_mode<synchronous>, transform_indices = @transform_1, window_bounds = array<i64: 32, 8>}, {pipeline_mode = #tpu.pipeline_mode<synchronous>, transform_indices = @transform_2, window_bounds = array<i64: 1, 8>}, {pipeline_mode = #tpu.pipeline_mode<synchronous>, transform_indices = @transform_3, window_bounds = array<i64: 8, 32>}, {pipeline_mode = #tpu.pipeline_mode<synchronous>, transform_indices = @transform_4, window_bounds = array<i64: 1, 32>}, {transform_indices = @transform_5, window_bounds = array<i64: 1, 1, 32>}]} {
    %c0_i32 = arith.constant 0 : i32
    %0 = arith.cmpi eq, %arg1, %c0_i32 : i32
    %1 = arith.extui %0 : i1 to i32
    %c0_i32_0 = arith.constant 0 : i32
    %2 = arith.cmpi ne, %1, %c0_i32_0 : i32
    scf.if %2 {
      %cst_9 = arith.constant 0.000000e+00 : f32
      %14 = vector.broadcast %cst_9 : f32 to vector<1x32xf32>
      %c0_10 = arith.constant 0 : index
      %c0_11 = arith.constant 0 : index
      %15 = vector.load %arg8[%c0_10, %c0_11] : memref<1x32xf32, #tpu.memory_space<vmem>>, vector<1x32xf32>
      tpu.vector_store %arg8[%c0_10, %c0_11], %14 {strides = array<i32>} : memref<1x32xf32, #tpu.memory_space<vmem>>, vector<1x32xf32>,
    } else {
    }
    %c0 = arith.constant 0 : index
    %c0_1 = arith.constant 0 : index
    %3 = vector.load %arg8[%c0, %c0_1] : memref<1x32xf32, #tpu.memory_space<vmem>>, vector<1x32xf32>
    %c0_2 = arith.constant 0 : index
    %c0_3 = arith.constant 0 : index
    %c0_4 = arith.constant 0 : index
    %4 = vector.load %arg2[%c0_2, %c0_3, %c0_4] : memref<1x49x32xbf16, #tpu.memory_space<vmem>>, vector<1x49x32xbf16>
    %5 = vector.shape_cast %4 : vector<1x49x32xbf16> to vector<49x32xbf16>
    %6 = arith.extf %5 : vector<49x32xbf16> to vector<49x32xf32>
    %cst = arith.constant dense<0.000000e+00> : vector<32xf32>
    %7 = vector.multi_reduction <add>, %6, %cst [0] : vector<49x32xf32> to vector<32xf32>
    %8 = vector.shape_cast %7 : vector<32xf32> to vector<1x32xf32>
    %9 = arith.addf %3, %8 : vector<1x32xf32>
    %c0_5 = arith.constant 0 : index
    %c0_6 = arith.constant 0 : index
    %10 = vector.load %arg8[%c0_5, %c0_6] : memref<1x32xf32, #tpu.memory_space<vmem>>, vector<1x32xf32>
    tpu.vector_store %arg8[%c0_5, %c0_6], %9 {strides = array<i32>} : memref<1x32xf32, #tpu.memory_space<vmem>>, vector<1x32xf32>,
    %c0_i32_7 = arith.constant 0 : i32
    %11 = arith.cmpi eq, %arg1, %c0_i32_7 : i32
    %12 = arith.extui %11 : i1 to i32
    %c0_i32_8 = arith.constant 0 : i32
    %13 = arith.cmpi ne, %12, %c0_i32_8 : i32
    scf.if %13 {
      %c0_9 = arith.constant 0 : index
      %c0_10 = arith.constant 0 : index
      %14 = vector.load %arg8[%c0_9, %c0_10] : memref<1x32xf32, #tpu.memory_space<vmem>>, vector<1x32xf32>
      %cst_11 = arith.constant 0.0204081628 : f32
      %15 = vector.broadcast %cst_11 : f32 to vector<1x32xf32>
      %16 = arith.mulf %14, %15 : vector<1x32xf32>
      %17 = arith.truncf %16 : vector<1x32xf32> to vector<1x32xbf16>
      %c0_12 = arith.constant 0 : index
      %c0_13 = arith.constant 0 : index
      %18 = vector.load %arg3[%c0_12, %c0_13] : memref<32x8xbf16, #tpu.memory_space<vmem>>, vector<32x8xbf16>
      %cst_14 = arith.constant dense<0.000000e+00> : vector<1x8xf32>
      %19 = tpu.matmul %17, %18, %cst_14 {dimension_numbers = #tpu.dot_dimension_numbers<[1], [0], [0], [1], [0, 0, 1, 1], [], []>} : vector<1x32xbf16>, vector<32x8xbf16>, vector<1x8xf32> -> vector<1x8xf32>
      %c0_15 = arith.constant 0 : index
      %c0_16 = arith.constant 0 : index
      %20 = vector.load %arg4[%c0_15, %c0_16] : memref<1x8xf32, #tpu.memory_space<vmem>>, vector<1x8xf32>
      %21 = arith.addf %19, %20 : vector<1x8xf32>
      %cst_17 = arith.constant 0.000000e+00 : f32
      %22 = vector.broadcast %cst_17 : f32 to vector<1x8xf32>
      %23 = arith.maximumf %21, %22 : vector<1x8xf32>
      %24 = arith.truncf %23 : vector<1x8xf32> to vector<1x8xbf16>
      %c0_18 = arith.constant 0 : index
      %c0_19 = arith.constant 0 : index
      %25 = vector.load %arg5[%c0_18, %c0_19] : memref<8x32xbf16, #tpu.memory_space<vmem>>, vector<8x32xbf16>
      %cst_20 = arith.constant dense<0.000000e+00> : vector<1x32xf32>
      %26 = tpu.matmul %24, %25, %cst_20 {dimension_numbers = #tpu.dot_dimension_numbers<[1], [0], [0], [1], [0, 0, 1, 1], [], []>} : vector<1x8xbf16>, vector<8x32xbf16>, vector<1x32xf32> -> vector<1x32xf32>
      %c0_21 = arith.constant 0 : index
      %c0_22 = arith.constant 0 : index
      %27 = vector.load %arg6[%c0_21, %c0_22] : memref<1x32xf32, #tpu.memory_space<vmem>>, vector<1x32xf32>
      %28 = arith.addf %26, %27 : vector<1x32xf32>
      %29 = arith.negf %28 : vector<1x32xf32>
      %30 = math.exp %29 : vector<1x32xf32>
      %cst_23 = arith.constant 1.000000e+00 : f32
      %31 = vector.broadcast %cst_23 : f32 to vector<1x32xf32>
      %32 = arith.addf %31, %30 : vector<1x32xf32>
      %33 = arith.divf %31, %32 : vector<1x32xf32>
      %c0_24 = arith.constant 0 : index
      %c0_25 = arith.constant 0 : index
      %c0_26 = arith.constant 0 : index
      %34 = vector.load %arg7[%c0_24, %c0_25, %c0_26] : memref<1x1x32xf32, #tpu.memory_space<vmem>>, vector<1x1x32xf32>
      %35 = vector.shape_cast %34 : vector<1x1x32xf32> to vector<1x32xf32>
      %36 = vector.shape_cast %33 : vector<1x32xf32> to vector<1x1x32xf32>
      tpu.vector_store %arg7[%c0_24, %c0_25, %c0_26], %36 {strides = array<i32>} : memref<1x1x32xf32, #tpu.memory_space<vmem>>, vector<1x1x32xf32>,
    } else {
    }
    return
  }
  func.func @transform_0(%arg0: i32, %arg1: i32) -> (i32, i32, i32) {
    %c0_i32 = arith.constant 0 : i32
    %c0_i32_0 = arith.constant 0 : i32
    return %arg0, %arg1, %c0_i32 : i32, i32, i32
  }
  func.func @transform_1(%arg0: i32, %arg1: i32) -> (i32, i32) {
    %c0_i32 = arith.constant 0 : i32
    %c0_i32_0 = arith.constant 0 : i32
    %c0_i32_1 = arith.constant 0 : i32
    return %c0_i32, %c0_i32_0 : i32, i32
  }
  func.func @transform_2(%arg0: i32, %arg1: i32) -> (i32, i32) {
    %c0_i32 = arith.constant 0 : i32
    %c0_i32_0 = arith.constant 0 : i32
    %c0_i32_1 = arith.constant 0 : i32
    return %c0_i32, %c0_i32_0 : i32, i32
  }
  func.func @transform_3(%arg0: i32, %arg1: i32) -> (i32, i32) {
    %c0_i32 = arith.constant 0 : i32
    %c0_i32_0 = arith.constant 0 : i32
    %c0_i32_1 = arith.constant 0 : i32
    return %c0_i32, %c0_i32_0 : i32, i32
  }
  func.func @transform_4(%arg0: i32, %arg1: i32) -> (i32, i32) {
    %c0_i32 = arith.constant 0 : i32
    %c0_i32_0 = arith.constant 0 : i32
    %c0_i32_1 = arith.constant 0 : i32
    return %c0_i32, %c0_i32_0 : i32, i32
  }
  func.func @transform_5(%arg0: i32, %arg1: i32) -> (i32, i32, i32) {
    %c0_i32 = arith.constant 0 : i32
    %c0_i32_0 = arith.constant 0 : i32
    %c0_i32_1 = arith.constant 0 : i32
    return %arg0, %c0_i32, %c0_i32_0 : i32, i32, i32
  }
}

module attributes {stable_mosaic.version = 11 : i64} {
  func.func @_mm_kernel(%arg0: i32, %arg1: i32, %arg2: i32, %arg3: i32, %arg4: memref<1x104x128xbf16, #tpu.memory_space<vmem>>, %arg5: memref<1x128x128xbf16, #tpu.memory_space<vmem>>, %arg6: memref<1x128xf32, #tpu.memory_space<vmem>>, %arg7: memref<104x128xbf16, #tpu.memory_space<vmem>>, %arg8: memref<104x128xf32, #tpu.memory_space<vmem>>) attributes {dimension_semantics = [#tpu.dimension_semantics<parallel>, #tpu.dimension_semantics<parallel>, #tpu.dimension_semantics<parallel>, #tpu.dimension_semantics<arbitrary>], iteration_bounds = array<i64: 1, 1, 1, 1>, scalar_prefetch = 0 : i64, scratch_operands = 1 : i64, tpu.core_type = #tpu.core_type<tc>, window_params = [{transform_indices = @transform_0, window_bounds = array<i64: 1, 104, 128>}, {transform_indices = @transform_1, window_bounds = array<i64: 1, 128, 128>}, {transform_indices = @transform_2, window_bounds = array<i64: 1, 128>}, {transform_indices = @transform_3, window_bounds = array<i64: 104, 128>}]} {
    %c0_i32 = arith.constant 0 : i32
    %0 = arith.cmpi eq, %arg3, %c0_i32 : i32
    %1 = arith.extui %0 : i1 to i32
    %c0_i32_0 = arith.constant 0 : i32
    %2 = arith.cmpi ne, %1, %c0_i32_0 : i32
    scf.if %2 {
      %cst_12 = arith.constant 0.000000e+00 : f32
      %14 = vector.broadcast %cst_12 : f32 to vector<104x128xf32>
      %c0_13 = arith.constant 0 : index
      %c0_14 = arith.constant 0 : index
      %15 = vector.load %arg8[%c0_13, %c0_14] : memref<104x128xf32, #tpu.memory_space<vmem>>, vector<104x128xf32>
      tpu.vector_store %arg8[%c0_13, %c0_14], %14 {strides = array<i32>} : memref<104x128xf32, #tpu.memory_space<vmem>>, vector<104x128xf32>,
    } else {
    }
    %c0 = arith.constant 0 : index
    %c0_1 = arith.constant 0 : index
    %3 = vector.load %arg8[%c0, %c0_1] : memref<104x128xf32, #tpu.memory_space<vmem>>, vector<104x128xf32>
    %c0_2 = arith.constant 0 : index
    %c0_3 = arith.constant 0 : index
    %c0_4 = arith.constant 0 : index
    %4 = vector.load %arg4[%c0_2, %c0_3, %c0_4] : memref<1x104x128xbf16, #tpu.memory_space<vmem>>, vector<1x104x128xbf16>
    %5 = vector.shape_cast %4 : vector<1x104x128xbf16> to vector<104x128xbf16>
    %c0_5 = arith.constant 0 : index
    %c0_6 = arith.constant 0 : index
    %c0_7 = arith.constant 0 : index
    %6 = vector.load %arg5[%c0_5, %c0_6, %c0_7] : memref<1x128x128xbf16, #tpu.memory_space<vmem>>, vector<1x128x128xbf16>
    %7 = vector.shape_cast %6 : vector<1x128x128xbf16> to vector<128x128xbf16>
    %cst = arith.constant dense<0.000000e+00> : vector<104x128xf32>
    %8 = tpu.matmul %5, %7, %cst {dimension_numbers = #tpu.dot_dimension_numbers<[1], [0], [0], [1], [0, 0, 1, 1], [], []>} : vector<104x128xbf16>, vector<128x128xbf16>, vector<104x128xf32> -> vector<104x128xf32>
    %9 = arith.addf %3, %8 : vector<104x128xf32>
    %c0_8 = arith.constant 0 : index
    %c0_9 = arith.constant 0 : index
    %10 = vector.load %arg8[%c0_8, %c0_9] : memref<104x128xf32, #tpu.memory_space<vmem>>, vector<104x128xf32>
    tpu.vector_store %arg8[%c0_8, %c0_9], %9 {strides = array<i32>} : memref<104x128xf32, #tpu.memory_space<vmem>>, vector<104x128xf32>,
    %c0_i32_10 = arith.constant 0 : i32
    %11 = arith.cmpi eq, %arg3, %c0_i32_10 : i32
    %12 = arith.extui %11 : i1 to i32
    %c0_i32_11 = arith.constant 0 : i32
    %13 = arith.cmpi ne, %12, %c0_i32_11 : i32
    scf.if %13 {
      %c0_12 = arith.constant 0 : index
      %c0_13 = arith.constant 0 : index
      %14 = vector.load %arg8[%c0_12, %c0_13] : memref<104x128xf32, #tpu.memory_space<vmem>>, vector<104x128xf32>
      %c0_14 = arith.constant 0 : index
      %c0_15 = arith.constant 0 : index
      %15 = vector.load %arg6[%c0_14, %c0_15] : memref<1x128xf32, #tpu.memory_space<vmem>>, vector<1x128xf32>
      %16 = vector.broadcast %15 : vector<1x128xf32> to vector<104x128xf32>
      %17 = arith.addf %14, %16 : vector<104x128xf32>
      %18 = arith.truncf %17 : vector<104x128xf32> to vector<104x128xbf16>
      %c0_16 = arith.constant 0 : index
      %c0_17 = arith.constant 0 : index
      %19 = vector.load %arg7[%c0_16, %c0_17] : memref<104x128xbf16, #tpu.memory_space<vmem>>, vector<104x128xbf16>
      tpu.vector_store %arg7[%c0_16, %c0_17], %18 {strides = array<i32>} : memref<104x128xbf16, #tpu.memory_space<vmem>>, vector<104x128xbf16>,
    } else {
    }
    return
  }
  func.func @transform_0(%arg0: i32, %arg1: i32, %arg2: i32, %arg3: i32) -> (i32, i32, i32) {
    %c0_i32 = arith.constant 0 : i32
    return %arg0, %arg1, %arg3 : i32, i32, i32
  }
  func.func @transform_1(%arg0: i32, %arg1: i32, %arg2: i32, %arg3: i32) -> (i32, i32, i32) {
    %c0_i32 = arith.constant 0 : i32
    return %arg0, %arg3, %arg2 : i32, i32, i32
  }
  func.func @transform_2(%arg0: i32, %arg1: i32, %arg2: i32, %arg3: i32) -> (i32, i32) {
    %c1_i32 = arith.constant 1 : i32
    %0 = arith.muli %arg0, %c1_i32 : i32
    %1 = arith.addi %0, %arg2 : i32
    %c0_i32 = arith.constant 0 : i32
    %c0_i32_0 = arith.constant 0 : i32
    return %c0_i32, %1 : i32, i32
  }
  func.func @transform_3(%arg0: i32, %arg1: i32, %arg2: i32, %arg3: i32) -> (i32, i32) {
    %c1_i32 = arith.constant 1 : i32
    %0 = arith.muli %arg0, %c1_i32 : i32
    %1 = arith.addi %0, %arg2 : i32
    %c0_i32 = arith.constant 0 : i32
    return %arg1, %1 : i32, i32
  }
}

module attributes {stable_mosaic.version = 11 : i64} {
  func.func @_scale_res_kernel(%arg0: i32, %arg1: i32, %arg2: memref<1x49x32xbf16, #tpu.memory_space<vmem>>, %arg3: memref<1x1x32xf32, #tpu.memory_space<vmem>>, %arg4: memref<1x49x32xbf16, #tpu.memory_space<vmem>>, %arg5: memref<1x49x32xbf16, #tpu.memory_space<vmem>>) attributes {dimension_semantics = [#tpu.dimension_semantics<parallel>, #tpu.dimension_semantics<parallel>], iteration_bounds = array<i64: 2, 1>, scalar_prefetch = 0 : i64, scratch_operands = 0 : i64, tpu.core_type = #tpu.core_type<tc>, window_params = [{transform_indices = @transform_0, window_bounds = array<i64: 1, 49, 32>}, {transform_indices = @transform_1, window_bounds = array<i64: 1, 1, 32>}, {transform_indices = @transform_2, window_bounds = array<i64: 1, 49, 32>}, {transform_indices = @transform_3, window_bounds = array<i64: 1, 49, 32>}]} {
    %c0 = arith.constant 0 : index
    %c0_0 = arith.constant 0 : index
    %c0_1 = arith.constant 0 : index
    %0 = vector.load %arg2[%c0, %c0_0, %c0_1] : memref<1x49x32xbf16, #tpu.memory_space<vmem>>, vector<1x49x32xbf16>
    %1 = vector.shape_cast %0 : vector<1x49x32xbf16> to vector<49x32xbf16>
    %2 = arith.extf %1 : vector<49x32xbf16> to vector<49x32xf32>
    %c0_2 = arith.constant 0 : index
    %c0_3 = arith.constant 0 : index
    %c0_4 = arith.constant 0 : index
    %3 = vector.load %arg4[%c0_2, %c0_3, %c0_4] : memref<1x49x32xbf16, #tpu.memory_space<vmem>>, vector<1x49x32xbf16>
    %4 = vector.shape_cast %3 : vector<1x49x32xbf16> to vector<49x32xbf16>
    %5 = arith.extf %4 : vector<49x32xbf16> to vector<49x32xf32>
    %c0_5 = arith.constant 0 : index
    %c0_6 = arith.constant 0 : index
    %c0_7 = arith.constant 0 : index
    %6 = vector.load %arg3[%c0_5, %c0_6, %c0_7] : memref<1x1x32xf32, #tpu.memory_space<vmem>>, vector<1x1x32xf32>
    %7 = vector.shape_cast %6 : vector<1x1x32xf32> to vector<1x32xf32>
    %8 = vector.broadcast %7 : vector<1x32xf32> to vector<49x32xf32>
    %9 = arith.mulf %2, %8 : vector<49x32xf32>
    %10 = arith.addf %9, %5 : vector<49x32xf32>
    %cst = arith.constant 0.000000e+00 : f32
    %11 = vector.broadcast %cst : f32 to vector<49x32xf32>
    %12 = arith.maximumf %10, %11 : vector<49x32xf32>
    %13 = arith.truncf %12 : vector<49x32xf32> to vector<49x32xbf16>
    %c0_8 = arith.constant 0 : index
    %c0_9 = arith.constant 0 : index
    %c0_10 = arith.constant 0 : index
    %14 = vector.load %arg5[%c0_8, %c0_9, %c0_10] : memref<1x49x32xbf16, #tpu.memory_space<vmem>>, vector<1x49x32xbf16>
    %15 = vector.shape_cast %14 : vector<1x49x32xbf16> to vector<49x32xbf16>
    %16 = vector.shape_cast %13 : vector<49x32xbf16> to vector<1x49x32xbf16>
    tpu.vector_store %arg5[%c0_8, %c0_9, %c0_10], %16 {strides = array<i32>} : memref<1x49x32xbf16, #tpu.memory_space<vmem>>, vector<1x49x32xbf16>,
    return
  }
  func.func @transform_0(%arg0: i32, %arg1: i32) -> (i32, i32, i32) {
    %c0_i32 = arith.constant 0 : i32
    %c0_i32_0 = arith.constant 0 : i32
    return %arg0, %arg1, %c0_i32 : i32, i32, i32
  }
  func.func @transform_1(%arg0: i32, %arg1: i32) -> (i32, i32, i32) {
    %c0_i32 = arith.constant 0 : i32
    %c0_i32_0 = arith.constant 0 : i32
    %c0_i32_1 = arith.constant 0 : i32
    return %arg0, %c0_i32, %c0_i32_0 : i32, i32, i32
  }
  func.func @transform_2(%arg0: i32, %arg1: i32) -> (i32, i32, i32) {
    %c0_i32 = arith.constant 0 : i32
    %c0_i32_0 = arith.constant 0 : i32
    return %arg0, %arg1, %c0_i32 : i32, i32, i32
  }
  func.func @transform_3(%arg0: i32, %arg1: i32) -> (i32, i32, i32) {
    %c0_i32 = arith.constant 0 : i32
    %c0_i32_0 = arith.constant 0 : i32
    return %arg0, %arg1, %c0_i32 : i32, i32, i32
  }
}

module attributes {stable_mosaic.version = 11 : i64} {
  func.func @_gap_kernel(%arg0: i32, %arg1: i32, %arg2: memref<1x49x32xbf16, #tpu.memory_space<vmem>>, %arg3: memref<1x1x32xf32, #tpu.memory_space<vmem>>, %arg4: memref<1x32xf32, #tpu.memory_space<vmem>>) attributes {dimension_semantics = [#tpu.dimension_semantics<parallel>, #tpu.dimension_semantics<arbitrary>], iteration_bounds = array<i64: 2, 1>, scalar_prefetch = 0 : i64, scratch_operands = 1 : i64, tpu.core_type = #tpu.core_type<tc>, window_params = [{transform_indices = @transform_0, window_bounds = array<i64: 1, 49, 32>}, {transform_indices = @transform_1, window_bounds = array<i64: 1, 1, 32>}]} {
    %c0_i32 = arith.constant 0 : i32
    %0 = arith.cmpi eq, %arg1, %c0_i32 : i32
    %1 = arith.extui %0 : i1 to i32
    %c0_i32_0 = arith.constant 0 : i32
    %2 = arith.cmpi ne, %1, %c0_i32_0 : i32
    scf.if %2 {
      %cst_9 = arith.constant 0.000000e+00 : f32
      %14 = vector.broadcast %cst_9 : f32 to vector<1x32xf32>
      %c0_10 = arith.constant 0 : index
      %c0_11 = arith.constant 0 : index
      %15 = vector.load %arg4[%c0_10, %c0_11] : memref<1x32xf32, #tpu.memory_space<vmem>>, vector<1x32xf32>
      tpu.vector_store %arg4[%c0_10, %c0_11], %14 {strides = array<i32>} : memref<1x32xf32, #tpu.memory_space<vmem>>, vector<1x32xf32>,
    } else {
    }
    %c0 = arith.constant 0 : index
    %c0_1 = arith.constant 0 : index
    %3 = vector.load %arg4[%c0, %c0_1] : memref<1x32xf32, #tpu.memory_space<vmem>>, vector<1x32xf32>
    %c0_2 = arith.constant 0 : index
    %c0_3 = arith.constant 0 : index
    %c0_4 = arith.constant 0 : index
    %4 = vector.load %arg2[%c0_2, %c0_3, %c0_4] : memref<1x49x32xbf16, #tpu.memory_space<vmem>>, vector<1x49x32xbf16>
    %5 = vector.shape_cast %4 : vector<1x49x32xbf16> to vector<49x32xbf16>
    %6 = arith.extf %5 : vector<49x32xbf16> to vector<49x32xf32>
    %cst = arith.constant dense<0.000000e+00> : vector<32xf32>
    %7 = vector.multi_reduction <add>, %6, %cst [0] : vector<49x32xf32> to vector<32xf32>
    %8 = vector.shape_cast %7 : vector<32xf32> to vector<1x32xf32>
    %9 = arith.addf %3, %8 : vector<1x32xf32>
    %c0_5 = arith.constant 0 : index
    %c0_6 = arith.constant 0 : index
    %10 = vector.load %arg4[%c0_5, %c0_6] : memref<1x32xf32, #tpu.memory_space<vmem>>, vector<1x32xf32>
    tpu.vector_store %arg4[%c0_5, %c0_6], %9 {strides = array<i32>} : memref<1x32xf32, #tpu.memory_space<vmem>>, vector<1x32xf32>,
    %c0_i32_7 = arith.constant 0 : i32
    %11 = arith.cmpi eq, %arg1, %c0_i32_7 : i32
    %12 = arith.extui %11 : i1 to i32
    %c0_i32_8 = arith.constant 0 : i32
    %13 = arith.cmpi ne, %12, %c0_i32_8 : i32
    scf.if %13 {
      %c0_9 = arith.constant 0 : index
      %c0_10 = arith.constant 0 : index
      %14 = vector.load %arg4[%c0_9, %c0_10] : memref<1x32xf32, #tpu.memory_space<vmem>>, vector<1x32xf32>
      %cst_11 = arith.constant 0.0204081628 : f32
      %15 = vector.broadcast %cst_11 : f32 to vector<1x32xf32>
      %16 = arith.mulf %14, %15 : vector<1x32xf32>
      %c0_12 = arith.constant 0 : index
      %c0_13 = arith.constant 0 : index
      %c0_14 = arith.constant 0 : index
      %17 = vector.load %arg3[%c0_12, %c0_13, %c0_14] : memref<1x1x32xf32, #tpu.memory_space<vmem>>, vector<1x1x32xf32>
      %18 = vector.shape_cast %17 : vector<1x1x32xf32> to vector<1x32xf32>
      %19 = vector.shape_cast %16 : vector<1x32xf32> to vector<1x1x32xf32>
      tpu.vector_store %arg3[%c0_12, %c0_13, %c0_14], %19 {strides = array<i32>} : memref<1x1x32xf32, #tpu.memory_space<vmem>>, vector<1x1x32xf32>,
    } else {
    }
    return
  }
  func.func @transform_0(%arg0: i32, %arg1: i32) -> (i32, i32, i32) {
    %c0_i32 = arith.constant 0 : i32
    %c0_i32_0 = arith.constant 0 : i32
    return %arg0, %arg1, %c0_i32 : i32, i32, i32
  }
  func.func @transform_1(%arg0: i32, %arg1: i32) -> (i32, i32, i32) {
    %c0_i32 = arith.constant 0 : i32
    %c0_i32_0 = arith.constant 0 : i32
    %c0_i32_1 = arith.constant 0 : i32
    return %arg0, %c0_i32, %c0_i32_0 : i32, i32, i32
  }
}

module attributes {stable_mosaic.version = 11 : i64} {
  func.func @_mm_kernel(%arg0: i32, %arg1: i32, %arg2: i32, %arg3: i32, %arg4: memref<1x8x128xbf16, #tpu.memory_space<vmem>>, %arg5: memref<1x128x128xbf16, #tpu.memory_space<vmem>>, %arg6: memref<1x128xf32, #tpu.memory_space<vmem>>, %arg7: memref<8x128xf32, #tpu.memory_space<vmem>>, %arg8: memref<8x128xf32, #tpu.memory_space<vmem>>) attributes {dimension_semantics = [#tpu.dimension_semantics<parallel>, #tpu.dimension_semantics<parallel>, #tpu.dimension_semantics<parallel>, #tpu.dimension_semantics<arbitrary>], iteration_bounds = array<i64: 1, 1, 1, 1>, scalar_prefetch = 0 : i64, scratch_operands = 1 : i64, tpu.core_type = #tpu.core_type<tc>, window_params = [{transform_indices = @transform_0, window_bounds = array<i64: 1, 8, 128>}, {transform_indices = @transform_1, window_bounds = array<i64: 1, 128, 128>}, {transform_indices = @transform_2, window_bounds = array<i64: 1, 128>}, {transform_indices = @transform_3, window_bounds = array<i64: 8, 128>}]} {
    %c0_i32 = arith.constant 0 : i32
    %0 = arith.cmpi eq, %arg3, %c0_i32 : i32
    %1 = arith.extui %0 : i1 to i32
    %c0_i32_0 = arith.constant 0 : i32
    %2 = arith.cmpi ne, %1, %c0_i32_0 : i32
    scf.if %2 {
      %cst_12 = arith.constant 0.000000e+00 : f32
      %14 = vector.broadcast %cst_12 : f32 to vector<8x128xf32>
      %c0_13 = arith.constant 0 : index
      %c0_14 = arith.constant 0 : index
      %15 = vector.load %arg8[%c0_13, %c0_14] : memref<8x128xf32, #tpu.memory_space<vmem>>, vector<8x128xf32>
      tpu.vector_store %arg8[%c0_13, %c0_14], %14 {strides = array<i32>} : memref<8x128xf32, #tpu.memory_space<vmem>>, vector<8x128xf32>,
    } else {
    }
    %c0 = arith.constant 0 : index
    %c0_1 = arith.constant 0 : index
    %3 = vector.load %arg8[%c0, %c0_1] : memref<8x128xf32, #tpu.memory_space<vmem>>, vector<8x128xf32>
    %c0_2 = arith.constant 0 : index
    %c0_3 = arith.constant 0 : index
    %c0_4 = arith.constant 0 : index
    %4 = vector.load %arg4[%c0_2, %c0_3, %c0_4] : memref<1x8x128xbf16, #tpu.memory_space<vmem>>, vector<1x8x128xbf16>
    %5 = vector.shape_cast %4 : vector<1x8x128xbf16> to vector<8x128xbf16>
    %c0_5 = arith.constant 0 : index
    %c0_6 = arith.constant 0 : index
    %c0_7 = arith.constant 0 : index
    %6 = vector.load %arg5[%c0_5, %c0_6, %c0_7] : memref<1x128x128xbf16, #tpu.memory_space<vmem>>, vector<1x128x128xbf16>
    %7 = vector.shape_cast %6 : vector<1x128x128xbf16> to vector<128x128xbf16>
    %cst = arith.constant dense<0.000000e+00> : vector<8x128xf32>
    %8 = tpu.matmul %5, %7, %cst {dimension_numbers = #tpu.dot_dimension_numbers<[1], [0], [0], [1], [0, 0, 1, 1], [], []>} : vector<8x128xbf16>, vector<128x128xbf16>, vector<8x128xf32> -> vector<8x128xf32>
    %9 = arith.addf %3, %8 : vector<8x128xf32>
    %c0_8 = arith.constant 0 : index
    %c0_9 = arith.constant 0 : index
    %10 = vector.load %arg8[%c0_8, %c0_9] : memref<8x128xf32, #tpu.memory_space<vmem>>, vector<8x128xf32>
    tpu.vector_store %arg8[%c0_8, %c0_9], %9 {strides = array<i32>} : memref<8x128xf32, #tpu.memory_space<vmem>>, vector<8x128xf32>,
    %c0_i32_10 = arith.constant 0 : i32
    %11 = arith.cmpi eq, %arg3, %c0_i32_10 : i32
    %12 = arith.extui %11 : i1 to i32
    %c0_i32_11 = arith.constant 0 : i32
    %13 = arith.cmpi ne, %12, %c0_i32_11 : i32
    scf.if %13 {
      %c0_12 = arith.constant 0 : index
      %c0_13 = arith.constant 0 : index
      %14 = vector.load %arg8[%c0_12, %c0_13] : memref<8x128xf32, #tpu.memory_space<vmem>>, vector<8x128xf32>
      %c0_14 = arith.constant 0 : index
      %c0_15 = arith.constant 0 : index
      %15 = vector.load %arg6[%c0_14, %c0_15] : memref<1x128xf32, #tpu.memory_space<vmem>>, vector<1x128xf32>
      %16 = vector.broadcast %15 : vector<1x128xf32> to vector<8x128xf32>
      %17 = arith.addf %14, %16 : vector<8x128xf32>
      %c0_16 = arith.constant 0 : index
      %c0_17 = arith.constant 0 : index
      %18 = vector.load %arg7[%c0_16, %c0_17] : memref<8x128xf32, #tpu.memory_space<vmem>>, vector<8x128xf32>
      tpu.vector_store %arg7[%c0_16, %c0_17], %17 {strides = array<i32>} : memref<8x128xf32, #tpu.memory_space<vmem>>, vector<8x128xf32>,
    } else {
    }
    return
  }
  func.func @transform_0(%arg0: i32, %arg1: i32, %arg2: i32, %arg3: i32) -> (i32, i32, i32) {
    %c0_i32 = arith.constant 0 : i32
    return %arg0, %arg1, %arg3 : i32, i32, i32
  }
  func.func @transform_1(%arg0: i32, %arg1: i32, %arg2: i32, %arg3: i32) -> (i32, i32, i32) {
    %c0_i32 = arith.constant 0 : i32
    return %arg0, %arg3, %arg2 : i32, i32, i32
  }
  func.func @transform_2(%arg0: i32, %arg1: i32, %arg2: i32, %arg3: i32) -> (i32, i32) {
    %c1_i32 = arith.constant 1 : i32
    %0 = arith.muli %arg0, %c1_i32 : i32
    %1 = arith.addi %0, %arg2 : i32
    %c0_i32 = arith.constant 0 : i32
    %c0_i32_0 = arith.constant 0 : i32
    return %c0_i32, %1 : i32, i32
  }
  func.func @transform_3(%arg0: i32, %arg1: i32, %arg2: i32, %arg3: i32) -> (i32, i32) {
    %c1_i32 = arith.constant 1 : i32
    %0 = arith.muli %arg0, %c1_i32 : i32
    %1 = arith.addi %0, %arg2 : i32
    %c0_i32 = arith.constant 0 : i32
    return %arg1, %1 : i32, i32
  }
}

</mosaic_0001>

<bundles_post_ra>
// kernel: _lambda_.16
= control target key start
LH: loop header
LB: loop body
LE: loop exit
PB: predicated region body
PF: predicated region fallthrough
CT: control target
= control target key end

     0   :  { %s1688_s12 = smov 0   ;;  %s1690_s13 = smov 0   ;;  %s1863_s0 = inlined_call_operand.vmem [shape: bf16[1,1568,128], index: 0, kind: input, shape index: {}]   ;;  %s1864_s1 = inlined_call_operand.vmem [shape: bf16[1,128,128], index: 1, kind: input, shape index: {}]   ;;  %s1865_s2 = inlined_call_operand.vmem [shape: f32[1,128], index: 2, kind: input, shape index: {}]   ;;  %s1866_s3 = inlined_call_operand.vmem [shape: bf16[1568,128], index: 3, kind: output, shape index: {}]  }
   0x1   :  { %s1692_s14 = smov 0  }
   0x2 LB: > { %s35_s15 = sadd.s32 1, %s1662_s13  ;;  %p1287_p0 = scmp.ge.s32.totalorder %s1666_s14, 1  ;;  %s1666_s14 = sphi %s1692_s14, %s13_s14   ;;  %s1662_s13 = sphi %s1690_s13, %s1868_s13   ;;  %s1658_s12 = sphi %s1688_s12, %s1867_s12  }
   0x3   : > { %p37_p1 = scmp.ge.s32.totalorder %s35_s15, 4  ;;  %p213_p2 = scmp.lt.s32.totalorder %s1666_s14, 5 }
   0x5   : > { %s1870_s15 = smov (%p37_p1, %s35_s15), 0  ;;  %p214_p3 = pnand %p1287_p0, %p213_p2 }
   0x6   : > { %s264_s24 = smul.u32 (!%p214_p3), 49, %s1658_s12 }
   0x7   : > { %217 = sbr.rel (%p214_p3) target bundleno = 287 (0x11f), region = 32 }
   0x8   : > { %p267_p4 = scmp.lt.s32.totalorder (!%p214_p3), %s264_s24, 195 }
   0xc   : > { %v1451_v0 = vld [vmem:[%s1864_s1 + $0x38] sm:$0xff]  ;;  %v1450_v1 = vld [vmem:[%s1864_s1 + $0x30] sm:$0xff]  ;;  %v1449_v2 = vld [vmem:[%s1864_s1 + $0x28] sm:$0xff]  ;;  %s1872_s24 = smov (!%p267_p4, %s264_s24), 195 }
   0xd   : > { %1596 = vmatpush.bf16.msra.mxu2 %v1451_v0  ;;  %669 = vmatpush.bf16.msra.mxu0 %v1451_v0  ;;  %v1448_v3 = vld [vmem:[%s1864_s1 + $0x20] sm:$0xff]  ;;  %v1447_v4 = vld [vmem:[%s1864_s1 + $0x18] sm:$0xff]  ;;  %v1446_v5 = vld [vmem:[%s1864_s1 + $0x10] sm:$0xff]  ;;  %s1288_s4 = sshll.u32 %s1872_s24, 2 }
   0xe   : > { %1595 = vmatpush.bf16.msra.mxu1 %v1451_v0  ;;  %1597 = vmatpush.bf16.msra.mxu3 %v1451_v0  ;;  %v1445_v6 = vld [vmem:[%s1864_s1 + $0x8] sm:$0xff]  ;;  %v1444_v7 = vld [vmem:[%s1864_s1] sm:$0xff]  ;;  %s1741_s9 = scalar_lea.vmem %s1863_s0, %s1288_s4  ;;  %s1784_s17 = scalar_lea.vmem %s1866_s3, %s1288_s4 }
   0xf   : > { %v1432_v8 = vld [vmem:[%s1741_s9 + $0x60] sm:$0xff]  ;;  %v1426_v10 = vld [vmem:[%s1741_s9 + $0x30] sm:$0xff]  ;;  %v1439_v11 = vld [vmem:[%s1741_s9 + $0x98] sm:$0xff] }
  0x10   : > { %v1420_v9 = vld [vmem:[%s1741_s9] sm:$0xff]  ;;  %v1433_v12 = vld [vmem:[%s1741_s9 + $0x68] sm:$0xff]  ;;  %v1427_v14 = vld [vmem:[%s1741_s9 + $0x38] sm:$0xff] }
  0x11   : > { %1599 = vmatpush.bf16.msra.mxu2 %v1450_v1  ;;  %670 = vmatpush.bf16.msra.mxu0 %v1450_v1  ;;  %v1421_v13 = vld [vmem:[%s1741_s9 + $0x8] sm:$0xff]  ;;  %v1440_v15 = vld [vmem:[%s1741_s9 + $0xa0] sm:$0xff]  ;;  %v1434_v16 = vld [vmem:[%s1741_s9 + $0x70] sm:$0xff] }
  0x12   : > { %1598 = vmatpush.bf16.msra.mxu1 %v1450_v1  ;;  %1600 = vmatpush.bf16.msra.mxu3 %v1450_v1  ;;  %v1422_v17 = vld [vmem:[%s1741_s9 + $0x10] sm:$0xff]  ;;  %v1428_v18 = vld [vmem:[%s1741_s9 + $0x40] sm:$0xff]  ;;  %v1441_v19 = vld [vmem:[%s1741_s9 + $0xa8] sm:$0xff] }
  0x13   : > { %v1435_v20 = vld [vmem:[%s1741_s9 + $0x78] sm:$0xff]  ;;  %v1429_v22 = vld [vmem:[%s1741_s9 + $0x48] sm:$0xff]  ;;  %v1442_v23 = vld [vmem:[%s1741_s9 + $0xb0] sm:$0xff] }
  0x14   : > { %v1423_v21 = vld [vmem:[%s1741_s9 + $0x18] sm:$0xff]  ;;  %v1436_v24 = vld [vmem:[%s1741_s9 + $0x80] sm:$0xff]  ;;  %v1430_v26 = vld [vmem:[%s1741_s9 + $0x50] sm:$0xff] }
  0x15   : > { %1602 = vmatpush.bf16.msra.mxu2 %v1449_v2  ;;  %671 = vmatpush.bf16.msra.mxu0 %v1449_v2  ;;  %v1424_v25 = vld [vmem:[%s1741_s9 + $0x20] sm:$0xff]  ;;  %v1443_v27 = vld [vmem:[%s1741_s9 + $0xb8] sm:$0xff]  ;;  %v1437_v30 = vld [vmem:[%s1741_s9 + $0x88] sm:$0xff] }
  0x16   : > { %1601 = vmatpush.bf16.msra.mxu1 %v1449_v2  ;;  %1603 = vmatpush.bf16.msra.mxu3 %v1449_v2  ;;  %v456_v28 = vld [vmem:[%s1741_s9 + $0xc0] sm:$0xf]  ;;  %v1425_v31 = vld [vmem:[%s1741_s9 + $0x28] sm:$0xff]  ;;  %v1431_v32 = vld [vmem:[%s1741_s9 + $0x58] sm:$0xff] }
  0x17   : > { %v570_v29 = vunpack.c.l.b16 %v456_v28  ;;  %v1438_v34 = vld [vmem:[%s1741_s9 + $0x90] sm:$0xff]  ;;  %v1771_v37 = vld [vmem:[%s1865_s2] ss:$0 sm:$0xff] }
  0x19   : > { %1605 = vmatpush.bf16.msra.mxu2 %v1448_v3  ;;  %672 = vmatpush.bf16.msra.mxu0 %v1448_v3  ;;  %v595_v33 = vpack.c.b16 %v570_v29, %v570_v29 }
  0x1a   : > { %1604 = vmatpush.bf16.msra.mxu1 %v1448_v3  ;;  %1606 = vmatpush.bf16.msra.mxu3 %v1448_v3 }
  0x1d   : > { %1608 = vmatpush.bf16.msra.mxu2 %v1447_v4  ;;  %673 = vmatpush.bf16.msra.mxu0 %v1447_v4 }
  0x1e   : > { %1607 = vmatpush.bf16.msra.mxu1 %v1447_v4  ;;  %1609 = vmatpush.bf16.msra.mxu3 %v1447_v4 }
  0x21   : > { %1611 = vmatpush.bf16.msra.mxu2 %v1446_v5  ;;  %674 = vmatpush.bf16.msra.mxu0 %v1446_v5 }
  0x22   : > { %1610 = vmatpush.bf16.msra.mxu1 %v1446_v5  ;;  %1612 = vmatpush.bf16.msra.mxu3 %v1446_v5 }
  0x25   : > { %1614 = vmatpush.bf16.msra.mxu2 %v1445_v6  ;;  %675 = vmatpush.bf16.msra.mxu0 %v1445_v6 }
  0x26   : > { %1613 = vmatpush.bf16.msra.mxu1 %v1445_v6  ;;  %1615 = vmatpush.bf16.msra.mxu3 %v1445_v6 }
  0x29   : > { %1617 = vmatpush.bf16.msra.mxu2 %v1444_v7  ;;  %676 = vmatpush.bf16.msra.mxu0 %v1444_v7 }
  0x2a   : > { %1616 = vmatpush.bf16.msra.mxu1 %v1444_v7  ;;  %1618 = vmatpush.bf16.msra.mxu3 %v1444_v7 }
  0x2c   : > { %737 = vmatmul.bf16.vlgmr.msra.gmra.mxu2 %v1432_v8  ;;  %677 = vmatmul.bf16.vlgmr.msra.gmra.mxu0 %v1420_v9 }
  0x2d   : > { %707 = vmatmul.bf16.vlgmr.msra.gmra.mxu1 %v1426_v10  ;;  %772 = vmatmul.bf16.vlgmr.msra.gmra.mxu3 %v1439_v11 }
  0x3c   : > { %742 = vmatmul.bf16.gmra.mxu2 %v1433_v12  ;;  %682 = vmatmul.bf16.gmra.mxu0 %v1421_v13 }
  0x3d   : > { %712 = vmatmul.bf16.gmra.mxu1 %v1427_v14  ;;  %777 = vmatmul.bf16.gmra.mxu3 %v1440_v15 }
  0x4c   : > { %747 = vmatmul.bf16.gmra.mxu2 %v1434_v16  ;;  %687 = vmatmul.bf16.gmra.mxu0 %v1422_v17 }
  0x4d   : > { %717 = vmatmul.bf16.gmra.mxu1 %v1428_v18  ;;  %782 = vmatmul.bf16.gmra.mxu3 %v1441_v19 }
  0x5c   : > { %752 = vmatmul.bf16.gmra.mxu2 %v1435_v20  ;;  %692 = vmatmul.bf16.gmra.mxu0 %v1423_v21 }
  0x5d   : > { %722 = vmatmul.bf16.gmra.mxu1 %v1429_v22  ;;  %787 = vmatmul.bf16.gmra.mxu3 %v1442_v23 }
  0x6c   : > { %757 = vmatmul.bf16.gmra.mxu2 %v1436_v24  ;;  %697 = vmatmul.bf16.gmra.mxu0 %v1424_v25 }
  0x6d   : > { %727 = vmatmul.bf16.gmra.mxu1 %v1430_v26  ;;  %792 = vmatmul.bf16.gmra.mxu3 %v1443_v27 }
  0x7c   : > { %762 = vmatmul.bf16.gmra.mxu2 %v1437_v30  ;;  %702 = vmatmul.bf16.gmra.mxu0 %v1425_v31 }
  0x7d   : > { %732 = vmatmul.bf16.gmra.mxu1 %v1431_v32  ;;  %797 = vmatmul.bf16.gmra.mxu3 %v595_v33 }
  0x8c   : > { %767 = vmatmul.bf16.gmra.mxu2 %v1438_v34 }
  0xa9   : > { %v678_v35 = vpop.f32.mrf.mxu0 }
  0xaa   : > { %v708_v36 = vpop.f32.mrf.mxu1  ;;  %v956_v38 = vadd.f32 %v1771_v37, %v678_v35 }
  0xab   : > { %v968_v40 = vadd.f32 %v1771_v37, %v708_v36 }
  0xac   : > { %v1005_v43 = vmax.f32 %v956_v38, 0.0 }
  0xad   : > { %v1017_v46 = vmax.f32 %v968_v40, 0.0 }
  0xaf   : > { %v738_v39 = vpop.f32.mrf.mxu2 }
  0xb0   : > { %v773_v41 = vpop.f32.mrf.mxu3  ;;  %v980_v51 = vadd.f32 %v1771_v37, %v738_v39 }
  0xb1   : > { %v680_v42 = vpop.f32.mrf.mxu0  ;;  %v994_v49 = vadd.f32 %v1771_v37, %v773_v41 }
  0xb2   : > { %v957_v44 = vadd.f32 %v1771_v37, %v680_v42  ;;  %v710_v45 = vpop.f32.mrf.mxu1  ;;  %v1029_v60 = vmax.f32 %v980_v51, 0.0 }
  0xb3   : > { %v969_v47 = vadd.f32 %v1771_v37, %v710_v45  ;;  %v1043_v57 = vmax.f32 %v994_v49, 0.0 }
  0xb4   : > { %v1006_v48 = vmax.f32 %v957_v44, 0.0 }
  0xb5   : > { %v1018_v50 = vmax.f32 %v969_v47, 0.0 }
  0xb6   : > { %v1455_v52 = vpack.c.bf16 %v1006_v48, %v1005_v43 }
  0xb7   : > { %v740_v53 = vpop.f32.mrf.mxu2  ;;  %v1485_v54 = vpack.c.bf16 %v1018_v50, %v1017_v46 }
  0xb8   : > { %v981_v55 = vadd.f32 %v1771_v37, %v740_v53  ;;  %1456 = vst [vmem:[%s1784_s17] sm:$0xff] %v1455_v52   ;;  %v775_v56 = vpop.f32.mrf.mxu3 }
  0xb9   : > { %1577 = vst [vmem:[%s1784_s17 + $0x30] sm:$0xff] %v1485_v54   ;;  %v995_v58 = vadd.f32 %v1771_v37, %v775_v56  ;;  %v683_v59 = vpop.f32.mrf.mxu0 }
  0xba   : > { %v1030_v61 = vmax.f32 %v981_v55, 0.0  ;;  %v713_v62 = vpop.f32.mrf.mxu1  ;;  %v958_v2 = vadd.f32 %v1771_v37, %v683_v59 }
  0xbb   : > { %v1044_v63 = vmax.f32 %v995_v58, 0.0  ;;  %v970_v4 = vadd.f32 %v1771_v37, %v713_v62 }
  0xbc   : > { %v1515_v0 = vpack.c.bf16 %v1030_v61, %v1029_v60  ;;  %v1007_v7 = vmax.f32 %v958_v2, 0.0 }
  0xbd   : > { %v1550_v1 = vpack.c.bf16 %v1044_v63, %v1043_v57  ;;  %v1019_v10 = vmax.f32 %v970_v4, 0.0 }
  0xbe   : > { %1583 = vst [vmem:[%s1784_s17 + $0x60] sm:$0xff] %v1515_v0  }
  0xbf   : > { %v743_v3 = vpop.f32.mrf.mxu2  ;;  %1590 = vst [vmem:[%s1784_s17 + $0x98] sm:$0xff] %v1550_v1  }
  0xc0   : > { %v778_v5 = vpop.f32.mrf.mxu3  ;;  %v982_v15 = vadd.f32 %v1771_v37, %v743_v3 }
  0xc1   : > { %v685_v6 = vpop.f32.mrf.mxu0  ;;  %v996_v13 = vadd.f32 %v1771_v37, %v778_v5 }
  0xc2   : > { %v959_v8 = vadd.f32 %v1771_v37, %v685_v6  ;;  %v715_v9 = vpop.f32.mrf.mxu1  ;;  %v1031_v24 = vmax.f32 %v982_v15, 0.0 }
  0xc3   : > { %v971_v11 = vadd.f32 %v1771_v37, %v715_v9  ;;  %v1045_v21 = vmax.f32 %v996_v13, 0.0 }
  0xc4   : > { %v1008_v12 = vmax.f32 %v959_v8, 0.0 }
  0xc5   : > { %v1020_v14 = vmax.f32 %v971_v11, 0.0 }
  0xc6   : > { %v1460_v16 = vpack.c.bf16 %v1008_v12, %v1007_v7 }
  0xc7   : > { %v745_v17 = vpop.f32.mrf.mxu2  ;;  %v1490_v18 = vpack.c.bf16 %v1020_v14, %v1019_v10 }
  0xc8   : > { %v983_v19 = vadd.f32 %v1771_v37, %v745_v17  ;;  %1572 = vst [vmem:[%s1784_s17 + $0x8] sm:$0xff] %v1460_v16   ;;  %v780_v20 = vpop.f32.mrf.mxu3 }
  0xc9   : > { %1578 = vst [vmem:[%s1784_s17 + $0x38] sm:$0xff] %v1490_v18   ;;  %v997_v22 = vadd.f32 %v1771_v37, %v780_v20  ;;  %v688_v23 = vpop.f32.mrf.mxu0 }
  0xca   : > { %v1032_v25 = vmax.f32 %v983_v19, 0.0  ;;  %v718_v26 = vpop.f32.mrf.mxu1  ;;  %v960_v30 = vadd.f32 %v1771_v37, %v688_v23 }
  0xcb   : > { %v1046_v27 = vmax.f32 %v997_v22, 0.0  ;;  %v972_v32 = vadd.f32 %v1771_v37, %v718_v26 }
  0xcc   : > { %v1520_v28 = vpack.c.bf16 %v1032_v25, %v1031_v24  ;;  %v1009_v35 = vmax.f32 %v960_v30, 0.0 }
  0xcd   : > { %v1555_v29 = vpack.c.bf16 %v1046_v27, %v1045_v21  ;;  %v1021_v39 = vmax.f32 %v972_v32, 0.0 }
  0xce   : > { %1584 = vst [vmem:[%s1784_s17 + $0x68] sm:$0xff] %v1520_v28  }
  0xcf   : > { %v748_v31 = vpop.f32.mrf.mxu2  ;;  %1591 = vst [vmem:[%s1784_s17 + $0xa0] sm:$0xff] %v1555_v29  }
  0xd0   : > { %v783_v33 = vpop.f32.mrf.mxu3  ;;  %v984_v44 = vadd.f32 %v1771_v37, %v748_v31 }
  0xd1   : > { %v690_v34 = vpop.f32.mrf.mxu0  ;;  %v998_v42 = vadd.f32 %v1771_v37, %v783_v33 }
  0xd2   : > { %v961_v36 = vadd.f32 %v1771_v37, %v690_v34  ;;  %v720_v38 = vpop.f32.mrf.mxu1  ;;  %v1033_v53 = vmax.f32 %v984_v44, 0.0 }
  0xd3   : > { %v973_v40 = vadd.f32 %v1771_v37, %v720_v38  ;;  %v1047_v50 = vmax.f32 %v998_v42, 0.0 }
  0xd4   : > { %v1010_v41 = vmax.f32 %v961_v36, 0.0 }
  0xd5   : > { %v1022_v43 = vmax.f32 %v973_v40, 0.0 }
  0xd6   : > { %v1465_v45 = vpack.c.bf16 %v1010_v41, %v1009_v35 }
  0xd7   : > { %v750_v46 = vpop.f32.mrf.mxu2  ;;  %v1495_v47 = vpack.c.bf16 %v1022_v43, %v1021_v39 }
  0xd8   : > { %v985_v48 = vadd.f32 %v1771_v37, %v750_v46  ;;  %1573 = vst [vmem:[%s1784_s17 + $0x10] sm:$0xff] %v1465_v45   ;;  %v785_v49 = vpop.f32.mrf.mxu3 }
  0xd9   : > { %1579 = vst [vmem:[%s1784_s17 + $0x40] sm:$0xff] %v1495_v47   ;;  %v999_v51 = vadd.f32 %v1771_v37, %v785_v49  ;;  %v693_v52 = vpop.f32.mrf.mxu0 }
  0xda   : > { %v1034_v54 = vmax.f32 %v985_v48, 0.0  ;;  %v723_v55 = vpop.f32.mrf.mxu1  ;;  %v962_v59 = vadd.f32 %v1771_v37, %v693_v52 }
  0xdb   : > { %v1048_v56 = vmax.f32 %v999_v51, 0.0  ;;  %v974_v61 = vadd.f32 %v1771_v37, %v723_v55 }
  0xdc   : > { %v1525_v57 = vpack.c.bf16 %v1034_v54, %v1033_v53  ;;  %v1011_v0 = vmax.f32 %v962_v59, 0.0 }
  0xdd   : > { %v1560_v58 = vpack.c.bf16 %v1048_v56, %v1047_v50  ;;  %v1023_v3 = vmax.f32 %v974_v61, 0.0 }
  0xde   : > { %1585 = vst [vmem:[%s1784_s17 + $0x70] sm:$0xff] %v1525_v57  }
  0xdf   : > { %v753_v60 = vpop.f32.mrf.mxu2  ;;  %1592 = vst [vmem:[%s1784_s17 + $0xa8] sm:$0xff] %v1560_v58  }
  0xe0   : > { %v788_v62 = vpop.f32.mrf.mxu3  ;;  %v986_v8 = vadd.f32 %v1771_v37, %v753_v60 }
  0xe1   : > { %v695_v63 = vpop.f32.mrf.mxu0  ;;  %v1000_v6 = vadd.f32 %v1771_v37, %v788_v62 }
  0xe2   : > { %v963_v1 = vadd.f32 %v1771_v37, %v695_v63  ;;  %v725_v2 = vpop.f32.mrf.mxu1  ;;  %v1035_v17 = vmax.f32 %v986_v8, 0.0 }
  0xe3   : > { %v975_v4 = vadd.f32 %v1771_v37, %v725_v2  ;;  %v1049_v14 = vmax.f32 %v1000_v6, 0.0 }
  0xe4   : > { %v1012_v5 = vmax.f32 %v963_v1, 0.0 }
  0xe5   : > { %v1024_v7 = vmax.f32 %v975_v4, 0.0 }
  0xe6   : > { %v1470_v9 = vpack.c.bf16 %v1012_v5, %v1011_v0 }
  0xe7   : > { %v755_v10 = vpop.f32.mrf.mxu2  ;;  %v1500_v11 = vpack.c.bf16 %v1024_v7, %v1023_v3 }
  0xe8   : > { %v987_v12 = vadd.f32 %v1771_v37, %v755_v10  ;;  %1574 = vst [vmem:[%s1784_s17 + $0x18] sm:$0xff] %v1470_v9   ;;  %v790_v13 = vpop.f32.mrf.mxu3 }
  0xe9   : > { %1580 = vst [vmem:[%s1784_s17 + $0x48] sm:$0xff] %v1500_v11   ;;  %v1001_v15 = vadd.f32 %v1771_v37, %v790_v13  ;;  %v698_v16 = vpop.f32.mrf.mxu0 }
  0xea   : > { %v1036_v18 = vmax.f32 %v987_v12, 0.0  ;;  %v728_v19 = vpop.f32.mrf.mxu1  ;;  %v964_v23 = vadd.f32 %v1771_v37, %v698_v16 }
  0xeb   : > { %v1050_v20 = vmax.f32 %v1001_v15, 0.0  ;;  %v976_v25 = vadd.f32 %v1771_v37, %v728_v19 }
  0xec   : > { %v1530_v21 = vpack.c.bf16 %v1036_v18, %v1035_v17  ;;  %v1013_v28 = vmax.f32 %v964_v23, 0.0 }
  0xed   : > { %v1565_v22 = vpack.c.bf16 %v1050_v20, %v1049_v14  ;;  %v1025_v31 = vmax.f32 %v976_v25, 0.0 }
  0xee   : > { %1586 = vst [vmem:[%s1784_s17 + $0x78] sm:$0xff] %v1530_v21  }
  0xef   : > { %v758_v24 = vpop.f32.mrf.mxu2  ;;  %1593 = vst [vmem:[%s1784_s17 + $0xb0] sm:$0xff] %v1565_v22  }
  0xf0   : > { %v793_v26 = vpop.f32.mrf.mxu3  ;;  %v988_v36 = vadd.f32 %v1771_v37, %v758_v24 }
  0xf1   : > { %v700_v27 = vpop.f32.mrf.mxu0  ;;  %v1002_v34 = vadd.f32 %v1771_v37, %v793_v26 }
  0xf2   : > { %v965_v29 = vadd.f32 %v1771_v37, %v700_v27  ;;  %v730_v30 = vpop.f32.mrf.mxu1  ;;  %v1037_v46 = vmax.f32 %v988_v36, 0.0 }
  0xf3   : > { %v977_v32 = vadd.f32 %v1771_v37, %v730_v30  ;;  %v1051_v43 = vmax.f32 %v1002_v34, 0.0 }
  0xf4   : > { %v1014_v33 = vmax.f32 %v965_v29, 0.0 }
  0xf5   : > { %v1026_v35 = vmax.f32 %v977_v32, 0.0 }
  0xf6   : > { %v1475_v38 = vpack.c.bf16 %v1014_v33, %v1013_v28 }
  0xf7   : > { %v760_v39 = vpop.f32.mrf.mxu2  ;;  %v1505_v40 = vpack.c.bf16 %v1026_v35, %v1025_v31 }
  0xf8   : > { %v989_v41 = vadd.f32 %v1771_v37, %v760_v39  ;;  %1575 = vst [vmem:[%s1784_s17 + $0x20] sm:$0xff] %v1475_v38   ;;  %v795_v42 = vpop.f32.mrf.mxu3 }
  0xf9   : > { %1581 = vst [vmem:[%s1784_s17 + $0x50] sm:$0xff] %v1505_v40   ;;  %v1003_v44 = vadd.f32 %v1771_v37, %v795_v42  ;;  %v703_v45 = vpop.f32.mrf.mxu0 }
  0xfa   : > { %v1038_v47 = vmax.f32 %v989_v41, 0.0  ;;  %v733_v48 = vpop.f32.mrf.mxu1  ;;  %v966_v52 = vadd.f32 %v1771_v37, %v703_v45 }
  0xfb   : > { %v1052_v49 = vmax.f32 %v1003_v44, 0.0  ;;  %v978_v54 = vadd.f32 %v1771_v37, %v733_v48 }
  0xfc   : > { %v1535_v50 = vpack.c.bf16 %v1038_v47, %v1037_v46  ;;  %v1015_v58 = vmax.f32 %v966_v52, 0.0 }
  0xfd   : > { %v1570_v51 = vpack.c.bf16 %v1052_v49, %v1051_v43  ;;  %v1027_v61 = vmax.f32 %v978_v54, 0.0 }
  0xfe   : > { %1587 = vst [vmem:[%s1784_s17 + $0x80] sm:$0xff] %v1535_v50  }
  0xff   : > { %v763_v53 = vpop.f32.mrf.mxu2  ;;  %1594 = vst [vmem:[%s1784_s17 + $0xb8] sm:$0xff] %v1570_v51  }
 0x100   : > { %v798_v55 = vpop.f32.mrf.mxu3  ;;  %v990_v3 = vadd.f32 %v1771_v37, %v763_v53 }
 0x101   : > { %v1004_v56 = vadd.f32 %v1771_v37, %v798_v55  ;;  %v705_v57 = vpop.f32.mrf.mxu0 }
 0x102   : > { %v967_v59 = vadd.f32 %v1771_v37, %v705_v57  ;;  %v735_v60 = vpop.f32.mrf.mxu1  ;;  %v1039_v9 = vmax.f32 %v990_v3, 0.0 }
 0x103   : > { %v1053_v62 = vmax.f32 %v1004_v56, 0.0  ;;  %v979_v63 = vadd.f32 %v1771_v37, %v735_v60 }
 0x104   : > { %v1016_v0 = vmax.f32 %v967_v59, 0.0 }
 0x105   : > { %v1102_v1 = vpack.c.bf16 %v1053_v62, %v1053_v62  ;;  %v1028_v2 = vmax.f32 %v979_v63, 0.0 }
 0x106   : > { %v1480_v4 = vpack.c.bf16 %v1016_v0, %v1015_v58 }
 0x107   : > { %v765_v5 = vpop.f32.mrf.mxu2  ;;  %1151 = vst [vmem:[%s1784_s17 + $0xc0] sm:$0xf] %v1102_v1  ;;  %v1510_v6 = vpack.c.bf16 %v1028_v2, %v1027_v61 }
 0x108   : > { %v991_v7 = vadd.f32 %v1771_v37, %v765_v5  ;;  %1576 = vst [vmem:[%s1784_s17 + $0x28] sm:$0xff] %v1480_v4   ;;  %v800_v8 = vpop.f32.mrf.mxu3 }
 0x109   : > { %1582 = vst [vmem:[%s1784_s17 + $0x58] sm:$0xff] %v1510_v6  }
 0x10a   : > { %v1040_v10 = vmax.f32 %v991_v7, 0.0 }
 0x10c   : > { %v1540_v11 = vpack.c.bf16 %v1040_v10, %v1039_v9 }
 0x10e   : > { %1588 = vst [vmem:[%s1784_s17 + $0x88] sm:$0xff] %v1540_v11  }
 0x10f   : > { %v768_v12 = vpop.f32.mrf.mxu2 }
 0x110   : > { %v992_v13 = vadd.f32 %v1771_v37, %v768_v12 }
 0x112   : > { %v1041_v16 = vmax.f32 %v992_v13, 0.0 }
 0x117   : > { %v770_v14 = vpop.f32.mrf.mxu2 }
 0x118   : > { %v993_v15 = vadd.f32 %v1771_v37, %v770_v14 }
 0x11a   : > { %v1042_v17 = vmax.f32 %v993_v15, 0.0 }
 0x11c   : > { %v1545_v18 = vpack.c.bf16 %v1042_v17, %v1041_v16 }
 0x11e   : > { %1589 = vst [vmem:[%s1784_s17 + $0x90] sm:$0xff] %v1545_v18  }
 0x11f PF: > { %s13_s14 = sadd.s32 1, %s1666_s14   ;;  %s1867_s12 = smov %s1662_s13 }
 0x120   : > { %p10_p5 = scmp.ge.s32.totalorder %s13_s14, 6   ;;  %s1868_s13 = smov %s1870_s15 }
 0x122   :  { %12 = sbr.rel (!%p10_p5) target bundleno = 2 (0x2), region = 76 }

// kernel: _lambda_.19
= control target key start
LH: loop header
LB: loop body
LE: loop exit
PB: predicated region body
PF: predicated region fallthrough
CT: control target
= control target key end

     0   :  { %s1487_s1 = inlined_call_operand.vmem [shape: bf16[1,128,128], index: 1, kind: input, shape index: {}]   ;;  %s1488_s2 = inlined_call_operand.vmem [shape: f32[1,128], index: 2, kind: input, shape index: {}]   ;;  %s1489_s0 = inlined_call_operand.vmem [shape: bf16[1,392,128], index: 0, kind: input, shape index: {}]   ;;  %s1490_s3 = inlined_call_operand.vmem [shape: bf16[392,128], index: 3, kind: output, shape index: {}]  }
   0x1   :  { %v1070_v0 = vld [vmem:[%s1487_s1 + $0x38] sm:$0xff]  ;;  %v1069_v1 = vld [vmem:[%s1487_s1 + $0x30] sm:$0xff]  ;;  %v1068_v2 = vld [vmem:[%s1487_s1 + $0x28] sm:$0xff] }
   0x2   :  { %1215 = vmatpush.bf16.msra.mxu2 %v1070_v0  ;;  %402 = vmatpush.bf16.msra.mxu0 %v1070_v0  ;;  %v1067_v3 = vld [vmem:[%s1487_s1 + $0x20] sm:$0xff]  ;;  %v1066_v4 = vld [vmem:[%s1487_s1 + $0x18] sm:$0xff]  ;;  %v1065_v5 = vld [vmem:[%s1487_s1 + $0x10] sm:$0xff] }
   0x3   :  { %1214 = vmatpush.bf16.msra.mxu1 %v1070_v0  ;;  %1216 = vmatpush.bf16.msra.mxu3 %v1070_v0  ;;  %v1064_v6 = vld [vmem:[%s1487_s1 + $0x8] sm:$0xff]  ;;  %v1063_v7 = vld [vmem:[%s1487_s1] sm:$0xff]  ;;  %v1045_v10 = vld [vmem:[%s1489_s0 + $0x30] sm:$0xff] }
   0x4   :  { %v1051_v8 = vld [vmem:[%s1489_s0 + $0x60] sm:$0xff]  ;;  %v1058_v11 = vld [vmem:[%s1489_s0 + $0x98] sm:$0xff]  ;;  %v1052_v12 = vld [vmem:[%s1489_s0 + $0x68] sm:$0xff] }
   0x5   :  { %v1039_v9 = vld [vmem:[%s1489_s0] sm:$0xff]  ;;  %v1040_v13 = vld [vmem:[%s1489_s0 + $0x8] sm:$0xff]  ;;  %v1046_v14 = vld [vmem:[%s1489_s0 + $0x38] sm:$0xff] }
   0x6   :  { %1218 = vmatpush.bf16.msra.mxu2 %v1069_v1  ;;  %403 = vmatpush.bf16.msra.mxu0 %v1069_v1  ;;  %v1059_v15 = vld [vmem:[%s1489_s0 + $0xa0] sm:$0xff]  ;;  %v1053_v16 = vld [vmem:[%s1489_s0 + $0x70] sm:$0xff]  ;;  %v1060_v19 = vld [vmem:[%s1489_s0 + $0xa8] sm:$0xff] }
   0x7   :  { %1217 = vmatpush.bf16.msra.mxu1 %v1069_v1  ;;  %1219 = vmatpush.bf16.msra.mxu3 %v1069_v1  ;;  %v1041_v17 = vld [vmem:[%s1489_s0 + $0x10] sm:$0xff]  ;;  %v1047_v18 = vld [vmem:[%s1489_s0 + $0x40] sm:$0xff]  ;;  %v1054_v20 = vld [vmem:[%s1489_s0 + $0x78] sm:$0xff] }
   0x8   :  { %v1042_v21 = vld [vmem:[%s1489_s0 + $0x18] sm:$0xff]  ;;  %v1048_v22 = vld [vmem:[%s1489_s0 + $0x48] sm:$0xff]  ;;  %v1061_v23 = vld [vmem:[%s1489_s0 + $0xb0] sm:$0xff] }
   0x9   :  { %v1055_v24 = vld [vmem:[%s1489_s0 + $0x80] sm:$0xff]  ;;  %v1049_v26 = vld [vmem:[%s1489_s0 + $0x50] sm:$0xff]  ;;  %v1062_v27 = vld [vmem:[%s1489_s0 + $0xb8] sm:$0xff] }
   0xa   :  { %1221 = vmatpush.bf16.msra.mxu2 %v1068_v2  ;;  %404 = vmatpush.bf16.msra.mxu0 %v1068_v2  ;;  %v1043_v25 = vld [vmem:[%s1489_s0 + $0x20] sm:$0xff]  ;;  %v1056_v30 = vld [vmem:[%s1489_s0 + $0x88] sm:$0xff]  ;;  %v1050_v32 = vld [vmem:[%s1489_s0 + $0x58] sm:$0xff] }
   0xb   :  { %1220 = vmatpush.bf16.msra.mxu1 %v1068_v2  ;;  %1222 = vmatpush.bf16.msra.mxu3 %v1068_v2  ;;  %v189_v28 = vld [vmem:[%s1489_s0 + $0xc0] sm:$0xf]  ;;  %v1044_v31 = vld [vmem:[%s1489_s0 + $0x28] sm:$0xff]  ;;  %v1057_v34 = vld [vmem:[%s1489_s0 + $0x90] sm:$0xff] }
   0xc   :  { %v303_v29 = vunpack.c.l.b16 %v189_v28  ;;  %v1361_v37 = vld [vmem:[%s1488_s2] ss:$0 sm:$0xff] }
   0xe   :  { %1224 = vmatpush.bf16.msra.mxu2 %v1067_v3  ;;  %405 = vmatpush.bf16.msra.mxu0 %v1067_v3  ;;  %v328_v33 = vpack.c.b16 %v303_v29, %v303_v29 }
   0xf   :  { %1223 = vmatpush.bf16.msra.mxu1 %v1067_v3  ;;  %1225 = vmatpush.bf16.msra.mxu3 %v1067_v3 }
  0x12   :  { %1227 = vmatpush.bf16.msra.mxu2 %v1066_v4  ;;  %406 = vmatpush.bf16.msra.mxu0 %v1066_v4 }
  0x13   :  { %1226 = vmatpush.bf16.msra.mxu1 %v1066_v4  ;;  %1228 = vmatpush.bf16.msra.mxu3 %v1066_v4 }
  0x16   :  { %1230 = vmatpush.bf16.msra.mxu2 %v1065_v5  ;;  %407 = vmatpush.bf16.msra.mxu0 %v1065_v5 }
  0x17   :  { %1229 = vmatpush.bf16.msra.mxu1 %v1065_v5  ;;  %1231 = vmatpush.bf16.msra.mxu3 %v1065_v5 }
  0x1a   :  { %1233 = vmatpush.bf16.msra.mxu2 %v1064_v6  ;;  %408 = vmatpush.bf16.msra.mxu0 %v1064_v6 }
  0x1b   :  { %1232 = vmatpush.bf16.msra.mxu1 %v1064_v6  ;;  %1234 = vmatpush.bf16.msra.mxu3 %v1064_v6 }
  0x1e   :  { %1236 = vmatpush.bf16.msra.mxu2 %v1063_v7  ;;  %409 = vmatpush.bf16.msra.mxu0 %v1063_v7 }
  0x1f   :  { %1235 = vmatpush.bf16.msra.mxu1 %v1063_v7  ;;  %1237 = vmatpush.bf16.msra.mxu3 %v1063_v7 }
  0x21   :  { %470 = vmatmul.bf16.vlgmr.msra.gmra.mxu2 %v1051_v8  ;;  %410 = vmatmul.bf16.vlgmr.msra.gmra.mxu0 %v1039_v9 }
  0x22   :  { %440 = vmatmul.bf16.vlgmr.msra.gmra.mxu1 %v1045_v10  ;;  %505 = vmatmul.bf16.vlgmr.msra.gmra.mxu3 %v1058_v11 }
  0x31   :  { %475 = vmatmul.bf16.gmra.mxu2 %v1052_v12  ;;  %415 = vmatmul.bf16.gmra.mxu0 %v1040_v13 }
  0x32   :  { %445 = vmatmul.bf16.gmra.mxu1 %v1046_v14  ;;  %510 = vmatmul.bf16.gmra.mxu3 %v1059_v15 }
  0x41   :  { %480 = vmatmul.bf16.gmra.mxu2 %v1053_v16  ;;  %420 = vmatmul.bf16.gmra.mxu0 %v1041_v17 }
  0x42   :  { %450 = vmatmul.bf16.gmra.mxu1 %v1047_v18  ;;  %515 = vmatmul.bf16.gmra.mxu3 %v1060_v19 }
  0x51   :  { %485 = vmatmul.bf16.gmra.mxu2 %v1054_v20  ;;  %425 = vmatmul.bf16.gmra.mxu0 %v1042_v21 }
  0x52   :  { %455 = vmatmul.bf16.gmra.mxu1 %v1048_v22  ;;  %520 = vmatmul.bf16.gmra.mxu3 %v1061_v23 }
  0x61   :  { %490 = vmatmul.bf16.gmra.mxu2 %v1055_v24  ;;  %430 = vmatmul.bf16.gmra.mxu0 %v1043_v25 }
  0x62   :  { %460 = vmatmul.bf16.gmra.mxu1 %v1049_v26  ;;  %525 = vmatmul.bf16.gmra.mxu3 %v1062_v27 }
  0x71   :  { %495 = vmatmul.bf16.gmra.mxu2 %v1056_v30  ;;  %435 = vmatmul.bf16.gmra.mxu0 %v1044_v31 }
  0x72   :  { %465 = vmatmul.bf16.gmra.mxu1 %v1050_v32  ;;  %530 = vmatmul.bf16.gmra.mxu3 %v328_v33 }
  0x81   :  { %500 = vmatmul.bf16.gmra.mxu2 %v1057_v34 }
  0x9e   :  { %v411_v35 = vpop.f32.mrf.mxu0 }
  0x9f   :  { %v441_v36 = vpop.f32.mrf.mxu1  ;;  %v689_v38 = vadd.f32 %v1361_v37, %v411_v35 }
  0xa0   :  { %v701_v40 = vadd.f32 %v1361_v37, %v441_v36 }
  0xa1   :  { %v738_v43 = vmax.f32 %v689_v38, 0.0 }
  0xa2   :  { %v750_v46 = vmax.f32 %v701_v40, 0.0 }
  0xa4   :  { %v471_v39 = vpop.f32.mrf.mxu2 }
  0xa5   :  { %v506_v41 = vpop.f32.mrf.mxu3  ;;  %v713_v51 = vadd.f32 %v1361_v37, %v471_v39 }
  0xa6   :  { %v413_v42 = vpop.f32.mrf.mxu0  ;;  %v727_v49 = vadd.f32 %v1361_v37, %v506_v41 }
  0xa7   :  { %v690_v44 = vadd.f32 %v1361_v37, %v413_v42  ;;  %v443_v45 = vpop.f32.mrf.mxu1  ;;  %v762_v60 = vmax.f32 %v713_v51, 0.0 }
  0xa8   :  { %v702_v47 = vadd.f32 %v1361_v37, %v443_v45  ;;  %v776_v57 = vmax.f32 %v727_v49, 0.0 }
  0xa9   :  { %v739_v48 = vmax.f32 %v690_v44, 0.0 }
  0xaa   :  { %v751_v50 = vmax.f32 %v702_v47, 0.0 }
  0xab   :  { %v1074_v52 = vpack.c.bf16 %v739_v48, %v738_v43 }
  0xac   :  { %v473_v53 = vpop.f32.mrf.mxu2  ;;  %v1104_v54 = vpack.c.bf16 %v751_v50, %v750_v46 }
  0xad   :  { %v714_v55 = vadd.f32 %v1361_v37, %v473_v53  ;;  %1075 = vst [vmem:[%s1490_s3] sm:$0xff] %v1074_v52   ;;  %v508_v56 = vpop.f32.mrf.mxu3 }
  0xae   :  { %1196 = vst [vmem:[%s1490_s3 + $0x30] sm:$0xff] %v1104_v54   ;;  %v728_v58 = vadd.f32 %v1361_v37, %v508_v56  ;;  %v416_v59 = vpop.f32.mrf.mxu0 }
  0xaf   :  { %v763_v61 = vmax.f32 %v714_v55, 0.0  ;;  %v446_v62 = vpop.f32.mrf.mxu1  ;;  %v691_v2 = vadd.f32 %v1361_v37, %v416_v59 }
  0xb0   :  { %v777_v63 = vmax.f32 %v728_v58, 0.0  ;;  %v703_v4 = vadd.f32 %v1361_v37, %v446_v62 }
  0xb1   :  { %v1134_v0 = vpack.c.bf16 %v763_v61, %v762_v60  ;;  %v740_v7 = vmax.f32 %v691_v2, 0.0 }
  0xb2   :  { %v1169_v1 = vpack.c.bf16 %v777_v63, %v776_v57  ;;  %v752_v10 = vmax.f32 %v703_v4, 0.0 }
  0xb3   :  { %1202 = vst [vmem:[%s1490_s3 + $0x60] sm:$0xff] %v1134_v0  }
  0xb4   :  { %v476_v3 = vpop.f32.mrf.mxu2  ;;  %1209 = vst [vmem:[%s1490_s3 + $0x98] sm:$0xff] %v1169_v1  }
  0xb5   :  { %v511_v5 = vpop.f32.mrf.mxu3  ;;  %v715_v15 = vadd.f32 %v1361_v37, %v476_v3 }
  0xb6   :  { %v418_v6 = vpop.f32.mrf.mxu0  ;;  %v729_v13 = vadd.f32 %v1361_v37, %v511_v5 }
  0xb7   :  { %v692_v8 = vadd.f32 %v1361_v37, %v418_v6  ;;  %v448_v9 = vpop.f32.mrf.mxu1  ;;  %v764_v24 = vmax.f32 %v715_v15, 0.0 }
  0xb8   :  { %v704_v11 = vadd.f32 %v1361_v37, %v448_v9  ;;  %v778_v21 = vmax.f32 %v729_v13, 0.0 }
  0xb9   :  { %v741_v12 = vmax.f32 %v692_v8, 0.0 }
  0xba   :  { %v753_v14 = vmax.f32 %v704_v11, 0.0 }
  0xbb   :  { %v1079_v16 = vpack.c.bf16 %v741_v12, %v740_v7 }
  0xbc   :  { %v478_v17 = vpop.f32.mrf.mxu2  ;;  %v1109_v18 = vpack.c.bf16 %v753_v14, %v752_v10 }
  0xbd   :  { %v716_v19 = vadd.f32 %v1361_v37, %v478_v17  ;;  %1191 = vst [vmem:[%s1490_s3 + $0x8] sm:$0xff] %v1079_v16   ;;  %v513_v20 = vpop.f32.mrf.mxu3 }
  0xbe   :  { %1197 = vst [vmem:[%s1490_s3 + $0x38] sm:$0xff] %v1109_v18   ;;  %v730_v22 = vadd.f32 %v1361_v37, %v513_v20  ;;  %v421_v23 = vpop.f32.mrf.mxu0 }
  0xbf   :  { %v765_v25 = vmax.f32 %v716_v19, 0.0  ;;  %v451_v26 = vpop.f32.mrf.mxu1  ;;  %v693_v30 = vadd.f32 %v1361_v37, %v421_v23 }
  0xc0   :  { %v779_v27 = vmax.f32 %v730_v22, 0.0  ;;  %v705_v32 = vadd.f32 %v1361_v37, %v451_v26 }
  0xc1   :  { %v1139_v28 = vpack.c.bf16 %v765_v25, %v764_v24  ;;  %v742_v35 = vmax.f32 %v693_v30, 0.0 }
  0xc2   :  { %v1174_v29 = vpack.c.bf16 %v779_v27, %v778_v21  ;;  %v754_v39 = vmax.f32 %v705_v32, 0.0 }
  0xc3   :  { %1203 = vst [vmem:[%s1490_s3 + $0x68] sm:$0xff] %v1139_v28  }
  0xc4   :  { %v481_v31 = vpop.f32.mrf.mxu2  ;;  %1210 = vst [vmem:[%s1490_s3 + $0xa0] sm:$0xff] %v1174_v29  }
  0xc5   :  { %v516_v33 = vpop.f32.mrf.mxu3  ;;  %v717_v44 = vadd.f32 %v1361_v37, %v481_v31 }
  0xc6   :  { %v423_v34 = vpop.f32.mrf.mxu0  ;;  %v731_v42 = vadd.f32 %v1361_v37, %v516_v33 }
  0xc7   :  { %v694_v36 = vadd.f32 %v1361_v37, %v423_v34  ;;  %v453_v38 = vpop.f32.mrf.mxu1  ;;  %v766_v53 = vmax.f32 %v717_v44, 0.0 }
  0xc8   :  { %v706_v40 = vadd.f32 %v1361_v37, %v453_v38  ;;  %v780_v50 = vmax.f32 %v731_v42, 0.0 }
  0xc9   :  { %v743_v41 = vmax.f32 %v694_v36, 0.0 }
  0xca   :  { %v755_v43 = vmax.f32 %v706_v40, 0.0 }
  0xcb   :  { %v1084_v45 = vpack.c.bf16 %v743_v41, %v742_v35 }
  0xcc   :  { %v483_v46 = vpop.f32.mrf.mxu2  ;;  %v1114_v47 = vpack.c.bf16 %v755_v43, %v754_v39 }
  0xcd   :  { %v718_v48 = vadd.f32 %v1361_v37, %v483_v46  ;;  %1192 = vst [vmem:[%s1490_s3 + $0x10] sm:$0xff] %v1084_v45   ;;  %v518_v49 = vpop.f32.mrf.mxu3 }
  0xce   :  { %1198 = vst [vmem:[%s1490_s3 + $0x40] sm:$0xff] %v1114_v47   ;;  %v732_v51 = vadd.f32 %v1361_v37, %v518_v49  ;;  %v426_v52 = vpop.f32.mrf.mxu0 }
  0xcf   :  { %v767_v54 = vmax.f32 %v718_v48, 0.0  ;;  %v456_v55 = vpop.f32.mrf.mxu1  ;;  %v695_v59 = vadd.f32 %v1361_v37, %v426_v52 }
  0xd0   :  { %v781_v56 = vmax.f32 %v732_v51, 0.0  ;;  %v707_v61 = vadd.f32 %v1361_v37, %v456_v55 }
  0xd1   :  { %v1144_v57 = vpack.c.bf16 %v767_v54, %v766_v53  ;;  %v744_v0 = vmax.f32 %v695_v59, 0.0 }
  0xd2   :  { %v1179_v58 = vpack.c.bf16 %v781_v56, %v780_v50  ;;  %v756_v3 = vmax.f32 %v707_v61, 0.0 }
  0xd3   :  { %1204 = vst [vmem:[%s1490_s3 + $0x70] sm:$0xff] %v1144_v57  }
  0xd4   :  { %v486_v60 = vpop.f32.mrf.mxu2  ;;  %1211 = vst [vmem:[%s1490_s3 + $0xa8] sm:$0xff] %v1179_v58  }
  0xd5   :  { %v521_v62 = vpop.f32.mrf.mxu3  ;;  %v719_v8 = vadd.f32 %v1361_v37, %v486_v60 }
  0xd6   :  { %v428_v63 = vpop.f32.mrf.mxu0  ;;  %v733_v6 = vadd.f32 %v1361_v37, %v521_v62 }
  0xd7   :  { %v696_v1 = vadd.f32 %v1361_v37, %v428_v63  ;;  %v458_v2 = vpop.f32.mrf.mxu1  ;;  %v768_v17 = vmax.f32 %v719_v8, 0.0 }
  0xd8   :  { %v708_v4 = vadd.f32 %v1361_v37, %v458_v2  ;;  %v782_v14 = vmax.f32 %v733_v6, 0.0 }
  0xd9   :  { %v745_v5 = vmax.f32 %v696_v1, 0.0 }
  0xda   :  { %v757_v7 = vmax.f32 %v708_v4, 0.0 }
  0xdb   :  { %v1089_v9 = vpack.c.bf16 %v745_v5, %v744_v0 }
  0xdc   :  { %v488_v10 = vpop.f32.mrf.mxu2  ;;  %v1119_v11 = vpack.c.bf16 %v757_v7, %v756_v3 }
  0xdd   :  { %v720_v12 = vadd.f32 %v1361_v37, %v488_v10  ;;  %1193 = vst [vmem:[%s1490_s3 + $0x18] sm:$0xff] %v1089_v9   ;;  %v523_v13 = vpop.f32.mrf.mxu3 }
  0xde   :  { %1199 = vst [vmem:[%s1490_s3 + $0x48] sm:$0xff] %v1119_v11   ;;  %v734_v15 = vadd.f32 %v1361_v37, %v523_v13  ;;  %v431_v16 = vpop.f32.mrf.mxu0 }
  0xdf   :  { %v769_v18 = vmax.f32 %v720_v12, 0.0  ;;  %v461_v19 = vpop.f32.mrf.mxu1  ;;  %v697_v23 = vadd.f32 %v1361_v37, %v431_v16 }
  0xe0   :  { %v783_v20 = vmax.f32 %v734_v15, 0.0  ;;  %v709_v25 = vadd.f32 %v1361_v37, %v461_v19 }
  0xe1   :  { %v1149_v21 = vpack.c.bf16 %v769_v18, %v768_v17  ;;  %v746_v28 = vmax.f32 %v697_v23, 0.0 }
  0xe2   :  { %v1184_v22 = vpack.c.bf16 %v783_v20, %v782_v14  ;;  %v758_v31 = vmax.f32 %v709_v25, 0.0 }
  0xe3   :  { %1205 = vst [vmem:[%s1490_s3 + $0x78] sm:$0xff] %v1149_v21  }
  0xe4   :  { %v491_v24 = vpop.f32.mrf.mxu2  ;;  %1212 = vst [vmem:[%s1490_s3 + $0xb0] sm:$0xff] %v1184_v22  }
  0xe5   :  { %v526_v26 = vpop.f32.mrf.mxu3  ;;  %v721_v36 = vadd.f32 %v1361_v37, %v491_v24 }
  0xe6   :  { %v433_v27 = vpop.f32.mrf.mxu0  ;;  %v735_v34 = vadd.f32 %v1361_v37, %v526_v26 }
  0xe7   :  { %v698_v29 = vadd.f32 %v1361_v37, %v433_v27  ;;  %v463_v30 = vpop.f32.mrf.mxu1  ;;  %v770_v46 = vmax.f32 %v721_v36, 0.0 }
  0xe8   :  { %v710_v32 = vadd.f32 %v1361_v37, %v463_v30  ;;  %v784_v43 = vmax.f32 %v735_v34, 0.0 }
  0xe9   :  { %v747_v33 = vmax.f32 %v698_v29, 0.0 }
  0xea   :  { %v759_v35 = vmax.f32 %v710_v32, 0.0 }
  0xeb   :  { %v1094_v38 = vpack.c.bf16 %v747_v33, %v746_v28 }
  0xec   :  { %v493_v39 = vpop.f32.mrf.mxu2  ;;  %v1124_v40 = vpack.c.bf16 %v759_v35, %v758_v31 }
  0xed   :  { %v722_v41 = vadd.f32 %v1361_v37, %v493_v39  ;;  %1194 = vst [vmem:[%s1490_s3 + $0x20] sm:$0xff] %v1094_v38   ;;  %v528_v42 = vpop.f32.mrf.mxu3 }
  0xee   :  { %1200 = vst [vmem:[%s1490_s3 + $0x50] sm:$0xff] %v1124_v40   ;;  %v736_v44 = vadd.f32 %v1361_v37, %v528_v42  ;;  %v436_v45 = vpop.f32.mrf.mxu0 }
  0xef   :  { %v771_v47 = vmax.f32 %v722_v41, 0.0  ;;  %v466_v48 = vpop.f32.mrf.mxu1  ;;  %v699_v52 = vadd.f32 %v1361_v37, %v436_v45 }
  0xf0   :  { %v785_v49 = vmax.f32 %v736_v44, 0.0  ;;  %v711_v54 = vadd.f32 %v1361_v37, %v466_v48 }
  0xf1   :  { %v1154_v50 = vpack.c.bf16 %v771_v47, %v770_v46  ;;  %v748_v58 = vmax.f32 %v699_v52, 0.0 }
  0xf2   :  { %v1189_v51 = vpack.c.bf16 %v785_v49, %v784_v43  ;;  %v760_v61 = vmax.f32 %v711_v54, 0.0 }
  0xf3   :  { %1206 = vst [vmem:[%s1490_s3 + $0x80] sm:$0xff] %v1154_v50  }
  0xf4   :  { %v496_v53 = vpop.f32.mrf.mxu2  ;;  %1213 = vst [vmem:[%s1490_s3 + $0xb8] sm:$0xff] %v1189_v51  }
  0xf5   :  { %v531_v55 = vpop.f32.mrf.mxu3  ;;  %v723_v3 = vadd.f32 %v1361_v37, %v496_v53 }
  0xf6   :  { %v737_v56 = vadd.f32 %v1361_v37, %v531_v55  ;;  %v438_v57 = vpop.f32.mrf.mxu0 }
  0xf7   :  { %v700_v59 = vadd.f32 %v1361_v37, %v438_v57  ;;  %v468_v60 = vpop.f32.mrf.mxu1  ;;  %v772_v9 = vmax.f32 %v723_v3, 0.0 }
  0xf8   :  { %v786_v62 = vmax.f32 %v737_v56, 0.0  ;;  %v712_v63 = vadd.f32 %v1361_v37, %v468_v60 }
  0xf9   :  { %v749_v0 = vmax.f32 %v700_v59, 0.0 }
  0xfa   :  { %v835_v1 = vpack.c.bf16 %v786_v62, %v786_v62  ;;  %v761_v2 = vmax.f32 %v712_v63, 0.0 }
  0xfb   :  { %v1099_v4 = vpack.c.bf16 %v749_v0, %v748_v58 }
  0xfc   :  { %v498_v5 = vpop.f32.mrf.mxu2  ;;  %884 = vst [vmem:[%s1490_s3 + $0xc0] sm:$0xf] %v835_v1  ;;  %v1129_v6 = vpack.c.bf16 %v761_v2, %v760_v61 }
  0xfd   :  { %v724_v7 = vadd.f32 %v1361_v37, %v498_v5  ;;  %1195 = vst [vmem:[%s1490_s3 + $0x28] sm:$0xff] %v1099_v4   ;;  %v533_v8 = vpop.f32.mrf.mxu3 }
  0xfe   :  { %1201 = vst [vmem:[%s1490_s3 + $0x58] sm:$0xff] %v1129_v6  }
  0xff   :  { %v773_v10 = vmax.f32 %v724_v7, 0.0 }
 0x101   :  { %v1159_v11 = vpack.c.bf16 %v773_v10, %v772_v9 }
 0x103   :  { %1207 = vst [vmem:[%s1490_s3 + $0x88] sm:$0xff] %v1159_v11  }
 0x104   :  { %v501_v12 = vpop.f32.mrf.mxu2 }
 0x105   :  { %v725_v13 = vadd.f32 %v1361_v37, %v501_v12 }
 0x107   :  { %v774_v16 = vmax.f32 %v725_v13, 0.0 }
 0x10c   :  { %v503_v14 = vpop.f32.mrf.mxu2 }
 0x10d   :  { %v726_v15 = vadd.f32 %v1361_v37, %v503_v14 }
 0x10f   :  { %v775_v17 = vmax.f32 %v726_v15, 0.0 }
 0x111   :  { %v1164_v18 = vpack.c.bf16 %v775_v17, %v774_v16 }
 0x113   :  { %1208 = vst [vmem:[%s1490_s3 + $0x90] sm:$0xff] %v1164_v18  }

// kernel: _lambda_.20
= control target key start
LH: loop header
LB: loop body
LE: loop exit
PB: predicated region body
PF: predicated region fallthrough
CT: control target
= control target key end

     0   :  { %s1933_s12 = smov 0   ;;  %s1935_s13 = smov 0   ;;  %s2234_s0 = inlined_call_operand.vmem [shape: bf16[2,392,128], index: 0, kind: input, shape index: {}]   ;;  %s2235_s1 = inlined_call_operand.vmem [shape: bf16[2,128,128], index: 1, kind: input, shape index: {}]   ;;  %s2236_s2 = inlined_call_operand.vmem [shape: f32[1,256], index: 2, kind: input, shape index: {}]   ;;  %s2237_s3 = inlined_call_operand.vmem [shape: bf16[392,256], index: 3, kind: output, shape index: {}]  }
   0x1   :  { %s1937_s14 = smov 0   ;;  %s1939_s15 = smov 0  }
   0x2   :  { %s1941_s16 = smov 0  }
   0x3 LB: > { %s1491_s17 = sadd.s32 4294967295, %s1911_s16   ;;  %s39_s18 = sadd.s32 1, %s1907_s15  ;;  %s1911_s16 = sphi %s1941_s16, %s13_s16   ;;  %s1907_s15 = sphi %s1939_s15, %s2242_s15   ;;  %s1903_s14 = sphi %s1937_s14, %s2241_s14   ;;  %s1899_s13 = sphi %s1935_s13, %s2240_s13   ;;  %s1895_s12 = sphi %s1933_s12, %s2239_s12  }
   0x4   : > { %p41_p0 = scmp.ge.s32.totalorder %s39_s18, 2  ;;  %s138_s19 = sadd.s32 1, %s1899_s13 }
   0x5   : > { %p148_p1 = scmp.ne.s32.totalorder %s1899_s13, %s1895_s12  ;;  %p149_p2 = scmp.eq.s32.totalorder %s1491_s17, 1 }
   0x6   : > { %s2244_s18 = smov (%p41_p0, %s39_s18), 0  ;;  %p1495_p4 = scmp.ge.s32.totalorder %s1911_s16, 1 }
   0x7   : > { %p1965_p3 = por %p149_p2, %p148_p1  ;;  %s134_s21 = ssub.s32 %s1907_s15, %s2244_s18 }
   0x8   : > { %p213_p5 = scmp.lt.s32.totalorder %s1911_s16, 3  ;;  %p136_p6 = scmp.eq.s32.totalorder %s134_s21, 0 }
   0xa   : > { %p214_p7 = pnand %p1495_p4, %p213_p5 }
   0xb   : > { %s1974_s22 = scalar_select %p136_p6, %s1899_s13, %s138_s19  }
   0xc   : > { %217 = sbr.rel (%p214_p7) target bundleno = 305 (0x131), region = 32  ;;  %p260_p8 = scmp.lt.s32.totalorder (!%p214_p7), %s1903_s14, 1 }
   0xd   : > { %s256_s10 = sand.u32 (!%p214_p7), 1, %s1895_s12  }
   0xe   : > { %s1830_s11 = smul.u32 (!%p214_p7), 196, %s256_s10 }
  0x10   : > { %s2044_s12 = scalar_lea.vmem (!%p214_p7), [#allocation3], %s1830_s11 }
  0x11   : > { %s1978_s23 = scalar_select %p260_p8, %s1903_s14, 1 }
  0x12   : > { %s1627_s17 = sshll.u32 (%p1965_p3), %s1903_s14, 2 }
  0x13   : > { %s1630_s24 = sshll.u32 %s1978_s23, 6  ;;  %s288_s30 = scalar_lea.vmem %s2236_s2, %s1978_s23 }
  0x14   : > { %s1984_s27 = scalar_lea.vmem %s2235_s1, %s1630_s24  ;;  %s1831_s4 = smul.u32 196, %s1978_s23  ;;  %v2034_v37 = vld [vmem:[%s288_s30] ss:$0 sm:$0xff] }
  0x15   : > { %v1662_v0 = vld [vmem:[%s1984_s27 + $0x38] sm:$0xff]  ;;  %v1661_v1 = vld [vmem:[%s1984_s27 + $0x30] sm:$0xff]  ;;  %v1660_v2 = vld [vmem:[%s1984_s27 + $0x28] sm:$0xff]  ;;  %s2121_s23 = scalar_lea.vmem (%p1965_p3), %s2237_s3, %s1627_s17 }
  0x16   : > { %1807 = vmatpush.bf16.msra.mxu2 %v1662_v0  ;;  %655 = vmatpush.bf16.msra.mxu0 %v1662_v0  ;;  %v1659_v3 = vld [vmem:[%s1984_s27 + $0x20] sm:$0xff]  ;;  %v1658_v4 = vld [vmem:[%s1984_s27 + $0x18] sm:$0xff]  ;;  %v1657_v5 = vld [vmem:[%s1984_s27 + $0x10] sm:$0xff]  ;;  %s2001_s7 = scalar_lea.vmem %s2234_s0, %s1831_s4 }
  0x17   : > { %1806 = vmatpush.bf16.msra.mxu1 %v1662_v0  ;;  %1808 = vmatpush.bf16.msra.mxu3 %v1662_v0  ;;  %v1656_v6 = vld [vmem:[%s1984_s27 + $0x8] sm:$0xff]  ;;  %v1655_v7 = vld [vmem:[%s1984_s27] sm:$0xff]  ;;  %v1637_v10 = vld [vmem:[%s2001_s7 + $0x30] sm:$0xff] }
  0x18   : > { %v1643_v8 = vld [vmem:[%s2001_s7 + $0x60] sm:$0xff]  ;;  %v1650_v11 = vld [vmem:[%s2001_s7 + $0x98] sm:$0xff]  ;;  %v1644_v12 = vld [vmem:[%s2001_s7 + $0x68] sm:$0xff] }
  0x19   : > { %v1631_v9 = vld [vmem:[%s2001_s7] sm:$0xff]  ;;  %v1632_v13 = vld [vmem:[%s2001_s7 + $0x8] sm:$0xff]  ;;  %v1638_v14 = vld [vmem:[%s2001_s7 + $0x38] sm:$0xff] }
  0x1a   : > { %1810 = vmatpush.bf16.msra.mxu2 %v1661_v1  ;;  %656 = vmatpush.bf16.msra.mxu0 %v1661_v1  ;;  %v1651_v15 = vld [vmem:[%s2001_s7 + $0xa0] sm:$0xff]  ;;  %v1645_v16 = vld [vmem:[%s2001_s7 + $0x70] sm:$0xff]  ;;  %v1652_v19 = vld [vmem:[%s2001_s7 + $0xa8] sm:$0xff] }
  0x1b   : > { %1809 = vmatpush.bf16.msra.mxu1 %v1661_v1  ;;  %1811 = vmatpush.bf16.msra.mxu3 %v1661_v1  ;;  %v1633_v17 = vld [vmem:[%s2001_s7 + $0x10] sm:$0xff]  ;;  %v1639_v18 = vld [vmem:[%s2001_s7 + $0x40] sm:$0xff]  ;;  %v1646_v20 = vld [vmem:[%s2001_s7 + $0x78] sm:$0xff] }
  0x1c   : > { %v1634_v21 = vld [vmem:[%s2001_s7 + $0x18] sm:$0xff]  ;;  %v1640_v22 = vld [vmem:[%s2001_s7 + $0x48] sm:$0xff]  ;;  %v1653_v23 = vld [vmem:[%s2001_s7 + $0xb0] sm:$0xff] }
  0x1d   : > { %v1647_v24 = vld [vmem:[%s2001_s7 + $0x80] sm:$0xff]  ;;  %v1641_v26 = vld [vmem:[%s2001_s7 + $0x50] sm:$0xff]  ;;  %v1654_v27 = vld [vmem:[%s2001_s7 + $0xb8] sm:$0xff] }
  0x1e   : > { %1813 = vmatpush.bf16.msra.mxu2 %v1660_v2  ;;  %657 = vmatpush.bf16.msra.mxu0 %v1660_v2  ;;  %v1635_v25 = vld [vmem:[%s2001_s7 + $0x20] sm:$0xff]  ;;  %v1648_v30 = vld [vmem:[%s2001_s7 + $0x88] sm:$0xff]  ;;  %v1642_v32 = vld [vmem:[%s2001_s7 + $0x58] sm:$0xff] }
  0x1f   : > { %1812 = vmatpush.bf16.msra.mxu1 %v1660_v2  ;;  %1814 = vmatpush.bf16.msra.mxu3 %v1660_v2  ;;  %v442_v28 = vld [vmem:[%s2001_s7 + $0xc0] sm:$0xf]  ;;  %v1636_v31 = vld [vmem:[%s2001_s7 + $0x28] sm:$0xff]  ;;  %v1649_v34 = vld [vmem:[%s2001_s7 + $0x90] sm:$0xff] }
  0x20   : > { %v556_v29 = vunpack.c.l.b16 %v442_v28 }
  0x22   : > { %1816 = vmatpush.bf16.msra.mxu2 %v1659_v3  ;;  %658 = vmatpush.bf16.msra.mxu0 %v1659_v3  ;;  %v581_v33 = vpack.c.b16 %v556_v29, %v556_v29 }
  0x23   : > { %1815 = vmatpush.bf16.msra.mxu1 %v1659_v3  ;;  %1817 = vmatpush.bf16.msra.mxu3 %v1659_v3 }
  0x26   : > { %1819 = vmatpush.bf16.msra.mxu2 %v1658_v4  ;;  %659 = vmatpush.bf16.msra.mxu0 %v1658_v4 }
  0x27   : > { %1818 = vmatpush.bf16.msra.mxu1 %v1658_v4  ;;  %1820 = vmatpush.bf16.msra.mxu3 %v1658_v4 }
  0x2a   : > { %1822 = vmatpush.bf16.msra.mxu2 %v1657_v5  ;;  %660 = vmatpush.bf16.msra.mxu0 %v1657_v5 }
  0x2b   : > { %1821 = vmatpush.bf16.msra.mxu1 %v1657_v5  ;;  %1823 = vmatpush.bf16.msra.mxu3 %v1657_v5 }
  0x2e   : > { %1825 = vmatpush.bf16.msra.mxu2 %v1656_v6  ;;  %661 = vmatpush.bf16.msra.mxu0 %v1656_v6 }
  0x2f   : > { %1824 = vmatpush.bf16.msra.mxu1 %v1656_v6  ;;  %1826 = vmatpush.bf16.msra.mxu3 %v1656_v6 }
  0x32   : > { %1828 = vmatpush.bf16.msra.mxu2 %v1655_v7  ;;  %662 = vmatpush.bf16.msra.mxu0 %v1655_v7 }
  0x33   : > { %1827 = vmatpush.bf16.msra.mxu1 %v1655_v7  ;;  %1829 = vmatpush.bf16.msra.mxu3 %v1655_v7 }
  0x35   : > { %723 = vmatmul.bf16.vlgmr.msra.gmra.mxu2 %v1643_v8  ;;  %663 = vmatmul.bf16.vlgmr.msra.gmra.mxu0 %v1631_v9 }
  0x36   : > { %693 = vmatmul.bf16.vlgmr.msra.gmra.mxu1 %v1637_v10  ;;  %758 = vmatmul.bf16.vlgmr.msra.gmra.mxu3 %v1650_v11 }
  0x45   : > { %728 = vmatmul.bf16.gmra.mxu2 %v1644_v12  ;;  %668 = vmatmul.bf16.gmra.mxu0 %v1632_v13 }
  0x46   : > { %698 = vmatmul.bf16.gmra.mxu1 %v1638_v14  ;;  %763 = vmatmul.bf16.gmra.mxu3 %v1651_v15 }
  0x55   : > { %733 = vmatmul.bf16.gmra.mxu2 %v1645_v16  ;;  %673 = vmatmul.bf16.gmra.mxu0 %v1633_v17 }
  0x56   : > { %703 = vmatmul.bf16.gmra.mxu1 %v1639_v18  ;;  %768 = vmatmul.bf16.gmra.mxu3 %v1652_v19 }
  0x65   : > { %738 = vmatmul.bf16.gmra.mxu2 %v1646_v20  ;;  %678 = vmatmul.bf16.gmra.mxu0 %v1634_v21 }
  0x66   : > { %708 = vmatmul.bf16.gmra.mxu1 %v1640_v22  ;;  %773 = vmatmul.bf16.gmra.mxu3 %v1653_v23 }
  0x75   : > { %743 = vmatmul.bf16.gmra.mxu2 %v1647_v24  ;;  %683 = vmatmul.bf16.gmra.mxu0 %v1635_v25 }
  0x76   : > { %713 = vmatmul.bf16.gmra.mxu1 %v1641_v26  ;;  %778 = vmatmul.bf16.gmra.mxu3 %v1654_v27 }
  0x85   : > { %748 = vmatmul.bf16.gmra.mxu2 %v1648_v30  ;;  %688 = vmatmul.bf16.gmra.mxu0 %v1636_v31 }
  0x86   : > { %718 = vmatmul.bf16.gmra.mxu1 %v1642_v32  ;;  %783 = vmatmul.bf16.gmra.mxu3 %v581_v33 }
  0x95   : > { %753 = vmatmul.bf16.gmra.mxu2 %v1649_v34 }
  0xb2   : > { %v664_v35 = vpop.f32.mrf.mxu0 }
  0xb3   : > { %v694_v36 = vpop.f32.mrf.mxu1  ;;  %v942_v38 = vadd.f32 %v2034_v37, %v664_v35 }
  0xb4   : > { %v954_v40 = vadd.f32 %v2034_v37, %v694_v36 }
  0xb5   : > { %v991_v43 = vmax.f32 %v942_v38, 0.0 }
  0xb6   : > { %v1003_v46 = vmax.f32 %v954_v40, 0.0 }
  0xb8   : > { %v724_v39 = vpop.f32.mrf.mxu2 }
  0xb9   : > { %v759_v41 = vpop.f32.mrf.mxu3  ;;  %v966_v51 = vadd.f32 %v2034_v37, %v724_v39 }
  0xba   : > { %v666_v42 = vpop.f32.mrf.mxu0  ;;  %v980_v49 = vadd.f32 %v2034_v37, %v759_v41 }
  0xbb   : > { %v943_v44 = vadd.f32 %v2034_v37, %v666_v42  ;;  %v696_v45 = vpop.f32.mrf.mxu1  ;;  %v1015_v60 = vmax.f32 %v966_v51, 0.0 }
  0xbc   : > { %v955_v47 = vadd.f32 %v2034_v37, %v696_v45  ;;  %v1029_v57 = vmax.f32 %v980_v49, 0.0 }
  0xbd   : > { %v992_v48 = vmax.f32 %v943_v44, 0.0 }
  0xbe   : > { %v1004_v50 = vmax.f32 %v955_v47, 0.0 }
  0xbf   : > { %v1666_v52 = vpack.c.bf16 %v992_v48, %v991_v43 }
  0xc0   : > { %v726_v53 = vpop.f32.mrf.mxu2  ;;  %v1696_v54 = vpack.c.bf16 %v1004_v50, %v1003_v46 }
  0xc1   : > { %v967_v55 = vadd.f32 %v2034_v37, %v726_v53  ;;  %1667 = vst [vmem:[%s2044_s12] sm:$0xff] %v1666_v52   ;;  %v761_v56 = vpop.f32.mrf.mxu3 }
  0xc2   : > { %1788 = vst [vmem:[%s2044_s12 + $0x30] sm:$0xff] %v1696_v54   ;;  %v981_v58 = vadd.f32 %v2034_v37, %v761_v56  ;;  %v669_v59 = vpop.f32.mrf.mxu0 }
  0xc3   : > { %v1016_v61 = vmax.f32 %v967_v55, 0.0  ;;  %v699_v62 = vpop.f32.mrf.mxu1  ;;  %v944_v2 = vadd.f32 %v2034_v37, %v669_v59 }
  0xc4   : > { %v1030_v63 = vmax.f32 %v981_v58, 0.0  ;;  %v956_v4 = vadd.f32 %v2034_v37, %v699_v62 }
  0xc5   : > { %v1726_v0 = vpack.c.bf16 %v1016_v61, %v1015_v60  ;;  %v993_v7 = vmax.f32 %v944_v2, 0.0 }
  0xc6   : > { %v1761_v1 = vpack.c.bf16 %v1030_v63, %v1029_v57  ;;  %v1005_v10 = vmax.f32 %v956_v4, 0.0 }
  0xc7   : > { %1794 = vst [vmem:[%s2044_s12 + $0x60] sm:$0xff] %v1726_v0  }
  0xc8   : > { %v729_v3 = vpop.f32.mrf.mxu2  ;;  %1801 = vst [vmem:[%s2044_s12 + $0x98] sm:$0xff] %v1761_v1  }
  0xc9   : > { %v764_v5 = vpop.f32.mrf.mxu3  ;;  %v968_v15 = vadd.f32 %v2034_v37, %v729_v3 }
  0xca   : > { %v671_v6 = vpop.f32.mrf.mxu0  ;;  %v982_v13 = vadd.f32 %v2034_v37, %v764_v5 }
  0xcb   : > { %v945_v8 = vadd.f32 %v2034_v37, %v671_v6  ;;  %v701_v9 = vpop.f32.mrf.mxu1  ;;  %v1017_v24 = vmax.f32 %v968_v15, 0.0 }
  0xcc   : > { %v957_v11 = vadd.f32 %v2034_v37, %v701_v9  ;;  %v1031_v21 = vmax.f32 %v982_v13, 0.0 }
  0xcd   : > { %v994_v12 = vmax.f32 %v945_v8, 0.0 }
  0xce   : > { %v1006_v14 = vmax.f32 %v957_v11, 0.0 }
  0xcf   : > { %v1671_v16 = vpack.c.bf16 %v994_v12, %v993_v7 }
  0xd0   : > { %v731_v17 = vpop.f32.mrf.mxu2  ;;  %v1701_v18 = vpack.c.bf16 %v1006_v14, %v1005_v10 }
  0xd1   : > { %v969_v19 = vadd.f32 %v2034_v37, %v731_v17  ;;  %1783 = vst [vmem:[%s2044_s12 + $0x8] sm:$0xff] %v1671_v16   ;;  %v766_v20 = vpop.f32.mrf.mxu3 }
  0xd2   : > { %1789 = vst [vmem:[%s2044_s12 + $0x38] sm:$0xff] %v1701_v18   ;;  %v983_v22 = vadd.f32 %v2034_v37, %v766_v20  ;;  %v674_v23 = vpop.f32.mrf.mxu0 }
  0xd3   : > { %v1018_v25 = vmax.f32 %v969_v19, 0.0  ;;  %v704_v26 = vpop.f32.mrf.mxu1  ;;  %v946_v30 = vadd.f32 %v2034_v37, %v674_v23 }
  0xd4   : > { %v1032_v27 = vmax.f32 %v983_v22, 0.0  ;;  %v958_v32 = vadd.f32 %v2034_v37, %v704_v26 }
  0xd5   : > { %v1731_v28 = vpack.c.bf16 %v1018_v25, %v1017_v24  ;;  %v995_v35 = vmax.f32 %v946_v30, 0.0 }
  0xd6   : > { %v1766_v29 = vpack.c.bf16 %v1032_v27, %v1031_v21  ;;  %v1007_v39 = vmax.f32 %v958_v32, 0.0 }
  0xd7   : > { %1795 = vst [vmem:[%s2044_s12 + $0x68] sm:$0xff] %v1731_v28  }
  0xd8   : > { %v734_v31 = vpop.f32.mrf.mxu2  ;;  %1802 = vst [vmem:[%s2044_s12 + $0xa0] sm:$0xff] %v1766_v29  }
  0xd9   : > { %v769_v33 = vpop.f32.mrf.mxu3  ;;  %v970_v44 = vadd.f32 %v2034_v37, %v734_v31 }
  0xda   : > { %v676_v34 = vpop.f32.mrf.mxu0  ;;  %v984_v42 = vadd.f32 %v2034_v37, %v769_v33 }
  0xdb   : > { %v947_v36 = vadd.f32 %v2034_v37, %v676_v34  ;;  %v706_v38 = vpop.f32.mrf.mxu1  ;;  %v1019_v53 = vmax.f32 %v970_v44, 0.0 }
  0xdc   : > { %v959_v40 = vadd.f32 %v2034_v37, %v706_v38  ;;  %v1033_v50 = vmax.f32 %v984_v42, 0.0 }
  0xdd   : > { %v996_v41 = vmax.f32 %v947_v36, 0.0 }
  0xde   : > { %v1008_v43 = vmax.f32 %v959_v40, 0.0 }
  0xdf   : > { %v1676_v45 = vpack.c.bf16 %v996_v41, %v995_v35 }
  0xe0   : > { %v736_v46 = vpop.f32.mrf.mxu2  ;;  %v1706_v47 = vpack.c.bf16 %v1008_v43, %v1007_v39 }
  0xe1   : > { %v971_v48 = vadd.f32 %v2034_v37, %v736_v46  ;;  %1784 = vst [vmem:[%s2044_s12 + $0x10] sm:$0xff] %v1676_v45   ;;  %v771_v49 = vpop.f32.mrf.mxu3 }
  0xe2   : > { %1790 = vst [vmem:[%s2044_s12 + $0x40] sm:$0xff] %v1706_v47   ;;  %v985_v51 = vadd.f32 %v2034_v37, %v771_v49  ;;  %v679_v52 = vpop.f32.mrf.mxu0 }
  0xe3   : > { %v1020_v54 = vmax.f32 %v971_v48, 0.0  ;;  %v709_v55 = vpop.f32.mrf.mxu1  ;;  %v948_v59 = vadd.f32 %v2034_v37, %v679_v52 }
  0xe4   : > { %v1034_v56 = vmax.f32 %v985_v51, 0.0  ;;  %v960_v61 = vadd.f32 %v2034_v37, %v709_v55 }
  0xe5   : > { %v1736_v57 = vpack.c.bf16 %v1020_v54, %v1019_v53  ;;  %v997_v0 = vmax.f32 %v948_v59, 0.0 }
  0xe6   : > { %v1771_v58 = vpack.c.bf16 %v1034_v56, %v1033_v50  ;;  %v1009_v3 = vmax.f32 %v960_v61, 0.0 }
  0xe7   : > { %1796 = vst [vmem:[%s2044_s12 + $0x70] sm:$0xff] %v1736_v57  }
  0xe8   : > { %v739_v60 = vpop.f32.mrf.mxu2  ;;  %1803 = vst [vmem:[%s2044_s12 + $0xa8] sm:$0xff] %v1771_v58  }
  0xe9   : > { %v774_v62 = vpop.f32.mrf.mxu3  ;;  %v972_v8 = vadd.f32 %v2034_v37, %v739_v60 }
  0xea   : > { %v681_v63 = vpop.f32.mrf.mxu0  ;;  %v986_v6 = vadd.f32 %v2034_v37, %v774_v62 }
  0xeb   : > { %v949_v1 = vadd.f32 %v2034_v37, %v681_v63  ;;  %v711_v2 = vpop.f32.mrf.mxu1  ;;  %v1021_v17 = vmax.f32 %v972_v8, 0.0 }
  0xec   : > { %v961_v4 = vadd.f32 %v2034_v37, %v711_v2  ;;  %v1035_v14 = vmax.f32 %v986_v6, 0.0 }
  0xed   : > { %v998_v5 = vmax.f32 %v949_v1, 0.0 }
  0xee   : > { %v1010_v7 = vmax.f32 %v961_v4, 0.0 }
  0xef   : > { %v1681_v9 = vpack.c.bf16 %v998_v5, %v997_v0 }
  0xf0   : > { %v741_v10 = vpop.f32.mrf.mxu2  ;;  %v1711_v11 = vpack.c.bf16 %v1010_v7, %v1009_v3 }
  0xf1   : > { %v973_v12 = vadd.f32 %v2034_v37, %v741_v10  ;;  %1785 = vst [vmem:[%s2044_s12 + $0x18] sm:$0xff] %v1681_v9   ;;  %v776_v13 = vpop.f32.mrf.mxu3 }
  0xf2   : > { %1791 = vst [vmem:[%s2044_s12 + $0x48] sm:$0xff] %v1711_v11   ;;  %v987_v15 = vadd.f32 %v2034_v37, %v776_v13  ;;  %v684_v16 = vpop.f32.mrf.mxu0 }
  0xf3   : > { %v1022_v18 = vmax.f32 %v973_v12, 0.0  ;;  %v714_v19 = vpop.f32.mrf.mxu1  ;;  %v950_v23 = vadd.f32 %v2034_v37, %v684_v16 }
  0xf4   : > { %v1036_v20 = vmax.f32 %v987_v15, 0.0  ;;  %v962_v25 = vadd.f32 %v2034_v37, %v714_v19  ;;  %v1167_v19 = vld [vmem:[%s2044_s12] sm:$0xf] (%p1965_p3) }
  0xf5   : > { %v1741_v21 = vpack.c.bf16 %v1022_v18, %v1021_v17  ;;  %v999_v28 = vmax.f32 %v950_v23, 0.0  ;;  %1168 = vst [vmem:[%s2121_s23] sm:$0xf] (%p1965_p3), %v1167_v19  ;;  %v1177_v23 = vld [vmem:[%s2044_s12 + $0x14] sm:$0xf] (%p1965_p3) }
  0xf6   : > { %v1776_v22 = vpack.c.bf16 %v1036_v20, %v1035_v14  ;;  %v1011_v31 = vmax.f32 %v962_v25, 0.0  ;;  %v1171_v20 = vld [vmem:[%s2044_s12 + $0x8] sm:$0xf] (%p1965_p3)  ;;  %1178 = vst [vmem:[%s2121_s23 + $0x28] sm:$0xf] (%p1965_p3), %v1177_v23 }
  0xf7   : > { %1797 = vst [vmem:[%s2044_s12 + $0x78] sm:$0xff] %v1741_v21   ;;  %v1173_v21 = vld [vmem:[%s2044_s12 + $0xc] sm:$0xf] (%p1965_p3) }
  0xf8   : > { %v744_v24 = vpop.f32.mrf.mxu2  ;;  %1804 = vst [vmem:[%s2044_s12 + $0xb0] sm:$0xff] %v1776_v22   ;;  %v1175_v22 = vld [vmem:[%s2044_s12 + $0x10] sm:$0xf] (%p1965_p3)  ;;  %v1181_v25 = vld [vmem:[%s2044_s12 + $0x1c] sm:$0xf] (%p1965_p3) }
  0xf9   : > { %v779_v26 = vpop.f32.mrf.mxu3  ;;  %v974_v36 = vadd.f32 %v2034_v37, %v744_v24  ;;  %1172 = vst [vmem:[%s2121_s23 + $0x10] sm:$0xf] (%p1965_p3), %v1171_v20  ;;  %v1179_v24 = vld [vmem:[%s2044_s12 + $0x18] sm:$0xf] (%p1965_p3) }
  0xfa   : > { %v686_v27 = vpop.f32.mrf.mxu0  ;;  %v988_v34 = vadd.f32 %v2034_v37, %v779_v26  ;;  %1174 = vst [vmem:[%s2121_s23 + $0x18] sm:$0xf] (%p1965_p3), %v1173_v21 }
  0xfb   : > { %v951_v29 = vadd.f32 %v2034_v37, %v686_v27  ;;  %v716_v30 = vpop.f32.mrf.mxu1  ;;  %v1023_v46 = vmax.f32 %v974_v36, 0.0  ;;  %1176 = vst [vmem:[%s2121_s23 + $0x20] sm:$0xf] (%p1965_p3), %v1175_v22  ;;  %v1203_v36 = vld [vmem:[%s2044_s12 + $0x48] sm:$0xf] (%p1965_p3) }
  0xfc   : > { %v963_v32 = vadd.f32 %v2034_v37, %v716_v30  ;;  %v1037_v43 = vmax.f32 %v988_v34, 0.0  ;;  %1180 = vst [vmem:[%s2121_s23 + $0x30] sm:$0xf] (%p1965_p3), %v1179_v24  ;;  %v1191_v30 = vld [vmem:[%s2044_s12 + $0x30] sm:$0xf] (%p1965_p3) }
  0xfd   : > { %v1000_v33 = vmax.f32 %v951_v29, 0.0  ;;  %1182 = vst [vmem:[%s2121_s23 + $0x38] sm:$0xf] (%p1965_p3), %v1181_v25  ;;  %v1199_v34 = vld [vmem:[%s2044_s12 + $0x40] sm:$0xf] (%p1965_p3) }
  0xfe   : > { %v1012_v35 = vmax.f32 %v963_v32, 0.0  ;;  %v1195_v32 = vld [vmem:[%s2044_s12 + $0x38] sm:$0xf] (%p1965_p3)  ;;  %1192 = vst [vmem:[%s2121_s23 + $0x60] sm:$0xf] (%p1965_p3), %v1191_v30 }
  0xff   : > { %v1686_v38 = vpack.c.bf16 %v1000_v33, %v999_v28  ;;  %v1197_v33 = vld [vmem:[%s2044_s12 + $0x3c] sm:$0xf] (%p1965_p3)  ;;  %1196 = vst [vmem:[%s2121_s23 + $0x70] sm:$0xf] (%p1965_p3), %v1195_v32 }
 0x100   : > { %v746_v39 = vpop.f32.mrf.mxu2  ;;  %v1716_v40 = vpack.c.bf16 %v1012_v35, %v1011_v31  ;;  %v1193_v31 = vld [vmem:[%s2044_s12 + $0x34] sm:$0xf] (%p1965_p3)  ;;  %v1201_v35 = vld [vmem:[%s2044_s12 + $0x44] sm:$0xf] (%p1965_p3)  ;;  %1198 = vst [vmem:[%s2121_s23 + $0x78] sm:$0xf] (%p1965_p3), %v1197_v33 }
 0x101   : > { %v975_v41 = vadd.f32 %v2034_v37, %v746_v39  ;;  %1786 = vst [vmem:[%s2044_s12 + $0x20] sm:$0xff] %v1686_v38   ;;  %v781_v42 = vpop.f32.mrf.mxu3  ;;  %v1205_v38 = vld [vmem:[%s2044_s12 + $0x4c] sm:$0xf] (%p1965_p3) }
 0x102   : > { %1792 = vst [vmem:[%s2044_s12 + $0x50] sm:$0xff] %v1716_v40   ;;  %v989_v44 = vadd.f32 %v2034_v37, %v781_v42  ;;  %v689_v45 = vpop.f32.mrf.mxu0 }
 0x103   : > { %v1024_v47 = vmax.f32 %v975_v41, 0.0  ;;  %v719_v48 = vpop.f32.mrf.mxu1  ;;  %v952_v52 = vadd.f32 %v2034_v37, %v689_v45  ;;  %1194 = vst [vmem:[%s2121_s23 + $0x68] sm:$0xf] (%p1965_p3), %v1193_v31  ;;  %v1219_v45 = vld [vmem:[%s2044_s12 + $0x68] sm:$0xf] (%p1965_p3) }
 0x104   : > { %v1038_v49 = vmax.f32 %v989_v44, 0.0  ;;  %v964_v54 = vadd.f32 %v2034_v37, %v719_v48  ;;  %1200 = vst [vmem:[%s2121_s23 + $0x80] sm:$0xf] (%p1965_p3), %v1199_v34  ;;  %v1217_v44 = vld [vmem:[%s2044_s12 + $0x64] sm:$0xf] (%p1965_p3) }
 0x105   : > { %v1746_v50 = vpack.c.bf16 %v1024_v47, %v1023_v46  ;;  %v1001_v58 = vmax.f32 %v952_v52, 0.0  ;;  %1202 = vst [vmem:[%s2121_s23 + $0x88] sm:$0xf] (%p1965_p3), %v1201_v35  ;;  %v1221_v46 = vld [vmem:[%s2044_s12 + $0x6c] sm:$0xf] (%p1965_p3) }
 0x106   : > { %v1781_v51 = vpack.c.bf16 %v1038_v49, %v1037_v43  ;;  %v1013_v61 = vmax.f32 %v964_v54, 0.0  ;;  %1204 = vst [vmem:[%s2121_s23 + $0x90] sm:$0xf] (%p1965_p3), %v1203_v36  ;;  %v1215_v43 = vld [vmem:[%s2044_s12 + $0x60] sm:$0xf] (%p1965_p3) }
 0x107   : > { %1798 = vst [vmem:[%s2044_s12 + $0x80] sm:$0xff] %v1746_v50   ;;  %v1223_v47 = vld [vmem:[%s2044_s12 + $0x70] sm:$0xf] (%p1965_p3)  ;;  %v1225_v48 = vld [vmem:[%s2044_s12 + $0x74] sm:$0xf] (%p1965_p3) }
 0x108   : > { %v749_v53 = vpop.f32.mrf.mxu2  ;;  %1805 = vst [vmem:[%s2044_s12 + $0xb8] sm:$0xff] %v1781_v51   ;;  %v1183_v26 = vld [vmem:[%s2044_s12 + $0x20] sm:$0xf] (%p1965_p3)  ;;  %v1185_v27 = vld [vmem:[%s2044_s12 + $0x24] sm:$0xf] (%p1965_p3) }
 0x109   : > { %v784_v55 = vpop.f32.mrf.mxu3  ;;  %v976_v3 = vadd.f32 %v2034_v37, %v749_v53  ;;  %1184 = vst [vmem:[%s2121_s23 + $0x40] sm:$0xf] (%p1965_p3), %v1183_v26  ;;  %v1207_v39 = vld [vmem:[%s2044_s12 + $0x50] sm:$0xf] (%p1965_p3)  ;;  %v1209_v40 = vld [vmem:[%s2044_s12 + $0x54] sm:$0xf] (%p1965_p3) }
 0x10a   : > { %v990_v56 = vadd.f32 %v2034_v37, %v784_v55  ;;  %v691_v57 = vpop.f32.mrf.mxu0  ;;  %1186 = vst [vmem:[%s2121_s23 + $0x48] sm:$0xf] (%p1965_p3), %v1185_v27  ;;  %v1227_v49 = vld [vmem:[%s2044_s12 + $0x78] sm:$0xf] (%p1965_p3)  ;;  %v1229_v50 = vld [vmem:[%s2044_s12 + $0x7c] sm:$0xf] (%p1965_p3) }
 0x10b   : > { %v953_v59 = vadd.f32 %v2034_v37, %v691_v57  ;;  %v721_v60 = vpop.f32.mrf.mxu1  ;;  %v1025_v9 = vmax.f32 %v976_v3, 0.0  ;;  %1206 = vst [vmem:[%s2121_s23 + $0x98] sm:$0xf] (%p1965_p3), %v1205_v38  ;;  %v1243_v57 = vld [vmem:[%s2044_s12 + $0x98] sm:$0xf] (%p1965_p3) }
 0x10c   : > { %v1039_v62 = vmax.f32 %v990_v56, 0.0  ;;  %v965_v63 = vadd.f32 %v2034_v37, %v721_v60  ;;  %1208 = vst [vmem:[%s2121_s23 + $0xa0] sm:$0xf] (%p1965_p3), %v1207_v39  ;;  %v1249_v60 = vld [vmem:[%s2044_s12 + $0xa4] sm:$0xf] (%p1965_p3) }
 0x10d   : > { %v1002_v0 = vmax.f32 %v953_v59, 0.0  ;;  %1210 = vst [vmem:[%s2121_s23 + $0xa8] sm:$0xf] (%p1965_p3), %v1209_v40  ;;  %v1247_v59 = vld [vmem:[%s2044_s12 + $0xa0] sm:$0xf] (%p1965_p3) }
 0x10e   : > { %v1088_v1 = vpack.c.bf16 %v1039_v62, %v1039_v62  ;;  %v1014_v2 = vmax.f32 %v965_v63, 0.0  ;;  %1216 = vst [vmem:[%s2121_s23 + $0xc0] sm:$0xf] (%p1965_p3), %v1215_v43  ;;  %v1231_v51 = vld [vmem:[%s2044_s12 + $0x80] sm:$0xf] (%p1965_p3) }
 0x10f   : > { %v1691_v4 = vpack.c.bf16 %v1002_v0, %v1001_v58  ;;  %1218 = vst [vmem:[%s2121_s23 + $0xc8] sm:$0xf] (%p1965_p3), %v1217_v44  ;;  %v1233_v52 = vld [vmem:[%s2044_s12 + $0x84] sm:$0xf] (%p1965_p3)  ;;  %v1245_v58 = vld [vmem:[%s2044_s12 + $0x9c] sm:$0xf] (%p1965_p3) }
 0x110   : > { %v751_v5 = vpop.f32.mrf.mxu2  ;;  %1137 = vst [vmem:[%s2044_s12 + $0xc0] sm:$0xf] %v1088_v1  ;;  %v1721_v6 = vpack.c.bf16 %v1014_v2, %v1013_v61  ;;  %v1251_v61 = vld [vmem:[%s2044_s12 + $0xa8] sm:$0xf] (%p1965_p3)  ;;  %v1253_v62 = vld [vmem:[%s2044_s12 + $0xac] sm:$0xf] (%p1965_p3) }
 0x111   : > { %v977_v7 = vadd.f32 %v2034_v37, %v751_v5  ;;  %1787 = vst [vmem:[%s2044_s12 + $0x28] sm:$0xff] %v1691_v4   ;;  %v786_v8 = vpop.f32.mrf.mxu3  ;;  %v1255_v63 = vld [vmem:[%s2044_s12 + $0xb0] sm:$0xf] (%p1965_p3)  ;;  %v1257_v0 = vld [vmem:[%s2044_s12 + $0xb4] sm:$0xf] (%p1965_p3) }
 0x112   : > { %1793 = vst [vmem:[%s2044_s12 + $0x58] sm:$0xff] %v1721_v6   ;;  %v1259_v1 = vld [vmem:[%s2044_s12 + $0xb8] sm:$0xf] (%p1965_p3)  ;;  %v1261_v2 = vld [vmem:[%s2044_s12 + $0xbc] sm:$0xf] (%p1965_p3) }
 0x113   : > { %v1026_v10 = vmax.f32 %v977_v7, 0.0  ;;  %1220 = vst [vmem:[%s2121_s23 + $0xd0] sm:$0xf] (%p1965_p3), %v1219_v45 }
 0x114   : > { %1222 = vst [vmem:[%s2121_s23 + $0xd8] sm:$0xf] (%p1965_p3), %v1221_v46 }
 0x115   : > { %v1751_v11 = vpack.c.bf16 %v1026_v10, %v1025_v9  ;;  %1224 = vst [vmem:[%s2121_s23 + $0xe0] sm:$0xf] (%p1965_p3), %v1223_v47 }
 0x116   : > { %1226 = vst [vmem:[%s2121_s23 + $0xe8] sm:$0xf] (%p1965_p3), %v1225_v48 }
 0x117   : > { %1799 = vst [vmem:[%s2044_s12 + $0x88] sm:$0xff] %v1751_v11   ;;  %v1263_v3 = vld [vmem:[%s2044_s12 + $0xc0] sm:$0xf] (%p1965_p3) }
 0x118   : > { %v754_v12 = vpop.f32.mrf.mxu2  ;;  %v1187_v28 = vld [vmem:[%s2044_s12 + $0x28] sm:$0xf] (%p1965_p3)  ;;  %v1189_v29 = vld [vmem:[%s2044_s12 + $0x2c] sm:$0xf] (%p1965_p3)  ;;  %1228 = vst [vmem:[%s2121_s23 + $0xf0] sm:$0xf] (%p1965_p3), %v1227_v49 }
 0x119   : > { %v978_v13 = vadd.f32 %v2034_v37, %v754_v12  ;;  %1188 = vst [vmem:[%s2121_s23 + $0x50] sm:$0xf] (%p1965_p3), %v1187_v28  ;;  %v1211_v41 = vld [vmem:[%s2044_s12 + $0x58] sm:$0xf] (%p1965_p3)  ;;  %v1213_v42 = vld [vmem:[%s2044_s12 + $0x5c] sm:$0xf] (%p1965_p3) }
 0x11a   : > { %1190 = vst [vmem:[%s2121_s23 + $0x58] sm:$0xf] (%p1965_p3), %v1189_v29 }
 0x11b   : > { %v1027_v16 = vmax.f32 %v978_v13, 0.0  ;;  %1212 = vst [vmem:[%s2121_s23 + $0xb0] sm:$0xf] (%p1965_p3), %v1211_v41 }
 0x11c   : > { %1214 = vst [vmem:[%s2121_s23 + $0xb8] sm:$0xf] (%p1965_p3), %v1213_v42 }
 0x11d   : > { %1230 = vst [vmem:[%s2121_s23 + $0xf8] sm:$0xf] (%p1965_p3), %v1229_v50 }
 0x11e   : > { %v1235_v53 = vld [vmem:[%s2044_s12 + $0x88] sm:$0xf] (%p1965_p3)  ;;  %1232 = vst [vmem:[%s2121_s23 + $0x100] sm:$0xf] (%p1965_p3), %v1231_v51  ;;  %v1237_v54 = vld [vmem:[%s2044_s12 + $0x8c] sm:$0xf] (%p1965_p3) }
 0x11f   : > { %1234 = vst [vmem:[%s2121_s23 + $0x108] sm:$0xf] (%p1965_p3), %v1233_v52 }
 0x120   : > { %v756_v14 = vpop.f32.mrf.mxu2  ;;  %1236 = vst [vmem:[%s2121_s23 + $0x110] sm:$0xf] (%p1965_p3), %v1235_v53 }
 0x121   : > { %v979_v15 = vadd.f32 %v2034_v37, %v756_v14  ;;  %v1169_v37 = vld [vmem:[%s2044_s12 + $0x4] sm:$0xf] (%p1965_p3)  ;;  %1238 = vst [vmem:[%s2121_s23 + $0x118] sm:$0xf] (%p1965_p3), %v1237_v54 }
 0x122   : > { %1170 = vst [vmem:[%s2121_s23 + $0x8] sm:$0xf] (%p1965_p3), %v1169_v37 }
 0x123   : > { %v1028_v17 = vmax.f32 %v979_v15, 0.0  ;;  %1144 = sbr.rel (!%p1965_p3) target bundleno = 305 (0x131), region = 44  ;;  %1244 = vst [vmem:[%s2121_s23 + $0x130] sm:$0xf] (%p1965_p3), %v1243_v57 }
 0x124   : > { %1246 = vst [vmem:[%s2121_s23 + $0x138] sm:$0xf] (%p1965_p3), %v1245_v58 }
 0x125   : > { %v1756_v18 = vpack.c.bf16 %v1028_v17, %v1027_v16  ;;  %1248 = vst [vmem:[%s2121_s23 + $0x140] sm:$0xf] (%p1965_p3), %v1247_v59 }
 0x126   : > { %1250 = vst [vmem:[%s2121_s23 + $0x148] sm:$0xf] (%p1965_p3), %v1249_v60 }
 0x127   : > { %1800 = vst [vmem:[%s2044_s12 + $0x90] sm:$0xff] %v1756_v18  }
 0x128   : > { %1252 = vst [vmem:[%s2121_s23 + $0x150] sm:$0xf] %v1251_v61 }
 0x129   : > { %1254 = vst [vmem:[%s2121_s23 + $0x158] sm:$0xf] %v1253_v62 }
 0x12a   : > { %1256 = vst [vmem:[%s2121_s23 + $0x160] sm:$0xf] %v1255_v63 }
 0x12b   : > { %1258 = vst [vmem:[%s2121_s23 + $0x168] sm:$0xf] %v1257_v0 }
 0x12c   : > { %1260 = vst [vmem:[%s2121_s23 + $0x170] sm:$0xf] %v1259_v1 }
 0x12d   : > { %1262 = vst [vmem:[%s2121_s23 + $0x178] sm:$0xf] %v1261_v2 }
 0x12e   : > { %v1239_v55 = vld [vmem:[%s2044_s12 + $0x90] sm:$0xf]  ;;  %v1241_v56 = vld [vmem:[%s2044_s12 + $0x94] sm:$0xf]  ;;  %1264 = vst [vmem:[%s2121_s23 + $0x180] sm:$0xf] %v1263_v3 }
 0x12f   : > { %1240 = vst [vmem:[%s2121_s23 + $0x120] sm:$0xf] %v1239_v55 }
 0x130   : > { %1242 = vst [vmem:[%s2121_s23 + $0x128] sm:$0xf] %v1241_v56 }
 0x131 PF: > { %s13_s16 = sadd.s32 1, %s1911_s16   ;;  %s2239_s12 = smov %s1899_s13 }
 0x132   : > { %p10_p9 = scmp.ge.s32.totalorder %s13_s16, 4   ;;  %s2240_s13 = smov %s1974_s22 }
 0x133   : > { %s2241_s14 = smov %s1907_s15  ;;  %s2242_s15 = smov %s2244_s18 }
 0x134   :  { %12 = sbr.rel (!%p10_p9) target bundleno = 3 (0x3), region = 117 }

// kernel: _lambda_.21
= control target key start
LH: loop header
LB: loop body
LE: loop exit
PB: predicated region body
PF: predicated region fallthrough
CT: control target
= control target key end

     0   :  { %s1438_s1 = inlined_call_operand.vmem [shape: bf16[1,128,128], index: 1, kind: input, shape index: {}]   ;;  %s1439_s2 = inlined_call_operand.vmem [shape: f32[1,128], index: 2, kind: input, shape index: {}]   ;;  %s1440_s0 = inlined_call_operand.vmem [shape: bf16[1,392,128], index: 0, kind: input, shape index: {}]   ;;  %s1441_s3 = inlined_call_operand.vmem [shape: bf16[392,128], index: 3, kind: output, shape index: {}]  }
   0x1   :  { %v1021_v0 = vld [vmem:[%s1438_s1 + $0x38] sm:$0xff]  ;;  %v1020_v1 = vld [vmem:[%s1438_s1 + $0x30] sm:$0xff]  ;;  %v1019_v2 = vld [vmem:[%s1438_s1 + $0x28] sm:$0xff] }
   0x2   :  { %1166 = vmatpush.bf16.msra.mxu2 %v1021_v0  ;;  %1167 = vmatpush.bf16.msra.mxu3 %v1021_v0  ;;  %v1018_v3 = vld [vmem:[%s1438_s1 + $0x20] sm:$0xff]  ;;  %v1017_v4 = vld [vmem:[%s1438_s1 + $0x18] sm:$0xff]  ;;  %v1016_v5 = vld [vmem:[%s1438_s1 + $0x10] sm:$0xff] }
   0x3   :  { %402 = vmatpush.bf16.msra.mxu0 %v1021_v0  ;;  %1165 = vmatpush.bf16.msra.mxu1 %v1021_v0  ;;  %v1015_v6 = vld [vmem:[%s1438_s1 + $0x8] sm:$0xff]  ;;  %v1014_v7 = vld [vmem:[%s1438_s1] sm:$0xff]  ;;  %v1009_v9 = vld [vmem:[%s1440_s0 + $0x98] sm:$0xff] }
   0x4   :  { %v1002_v8 = vld [vmem:[%s1440_s0 + $0x60] sm:$0xff]  ;;  %v996_v11 = vld [vmem:[%s1440_s0 + $0x30] sm:$0xff]  ;;  %v1003_v12 = vld [vmem:[%s1440_s0 + $0x68] sm:$0xff] }
   0x5   :  { %v990_v10 = vld [vmem:[%s1440_s0] sm:$0xff]  ;;  %v991_v14 = vld [vmem:[%s1440_s0 + $0x8] sm:$0xff]  ;;  %v997_v15 = vld [vmem:[%s1440_s0 + $0x38] sm:$0xff] }
   0x6   :  { %1169 = vmatpush.bf16.msra.mxu2 %v1020_v1  ;;  %1170 = vmatpush.bf16.msra.mxu3 %v1020_v1  ;;  %v1010_v13 = vld [vmem:[%s1440_s0 + $0xa0] sm:$0xff]  ;;  %v1004_v16 = vld [vmem:[%s1440_s0 + $0x70] sm:$0xff]  ;;  %v1011_v17 = vld [vmem:[%s1440_s0 + $0xa8] sm:$0xff] }
   0x7   :  { %403 = vmatpush.bf16.msra.mxu0 %v1020_v1  ;;  %1168 = vmatpush.bf16.msra.mxu1 %v1020_v1  ;;  %v992_v18 = vld [vmem:[%s1440_s0 + $0x10] sm:$0xff]  ;;  %v998_v19 = vld [vmem:[%s1440_s0 + $0x40] sm:$0xff]  ;;  %v1005_v20 = vld [vmem:[%s1440_s0 + $0x78] sm:$0xff] }
   0x8   :  { %v1012_v21 = vld [vmem:[%s1440_s0 + $0xb0] sm:$0xff]  ;;  %v993_v22 = vld [vmem:[%s1440_s0 + $0x18] sm:$0xff]  ;;  %v999_v23 = vld [vmem:[%s1440_s0 + $0x48] sm:$0xff] }
   0x9   :  { %v1006_v24 = vld [vmem:[%s1440_s0 + $0x80] sm:$0xff]  ;;  %v1013_v25 = vld [vmem:[%s1440_s0 + $0xb8] sm:$0xff]  ;;  %v1000_v27 = vld [vmem:[%s1440_s0 + $0x50] sm:$0xff] }
   0xa   :  { %1172 = vmatpush.bf16.msra.mxu2 %v1019_v2  ;;  %1173 = vmatpush.bf16.msra.mxu3 %v1019_v2  ;;  %v994_v26 = vld [vmem:[%s1440_s0 + $0x20] sm:$0xff]  ;;  %v1007_v30 = vld [vmem:[%s1440_s0 + $0x88] sm:$0xff]  ;;  %v1001_v33 = vld [vmem:[%s1440_s0 + $0x58] sm:$0xff] }
   0xb   :  { %404 = vmatpush.bf16.msra.mxu0 %v1019_v2  ;;  %1171 = vmatpush.bf16.msra.mxu1 %v1019_v2  ;;  %v189_v28 = vld [vmem:[%s1440_s0 + $0xc0] sm:$0xf]  ;;  %v995_v32 = vld [vmem:[%s1440_s0 + $0x28] sm:$0xff]  ;;  %v1008_v34 = vld [vmem:[%s1440_s0 + $0x90] sm:$0xff] }
   0xc   :  { %v303_v29 = vunpack.c.l.b16 %v189_v28  ;;  %v1312_v38 = vld [vmem:[%s1439_s2] ss:$0 sm:$0xff] }
   0xe   :  { %1175 = vmatpush.bf16.msra.mxu2 %v1018_v3  ;;  %1176 = vmatpush.bf16.msra.mxu3 %v1018_v3  ;;  %v328_v31 = vpack.c.b16 %v303_v29, %v303_v29 }
   0xf   :  { %405 = vmatpush.bf16.msra.mxu0 %v1018_v3  ;;  %1174 = vmatpush.bf16.msra.mxu1 %v1018_v3 }
  0x12   :  { %1178 = vmatpush.bf16.msra.mxu2 %v1017_v4  ;;  %1179 = vmatpush.bf16.msra.mxu3 %v1017_v4 }
  0x13   :  { %406 = vmatpush.bf16.msra.mxu0 %v1017_v4  ;;  %1177 = vmatpush.bf16.msra.mxu1 %v1017_v4 }
  0x16   :  { %1181 = vmatpush.bf16.msra.mxu2 %v1016_v5  ;;  %1182 = vmatpush.bf16.msra.mxu3 %v1016_v5 }
  0x17   :  { %407 = vmatpush.bf16.msra.mxu0 %v1016_v5  ;;  %1180 = vmatpush.bf16.msra.mxu1 %v1016_v5 }
  0x1a   :  { %1184 = vmatpush.bf16.msra.mxu2 %v1015_v6  ;;  %1185 = vmatpush.bf16.msra.mxu3 %v1015_v6 }
  0x1b   :  { %408 = vmatpush.bf16.msra.mxu0 %v1015_v6  ;;  %1183 = vmatpush.bf16.msra.mxu1 %v1015_v6 }
  0x1e   :  { %1187 = vmatpush.bf16.msra.mxu2 %v1014_v7  ;;  %1188 = vmatpush.bf16.msra.mxu3 %v1014_v7 }
  0x1f   :  { %409 = vmatpush.bf16.msra.mxu0 %v1014_v7  ;;  %1186 = vmatpush.bf16.msra.mxu1 %v1014_v7 }
  0x21   :  { %470 = vmatmul.bf16.vlgmr.msra.gmra.mxu2 %v1002_v8  ;;  %505 = vmatmul.bf16.vlgmr.msra.gmra.mxu3 %v1009_v9 }
  0x22   :  { %410 = vmatmul.bf16.vlgmr.msra.gmra.mxu0 %v990_v10  ;;  %440 = vmatmul.bf16.vlgmr.msra.gmra.mxu1 %v996_v11 }
  0x31   :  { %475 = vmatmul.bf16.gmra.mxu2 %v1003_v12  ;;  %510 = vmatmul.bf16.gmra.mxu3 %v1010_v13 }
  0x32   :  { %415 = vmatmul.bf16.gmra.mxu0 %v991_v14  ;;  %445 = vmatmul.bf16.gmra.mxu1 %v997_v15 }
  0x41   :  { %480 = vmatmul.bf16.gmra.mxu2 %v1004_v16  ;;  %515 = vmatmul.bf16.gmra.mxu3 %v1011_v17 }
  0x42   :  { %420 = vmatmul.bf16.gmra.mxu0 %v992_v18  ;;  %450 = vmatmul.bf16.gmra.mxu1 %v998_v19 }
  0x51   :  { %485 = vmatmul.bf16.gmra.mxu2 %v1005_v20  ;;  %520 = vmatmul.bf16.gmra.mxu3 %v1012_v21 }
  0x52   :  { %425 = vmatmul.bf16.gmra.mxu0 %v993_v22  ;;  %455 = vmatmul.bf16.gmra.mxu1 %v999_v23 }
  0x61   :  { %490 = vmatmul.bf16.gmra.mxu2 %v1006_v24  ;;  %525 = vmatmul.bf16.gmra.mxu3 %v1013_v25 }
  0x62   :  { %430 = vmatmul.bf16.gmra.mxu0 %v994_v26  ;;  %460 = vmatmul.bf16.gmra.mxu1 %v1000_v27 }
  0x71   :  { %495 = vmatmul.bf16.gmra.mxu2 %v1007_v30  ;;  %530 = vmatmul.bf16.gmra.mxu3 %v328_v31 }
  0x72   :  { %435 = vmatmul.bf16.gmra.mxu0 %v995_v32  ;;  %465 = vmatmul.bf16.gmra.mxu1 %v1001_v33 }
  0x81   :  { %500 = vmatmul.bf16.gmra.mxu2 %v1008_v34 }
  0x9f   :  { %v411_v35 = vpop.f32.mrf.mxu0  ;;  %v441_v36 = vpop.f32.mrf.mxu1 }
  0xa0   :  { %v689_v40 = vadd.f32 %v1312_v38, %v411_v35  ;;  %v701_v41 = vadd.f32 %v1312_v38, %v441_v36 }
  0xa4   :  { %v471_v37 = vpop.f32.mrf.mxu2  ;;  %v506_v39 = vpop.f32.mrf.mxu3 }
  0xa5   :  { %v727_v48 = vadd.f32 %v1312_v38, %v506_v39  ;;  %v713_v51 = vadd.f32 %v1312_v38, %v471_v37 }
  0xa7   :  { %v413_v42 = vpop.f32.mrf.mxu0  ;;  %v443_v43 = vpop.f32.mrf.mxu1 }
  0xa8   :  { %v690_v44 = vadd.f32 %v1312_v38, %v413_v42  ;;  %v702_v45 = vadd.f32 %v1312_v38, %v443_v43 }
  0xaa   :  { %v1025_v46 = vpack.c.bf16 %v690_v44, %v689_v40  ;;  %v1055_v47 = vpack.c.bf16 %v702_v45, %v701_v41 }
  0xac   :  { %v473_v49 = vpop.f32.mrf.mxu2  ;;  %1026 = vst [vmem:[%s1441_s3] sm:$0xff] %v1025_v46   ;;  %v508_v50 = vpop.f32.mrf.mxu3 }
  0xad   :  { %v714_v52 = vadd.f32 %v1312_v38, %v473_v49  ;;  %1147 = vst [vmem:[%s1441_s3 + $0x30] sm:$0xff] %v1055_v47   ;;  %v728_v53 = vadd.f32 %v1312_v38, %v508_v50 }
  0xaf   :  { %v1085_v54 = vpack.c.bf16 %v714_v52, %v713_v51  ;;  %v1120_v55 = vpack.c.bf16 %v728_v53, %v727_v48  ;;  %v416_v56 = vpop.f32.mrf.mxu0  ;;  %v446_v57 = vpop.f32.mrf.mxu1 }
  0xb0   :  { %v691_v60 = vadd.f32 %v1312_v38, %v416_v56  ;;  %v703_v61 = vadd.f32 %v1312_v38, %v446_v57 }
  0xb1   :  { %1153 = vst [vmem:[%s1441_s3 + $0x60] sm:$0xff] %v1085_v54  }
  0xb2   :  { %1160 = vst [vmem:[%s1441_s3 + $0x98] sm:$0xff] %v1120_v55  }
  0xb4   :  { %v476_v58 = vpop.f32.mrf.mxu2  ;;  %v511_v59 = vpop.f32.mrf.mxu3 }
  0xb5   :  { %v729_v4 = vadd.f32 %v1312_v38, %v511_v59  ;;  %v715_v7 = vadd.f32 %v1312_v38, %v476_v58 }
  0xb7   :  { %v418_v62 = vpop.f32.mrf.mxu0  ;;  %v448_v63 = vpop.f32.mrf.mxu1 }
  0xb8   :  { %v692_v0 = vadd.f32 %v1312_v38, %v418_v62  ;;  %v704_v1 = vadd.f32 %v1312_v38, %v448_v63 }
  0xba   :  { %v1030_v2 = vpack.c.bf16 %v692_v0, %v691_v60  ;;  %v1060_v3 = vpack.c.bf16 %v704_v1, %v703_v61 }
  0xbc   :  { %v478_v5 = vpop.f32.mrf.mxu2  ;;  %1142 = vst [vmem:[%s1441_s3 + $0x8] sm:$0xff] %v1030_v2   ;;  %v513_v6 = vpop.f32.mrf.mxu3 }
  0xbd   :  { %v716_v8 = vadd.f32 %v1312_v38, %v478_v5  ;;  %1148 = vst [vmem:[%s1441_s3 + $0x38] sm:$0xff] %v1060_v3   ;;  %v730_v9 = vadd.f32 %v1312_v38, %v513_v6 }
  0xbf   :  { %v1090_v10 = vpack.c.bf16 %v716_v8, %v715_v7  ;;  %v1125_v11 = vpack.c.bf16 %v730_v9, %v729_v4  ;;  %v421_v12 = vpop.f32.mrf.mxu0  ;;  %v451_v13 = vpop.f32.mrf.mxu1 }
  0xc0   :  { %v693_v16 = vadd.f32 %v1312_v38, %v421_v12  ;;  %v705_v17 = vadd.f32 %v1312_v38, %v451_v13 }
  0xc1   :  { %1154 = vst [vmem:[%s1441_s3 + $0x68] sm:$0xff] %v1090_v10  }
  0xc2   :  { %1161 = vst [vmem:[%s1441_s3 + $0xa0] sm:$0xff] %v1125_v11  }
  0xc4   :  { %v481_v14 = vpop.f32.mrf.mxu2  ;;  %v516_v15 = vpop.f32.mrf.mxu3 }
  0xc5   :  { %v731_v24 = vadd.f32 %v1312_v38, %v516_v15  ;;  %v717_v27 = vadd.f32 %v1312_v38, %v481_v14 }
  0xc7   :  { %v423_v18 = vpop.f32.mrf.mxu0  ;;  %v453_v19 = vpop.f32.mrf.mxu1 }
  0xc8   :  { %v694_v20 = vadd.f32 %v1312_v38, %v423_v18  ;;  %v706_v21 = vadd.f32 %v1312_v38, %v453_v19 }
  0xca   :  { %v1035_v22 = vpack.c.bf16 %v694_v20, %v693_v16  ;;  %v1065_v23 = vpack.c.bf16 %v706_v21, %v705_v17 }
  0xcc   :  { %v483_v25 = vpop.f32.mrf.mxu2  ;;  %1143 = vst [vmem:[%s1441_s3 + $0x10] sm:$0xff] %v1035_v22   ;;  %v518_v26 = vpop.f32.mrf.mxu3 }
  0xcd   :  { %v718_v28 = vadd.f32 %v1312_v38, %v483_v25  ;;  %1149 = vst [vmem:[%s1441_s3 + $0x40] sm:$0xff] %v1065_v23   ;;  %v732_v29 = vadd.f32 %v1312_v38, %v518_v26 }
  0xcf   :  { %v1095_v30 = vpack.c.bf16 %v718_v28, %v717_v27  ;;  %v1130_v31 = vpack.c.bf16 %v732_v29, %v731_v24  ;;  %v426_v32 = vpop.f32.mrf.mxu0  ;;  %v456_v33 = vpop.f32.mrf.mxu1 }
  0xd0   :  { %v695_v36 = vadd.f32 %v1312_v38, %v426_v32  ;;  %v707_v37 = vadd.f32 %v1312_v38, %v456_v33 }
  0xd1   :  { %1155 = vst [vmem:[%s1441_s3 + $0x70] sm:$0xff] %v1095_v30  }
  0xd2   :  { %1162 = vst [vmem:[%s1441_s3 + $0xa8] sm:$0xff] %v1130_v31  }
  0xd4   :  { %v486_v34 = vpop.f32.mrf.mxu2  ;;  %v521_v35 = vpop.f32.mrf.mxu3 }
  0xd5   :  { %v733_v45 = vadd.f32 %v1312_v38, %v521_v35  ;;  %v719_v48 = vadd.f32 %v1312_v38, %v486_v34 }
  0xd7   :  { %v428_v39 = vpop.f32.mrf.mxu0  ;;  %v458_v40 = vpop.f32.mrf.mxu1 }
  0xd8   :  { %v696_v41 = vadd.f32 %v1312_v38, %v428_v39  ;;  %v708_v42 = vadd.f32 %v1312_v38, %v458_v40 }
  0xda   :  { %v1040_v43 = vpack.c.bf16 %v696_v41, %v695_v36  ;;  %v1070_v44 = vpack.c.bf16 %v708_v42, %v707_v37 }
  0xdc   :  { %v488_v46 = vpop.f32.mrf.mxu2  ;;  %1144 = vst [vmem:[%s1441_s3 + $0x18] sm:$0xff] %v1040_v43   ;;  %v523_v47 = vpop.f32.mrf.mxu3 }
  0xdd   :  { %v720_v49 = vadd.f32 %v1312_v38, %v488_v46  ;;  %1150 = vst [vmem:[%s1441_s3 + $0x48] sm:$0xff] %v1070_v44   ;;  %v734_v50 = vadd.f32 %v1312_v38, %v523_v47 }
  0xdf   :  { %v1100_v51 = vpack.c.bf16 %v720_v49, %v719_v48  ;;  %v1135_v52 = vpack.c.bf16 %v734_v50, %v733_v45  ;;  %v431_v53 = vpop.f32.mrf.mxu0  ;;  %v461_v54 = vpop.f32.mrf.mxu1 }
  0xe0   :  { %v697_v57 = vadd.f32 %v1312_v38, %v431_v53  ;;  %v709_v58 = vadd.f32 %v1312_v38, %v461_v54 }
  0xe1   :  { %1156 = vst [vmem:[%s1441_s3 + $0x78] sm:$0xff] %v1100_v51  }
  0xe2   :  { %1163 = vst [vmem:[%s1441_s3 + $0xb0] sm:$0xff] %v1135_v52  }
  0xe4   :  { %v491_v55 = vpop.f32.mrf.mxu2  ;;  %v526_v56 = vpop.f32.mrf.mxu3 }
  0xe5   :  { %v735_v1 = vadd.f32 %v1312_v38, %v526_v56  ;;  %v721_v4 = vadd.f32 %v1312_v38, %v491_v55 }
  0xe7   :  { %v433_v59 = vpop.f32.mrf.mxu0  ;;  %v463_v60 = vpop.f32.mrf.mxu1 }
  0xe8   :  { %v698_v61 = vadd.f32 %v1312_v38, %v433_v59  ;;  %v710_v62 = vadd.f32 %v1312_v38, %v463_v60 }
  0xea   :  { %v1045_v63 = vpack.c.bf16 %v698_v61, %v697_v57  ;;  %v1075_v0 = vpack.c.bf16 %v710_v62, %v709_v58 }
  0xec   :  { %v493_v2 = vpop.f32.mrf.mxu2  ;;  %1145 = vst [vmem:[%s1441_s3 + $0x20] sm:$0xff] %v1045_v63   ;;  %v528_v3 = vpop.f32.mrf.mxu3 }
  0xed   :  { %v722_v5 = vadd.f32 %v1312_v38, %v493_v2  ;;  %1151 = vst [vmem:[%s1441_s3 + $0x50] sm:$0xff] %v1075_v0   ;;  %v736_v6 = vadd.f32 %v1312_v38, %v528_v3 }
  0xef   :  { %v1105_v7 = vpack.c.bf16 %v722_v5, %v721_v4  ;;  %v1140_v8 = vpack.c.bf16 %v736_v6, %v735_v1  ;;  %v436_v9 = vpop.f32.mrf.mxu0  ;;  %v466_v10 = vpop.f32.mrf.mxu1 }
  0xf0   :  { %v699_v14 = vadd.f32 %v1312_v38, %v436_v9  ;;  %v711_v15 = vadd.f32 %v1312_v38, %v466_v10 }
  0xf1   :  { %1157 = vst [vmem:[%s1441_s3 + $0x80] sm:$0xff] %v1105_v7  }
  0xf2   :  { %1164 = vst [vmem:[%s1441_s3 + $0xb8] sm:$0xff] %v1140_v8  }
  0xf4   :  { %v496_v11 = vpop.f32.mrf.mxu2  ;;  %v531_v12 = vpop.f32.mrf.mxu3 }
  0xf5   :  { %v737_v13 = vadd.f32 %v1312_v38, %v531_v12  ;;  %v723_v25 = vadd.f32 %v1312_v38, %v496_v11 }
  0xf7   :  { %v786_v16 = vpack.c.bf16 %v737_v13, %v737_v13  ;;  %v438_v17 = vpop.f32.mrf.mxu0  ;;  %v468_v18 = vpop.f32.mrf.mxu1 }
  0xf8   :  { %v700_v19 = vadd.f32 %v1312_v38, %v438_v17  ;;  %v712_v20 = vadd.f32 %v1312_v38, %v468_v18 }
  0xf9   :  { %835 = vst [vmem:[%s1441_s3 + $0xc0] sm:$0xf] %v786_v16 }
  0xfa   :  { %v1050_v21 = vpack.c.bf16 %v700_v19, %v699_v14  ;;  %v1080_v22 = vpack.c.bf16 %v712_v20, %v711_v15 }
  0xfc   :  { %v498_v23 = vpop.f32.mrf.mxu2  ;;  %1146 = vst [vmem:[%s1441_s3 + $0x28] sm:$0xff] %v1050_v21   ;;  %v533_v24 = vpop.f32.mrf.mxu3 }
  0xfd   :  { %v724_v26 = vadd.f32 %v1312_v38, %v498_v23  ;;  %1152 = vst [vmem:[%s1441_s3 + $0x58] sm:$0xff] %v1080_v22  }
  0xff   :  { %v1110_v27 = vpack.c.bf16 %v724_v26, %v723_v25 }
 0x101   :  { %1158 = vst [vmem:[%s1441_s3 + $0x88] sm:$0xff] %v1110_v27  }
 0x104   :  { %v501_v28 = vpop.f32.mrf.mxu2 }
 0x105   :  { %v725_v30 = vadd.f32 %v1312_v38, %v501_v28 }
 0x10c   :  { %v503_v29 = vpop.f32.mrf.mxu2 }
 0x10d   :  { %v726_v31 = vadd.f32 %v1312_v38, %v503_v29 }
 0x10f   :  { %v1115_v32 = vpack.c.bf16 %v726_v31, %v725_v30 }
 0x111   :  { %1159 = vst [vmem:[%s1441_s3 + $0x90] sm:$0xff] %v1115_v32  }

// kernel: _lambda_.22
= control target key start
LH: loop header
LB: loop body
LE: loop exit
PB: predicated region body
PF: predicated region fallthrough
CT: control target
= control target key end

     0   :  { %s664_s18 = smov 0   ;;  %s666_s19 = smov 0   ;;  %s756_s0 = inlined_call_operand.vmem [shape: bf16[2,196,16], index: 0, kind: input, shape index: {}]   ;;  %s757_s1 = inlined_call_operand.vmem [shape: bf16[16,8], index: 1, kind: input, shape index: {}]   ;;  %s758_s2 = inlined_call_operand.vmem [shape: f32[1,8], index: 2, kind: input, shape index: {}]   ;;  %s759_s3 = inlined_call_operand.vmem [shape: bf16[8,16], index: 3, kind: input, shape index: {}]   ;;  %s760_s4 = inlined_call_operand.vmem [shape: f32[1,16], index: 4, kind: input, shape index: {}]   ;;  %s761_s5 = inlined_call_operand.vmem [shape: f32[2,1,16], index: 5, kind: output, shape index: {}]  }
   0x1   :  { %s668_s20 = smov 0  }
   0x2 LB: > { %s27_s21 = sadd.s32 1, %s627_s19  ;;  %p508_p0 = scmp.ge.s32.totalorder %s631_s20, 1  ;;  %s631_s20 = sphi %s668_s20, %s15_s20   ;;  %s627_s19 = sphi %s666_s19, %s763_s19   ;;  %s623_s18 = sphi %s664_s18, %s762_s18  }
   0x3   : > { %p29_p1 = scmp.ge.s32.totalorder %s27_s21, 2  ;;  %p206_p2 = scmp.lt.s32.totalorder %s631_s20, 3 }
   0x5   : > { %s765_s21 = smov (%p29_p1, %s27_s21), 0  ;;  %p207_p3 = pnand %p508_p0, %p206_p2 }
   0x6   : > { %p237_p4 = scmp.lt.s32.totalorder (!%p207_p3), %s623_s18, 1 }
   0x7   : > { %210 = sbr.rel (%p207_p3) target bundleno = 383 (0x17f), region = 40 }
   0xc   : > { %v519_v0 = vld [vmem:[%s757_s1] sm:$0xff]  ;;  %vm254_vm0 = vcmask 122880   ;;  %v633_v1 = vmov 0.0   ;;  %s767_s18 = smov (!%p237_p4, %s623_s18), 1  ;;  %vm307_vm1 = vcmask 130048   ;;  %vm355_vm2 = vcmask 125952  }
   0xd   : > { %255 = vst.msk [vmem:[#allocation2] sm:$0x1] %vm254_vm0, %v633_v1  ;;  %392 = vmatpush.bf16.msra.mxu0 %v519_v0  ;;  %s579_s24 = smul.u32 100, %s767_s18  ;;  %vm406_vm3 = vcmask 1043456   ;;  %vm402_vm4 = vcmask 64512   ;;  %s248_s11 = scalar_lea.vmem %s761_s5, %s767_s18 }
   0xf   : > { %s692_s27 = scalar_lea.vmem %s756_s0, %s579_s24 }
  0x10   : > { %v521_v2 = vld [vmem:[%s692_s27] sm:$0xff]   ;;  %v568_v3 = vld [vmem:[%s692_s27 + $0x8] sm:$0xff]   ;;  %v569_v7 = vld [vmem:[%s692_s27 + $0x10] sm:$0xff]  }
  0x11   : > { %v522_v4 = vunpack.c.l.bf16 %v521_v2  ;;  %v523_v5 = vunpack.c.h.bf16 %v521_v2  ;;  %v526_v6 = vunpack.c.l.bf16 %v568_v3  ;;  %v527_v8 = vunpack.c.h.bf16 %v568_v3  ;;  %v570_v13 = vld [vmem:[%s692_s27 + $0x18] sm:$0xff]   ;;  %v571_v20 = vld [vmem:[%s692_s27 + $0x20] sm:$0xff]   ;;  %v572_v27 = vld [vmem:[%s692_s27 + $0x28] sm:$0xff]  }
  0x12   : > { %v530_v9 = vunpack.c.l.bf16 %v569_v7  ;;  %v531_v15 = vunpack.c.h.bf16 %v569_v7  ;;  %v534_v18 = vunpack.c.l.bf16 %v570_v13  ;;  %v535_v22 = vunpack.c.h.bf16 %v570_v13  ;;  %v573_v34 = vld [vmem:[%s692_s27 + $0x30] sm:$0xff]   ;;  %v574_v41 = vld [vmem:[%s692_s27 + $0x38] sm:$0xff]   ;;  %v575_v48 = vld [vmem:[%s692_s27 + $0x40] sm:$0xff]  }
  0x13   : > { %v308_v10 = vsel %vm307_vm1, %v522_v4, 0.0  ;;  %v309_v11 = vsel %vm307_vm1, %v523_v5, 0.0  ;;  %v311_v12 = vsel %vm307_vm1, %v526_v6, 0.0  ;;  %v313_v16 = vsel %vm307_vm1, %v527_v8, 0.0  ;;  %v576_v55 = vld [vmem:[%s692_s27 + $0x48] sm:$0xff]   ;;  %v577_v62 = vld [vmem:[%s692_s27 + $0x50] sm:$0xff]  }
  0x14   : > { %v310_v14 = vadd.f32 %v309_v11, %v308_v10  ;;  %v315_v19 = vsel %vm307_vm1, %v530_v9, 0.0  ;;  %v317_v23 = vsel %vm307_vm1, %v531_v15, 0.0  ;;  %v538_v25 = vunpack.c.l.bf16 %v571_v20  ;;  %v578_v5 = vld [vmem:[%s692_s27 + $0x58] sm:$0xff]  }
  0x15   : > { %v319_v26 = vsel %vm307_vm1, %v534_v18, 0.0  ;;  %v539_v29 = vunpack.c.h.bf16 %v571_v20  ;;  %v321_v30 = vsel %vm307_vm1, %v535_v22, 0.0  ;;  %v542_v32 = vunpack.c.l.bf16 %v572_v27 }
  0x16   : > { %v312_v17 = vadd.f32 %v311_v12, %v310_v14  ;;  %v323_v33 = vsel %vm307_vm1, %v538_v25, 0.0  ;;  %v543_v36 = vunpack.c.h.bf16 %v572_v27  ;;  %v546_v39 = vunpack.c.l.bf16 %v573_v34  ;;  %v281_v12 = vld [vmem:[%s692_s27 + $0x60] sm:$0x3] }
  0x17   : > { %v325_v37 = vsel %vm307_vm1, %v539_v29, 0.0  ;;  %v327_v40 = vsel %vm307_vm1, %v542_v32, 0.0  ;;  %v547_v43 = vunpack.c.h.bf16 %v573_v34  ;;  %v550_v46 = vunpack.c.l.bf16 %v574_v41 }
  0x18   : > { %v314_v21 = vadd.f32 %v313_v16, %v312_v17  ;;  %v329_v44 = vsel %vm307_vm1, %v543_v36, 0.0  ;;  %v331_v47 = vsel %vm307_vm1, %v546_v39, 0.0  ;;  %v551_v50 = vunpack.c.h.bf16 %v574_v41  ;;  %v400_v36 = vld [vmem:[%s759_s3] sm:$0xf] }
  0x19   : > { %v333_v51 = vsel %vm307_vm1, %v547_v43, 0.0  ;;  %v554_v53 = vunpack.c.l.bf16 %v575_v48  ;;  %v335_v54 = vsel %vm307_vm1, %v550_v46, 0.0  ;;  %v555_v57 = vunpack.c.h.bf16 %v575_v48 }
  0x1a   : > { %v316_v24 = vadd.f32 %v315_v19, %v314_v21  ;;  %v337_v58 = vsel %vm307_vm1, %v551_v50, 0.0  ;;  %v558_v60 = vunpack.c.l.bf16 %v576_v55  ;;  %v559_v0 = vunpack.c.h.bf16 %v576_v55 }
  0x1b   : > { %v339_v61 = vsel %vm307_vm1, %v554_v53, 0.0  ;;  %v341_v1 = vsel %vm307_vm1, %v555_v57, 0.0  ;;  %v562_v3 = vunpack.c.l.bf16 %v577_v62  ;;  %v563_v7 = vunpack.c.h.bf16 %v577_v62 }
  0x1c   : > { %v318_v28 = vadd.f32 %v317_v23, %v316_v24  ;;  %v343_v4 = vsel %vm307_vm1, %v558_v60, 0.0  ;;  %v345_v8 = vsel %vm307_vm1, %v559_v0, 0.0  ;;  %v566_v10 = vunpack.c.l.bf16 %v578_v5 }
  0x1d   : > { %v347_v11 = vsel %vm307_vm1, %v562_v3, 0.0  ;;  %v567_v14 = vunpack.c.h.bf16 %v578_v5  ;;  %v349_v15 = vsel %vm307_vm1, %v563_v7, 0.0  ;;  %v306_v17 = vunpack.c.l.bf16 %v281_v12 }
  0x1e   : > { %v320_v31 = vadd.f32 %v319_v26, %v318_v28  ;;  %v351_v18 = vsel %vm307_vm1, %v566_v10, 0.0 }
  0x1f   : > { %v353_v20 = vsel %vm307_vm1, %v567_v14, 0.0  ;;  %v356_v22 = vsel %vm355_vm2, %v306_v17, 0.0 }
  0x20   : > { %v322_v35 = vadd.f32 %v321_v30, %v320_v31  ;;  %v256_v30 = vld [vmem:[#allocation2] sm:$0x1] }
  0x22   : > { %v324_v38 = vadd.f32 %v323_v33, %v322_v35 }
  0x24   : > { %v326_v42 = vadd.f32 %v325_v37, %v324_v38  ;;  %v408_v37 = vsel %vm406_vm3, %v400_v36, 0  ;;  %v375_v38 = vld [vmem:[%s758_s2] sm:$0x1] }
  0x25   : > { %417 = vmatpush.bf16.msra.mxu1 %v408_v37 }
  0x26   : > { %v328_v45 = vadd.f32 %v327_v40, %v326_v42 }
  0x28   : > { %v330_v49 = vadd.f32 %v329_v44, %v328_v45  ;;  %v401_v44 = vld [vmem:[%s760_s4] sm:$0x1] }
  0x2a   : > { %v332_v52 = vadd.f32 %v331_v47, %v330_v49 }
  0x2c   : > { %v334_v56 = vadd.f32 %v333_v51, %v332_v52 }
  0x2e   : > { %v336_v59 = vadd.f32 %v335_v54, %v334_v56 }
  0x30   : > { %v338_v63 = vadd.f32 %v337_v58, %v336_v59 }
  0x32   : > { %v340_v2 = vadd.f32 %v339_v61, %v338_v63 }
  0x34   : > { %v342_v6 = vadd.f32 %v341_v1, %v340_v2 }
  0x36   : > { %v344_v9 = vadd.f32 %v343_v4, %v342_v6 }
  0x38   : > { %v346_v13 = vadd.f32 %v345_v8, %v344_v9 }
  0x3a   : > { %v348_v16 = vadd.f32 %v347_v11, %v346_v13 }
  0x3c   : > { %v350_v19 = vadd.f32 %v349_v15, %v348_v16 }
  0x3e   : > { %v352_v21 = vadd.f32 %v351_v18, %v350_v19 }
  0x40   : > { %v354_v23 = vadd.f32 %v353_v20, %v352_v21 }
  0x42   : > { %v357_v24 = vadd.f32 %v356_v22, %v354_v23 }
  0x44   : > { %v358_v25 = vrot.slane %v357_v24, 4 }
  0x46   : > { %v359_v26 = vadd.f32 %v358_v25, %v357_v24 }
  0x48   : > { %v360_v27 = vrot.slane %v359_v26, 2 }
  0x4a   : > { %v361_v28 = vadd.f32 %v360_v27, %v359_v26 }
  0x4c   : > { %v362_v29 = vrot.slane %v361_v28, 1 }
  0x4e   : > { %v363_v31 = vadd.f32 %v362_v29, %v361_v28 }
  0x50   : > { %v364_v32 = vadd.f32 %v363_v31, %v256_v30 }
  0x52   : > { %366 = vst.msk [vmem:[#allocation2] sm:$0x1] %vm254_vm0, %v364_v32 }
  0x59   : > { %v370_v33 = vld [vmem:[#allocation2] sm:$0x1] }
  0x5a   : > { %v371_v34 = vmul.f32 0.0051020407, %v370_v33 }
  0x5c   : > { %v372_v35 = vpack.c.bf16 %v371_v34, %v371_v34 }
  0x5e   : > { %514 = vmatmul.msk.bf16.vlgmr.msra.gmra.mxu0 %vm307_vm1, %v372_v35 }
  0xdb   : > { %v394_v39 = vpop.f32.mrf.mxu0 }
  0xdc   : > { %v395_v40 = vadd.f32 %v394_v39, %v375_v38 }
  0xde   : > { %v398_v41 = vmax.f32 %v395_v40, 0.0 }
  0xe0   : > { %v399_v42 = vpack.c.bf16 %v398_v41, %v398_v41 }
  0xe2   : > { %515 = vmatmul.msk.bf16.vlgmr.msra.gmra.mxu1 %vm402_vm4, %v399_v42 }
  0xe3   : > { %v396_v43 = vpop.f32.mrf.mxu0 }
 0x15f   : > { %v419_v45 = vpop.f32.mrf.mxu1 }
 0x160   : > { %v420_v46 = vadd.f32 %v419_v45, %v401_v44 }
 0x162   : > { %v516_v47 = vmul.f32 -1.442695, %v420_v46 }
 0x164   : > { %605 = vpow2.f32 %v516_v47 }
 0x167   : > { %v421_v48 = vpop.f32.mrf.mxu1 }
 0x16a   : > { %v606_v49 = vpop.eup %605 }
 0x16b   : > { %v426_v50 = vadd.f32 1.0, %v606_v49 }
 0x16d   : > { %607 = vrcp.f32 %v426_v50  ;;  %v438_v54 = vand.u32 2147483648, %v426_v50  ;;  %v436_v56 = vand.u32 2147483647, %v426_v50  ;;  %vm432_vm6 = vweird.f32 %v426_v50 }
 0x16f   : > { %v439_v58 = vor.u32 1.1754944e-38, %v438_v54  ;;  %vm437_vm8 = vcmp.eq.f32.partialorder %v436_v56, 8.507059e+37 }
 0x173   : > { %v608_v51 = vpop.eup %607 }
 0x174   : > { %v428_v52 = vmul.f32 %v608_v51, %v426_v50  ;;  %vm433_vm5 = vweird.f32 %v608_v51 }
 0x175   : > { %vm434_vm7 = vmor %vm432_vm6, %vm433_vm5 }
 0x176   : > { %v429_v53 = vsub.f32 1.0, %v428_v52 }
 0x178   : > { %v430_v55 = vmul.f32 %v608_v51, %v429_v53 }
 0x17a   : > { %v431_v57 = vadd.f32 %v608_v51, %v430_v55 }
 0x17c   : > { %v435_v59 = vsel %vm434_vm7, %v608_v51, %v431_v57 }
 0x17d   : > { %v440_v60 = vsel %vm437_vm8, %v439_v58, %v435_v59 }
 0x17e   : > { %442 = vst.msk [vmem:[%s248_s11] sm:$0x1] %vm254_vm0, %v440_v60 }
 0x17f PF: > { %s15_s20 = sadd.s32 1, %s631_s20   ;;  %s762_s18 = smov %s627_s19 }
 0x180   : > { %p12_p5 = scmp.ge.s32.totalorder %s15_s20, 4   ;;  %s763_s19 = smov %s765_s21 }
 0x182   :  { %14 = sbr.rel (!%p12_p5) target bundleno = 2 (0x2), region = 78 }

// kernel: _lambda_.23
= control target key start
LH: loop header
LB: loop body
LE: loop exit
PB: predicated region body
PF: predicated region fallthrough
CT: control target
= control target key end

     0   :  { %s803_s12 = smov 0   ;;  %s805_s13 = smov 0   ;;  %s955_s0 = inlined_call_operand.vmem [shape: bf16[2,196,16], index: 0, kind: input, shape index: {}]   ;;  %s956_s1 = inlined_call_operand.vmem [shape: f32[2,1,16], index: 1, kind: input, shape index: {}]   ;;  %s957_s2 = inlined_call_operand.vmem [shape: bf16[2,196,16], index: 2, kind: input, shape index: {}]   ;;  %s958_s3 = inlined_call_operand.vmem [shape: bf16[2,196,16], index: 3, kind: output, shape index: {}]  }
   0x1   :  { %s807_s14 = smov 0  }
   0x2 LB: > { %s25_s15 = sadd.s32 1, %s777_s13  ;;  %p609_p0 = scmp.ge.s32.totalorder %s781_s14, 1  ;;  %s781_s14 = sphi %s807_s14, %s13_s14   ;;  %s777_s13 = sphi %s805_s13, %s960_s13   ;;  %s773_s12 = sphi %s803_s12, %s959_s12  }
   0x3   : > { %p27_p1 = scmp.ge.s32.totalorder %s25_s15, 2  ;;  %p183_p2 = scmp.lt.s32.totalorder %s781_s14, 3 }
   0x5   : > { %s962_s15 = smov (%p27_p1, %s25_s15), 0  ;;  %p184_p3 = pnand %p609_p0, %p183_p2 }
   0x6   : > { %p228_p4 = scmp.lt.s32.totalorder (!%p184_p3), %s773_s12, 1 }
   0x7   : > { %187 = sbr.rel (%p184_p3) target bundleno = 61 (0x3d), region = 32 }
   0xc   : > { %s964_s12 = smov (!%p228_p4, %s773_s12), 1  ;;  %vm464_vm0 = vcmask 125952   ;;  %vm489_vm1 = vcmask 123904  }
   0xd   : > { %s821_s16 = smul.u32 100, %s964_s12  ;;  %s239_s19 = scalar_lea.vmem %s956_s1, %s964_s12 }
   0xe   : > { %v838_v0 = vld [vmem:[%s239_s19] ss:$0 sm:$0xff] }
   0xf   : > { %s830_s22 = scalar_lea.vmem %s955_s0, %s821_s16  ;;  %s836_s25 = scalar_lea.vmem %s957_s2, %s821_s16 }
  0x10   : > { %v616_v1 = vld [vmem:[%s830_s22] sm:$0xff]   ;;  %v711_v3 = vld [vmem:[%s830_s22 + $0x8] sm:$0xff]   ;;  %v712_v9 = vld [vmem:[%s830_s22 + $0x10] sm:$0xff]   ;;  %s859_s28 = scalar_lea.vmem %s958_s3, %s821_s16 }
  0x11   : > { %v664_v2 = vld [vmem:[%s836_s25] sm:$0xff]   ;;  %v617_v4 = vunpack.c.l.bf16 %v616_v1  ;;  %v618_v6 = vunpack.c.h.bf16 %v616_v1  ;;  %v722_v8 = vld [vmem:[%s836_s25 + $0x8] sm:$0xff]   ;;  %v723_v10 = vld [vmem:[%s836_s25 + $0x10] sm:$0xff]   ;;  %v621_v11 = vunpack.c.l.bf16 %v711_v3  ;;  %v622_v13 = vunpack.c.h.bf16 %v711_v3 }
  0x12   : > { %v665_v5 = vunpack.c.l.bf16 %v664_v2  ;;  %v666_v7 = vunpack.c.h.bf16 %v664_v2  ;;  %v669_v12 = vunpack.c.l.bf16 %v722_v8  ;;  %v670_v14 = vunpack.c.h.bf16 %v722_v8  ;;  %v713_v15 = vld [vmem:[%s830_s22 + $0x18] sm:$0xff]   ;;  %v714_v41 = vld [vmem:[%s830_s22 + $0x20] sm:$0xff]   ;;  %v715_v51 = vld [vmem:[%s830_s22 + $0x28] sm:$0xff]  }
  0x13   : > { %v364_v16 = vmul.f32 %v838_v0, %v617_v4  ;;  %v365_v17 = vmul.f32 %v838_v0, %v618_v6  ;;  %v625_v18 = vunpack.c.l.bf16 %v712_v9  ;;  %v673_v19 = vunpack.c.l.bf16 %v723_v10  ;;  %v724_v20 = vld [vmem:[%s836_s25 + $0x18] sm:$0xff]   ;;  %v725_v46 = vld [vmem:[%s836_s25 + $0x20] sm:$0xff]   ;;  %v726_v56 = vld [vmem:[%s836_s25 + $0x28] sm:$0xff]  }
  0x14   : > { %v366_v21 = vmul.f32 %v838_v0, %v621_v11  ;;  %v367_v22 = vmul.f32 %v838_v0, %v622_v13  ;;  %v626_v23 = vunpack.c.h.bf16 %v712_v9  ;;  %v674_v24 = vunpack.c.h.bf16 %v723_v10  ;;  %v716_v61 = vld [vmem:[%s830_s22 + $0x30] sm:$0xff]  }
  0x15   : > { %v389_v25 = vadd.f32 %v665_v5, %v364_v16  ;;  %v390_v26 = vadd.f32 %v666_v7, %v365_v17  ;;  %v368_v27 = vmul.f32 %v838_v0, %v625_v18  ;;  %v629_v28 = vunpack.c.l.bf16 %v713_v15  ;;  %v727_v3 = vld [vmem:[%s836_s25 + $0x30] sm:$0xff]   ;;  %v717_v16 = vld [vmem:[%s830_s22 + $0x38] sm:$0xff]  }
  0x16   : > { %v391_v29 = vadd.f32 %v669_v12, %v366_v21  ;;  %v392_v30 = vadd.f32 %v670_v14, %v367_v22  ;;  %v369_v31 = vmul.f32 %v838_v0, %v626_v23  ;;  %v677_v32 = vunpack.c.l.bf16 %v724_v20  ;;  %v728_v21 = vld [vmem:[%s836_s25 + $0x38] sm:$0xff]  }
  0x17   : > { %v414_v33 = vmax.f32 %v389_v25, 0.0  ;;  %v415_v34 = vmax.f32 %v390_v26, 0.0  ;;  %v393_v35 = vadd.f32 %v673_v19, %v368_v27  ;;  %v370_v36 = vmul.f32 %v838_v0, %v629_v28 }
  0x18   : > { %v416_v37 = vmax.f32 %v391_v29, 0.0  ;;  %v417_v38 = vmax.f32 %v392_v30, 0.0  ;;  %v394_v39 = vadd.f32 %v674_v24, %v369_v31  ;;  %v630_v40 = vunpack.c.h.bf16 %v713_v15  ;;  %v718_v30 = vld [vmem:[%s830_s22 + $0x40] sm:$0xff]  }
  0x19   : > { %v439_v42 = vpack.c.bf16 %v414_v33, %v414_v33  ;;  %v440_v43 = vpack.c.bf16 %v415_v34, %v415_v34  ;;  %v418_v44 = vmax.f32 %v393_v35, 0.0  ;;  %v395_v45 = vadd.f32 %v677_v32, %v370_v36  ;;  %v729_v35 = vld [vmem:[%s836_s25 + $0x40] sm:$0xff]  }
  0x1a   : > { %v441_v47 = vpack.c.bf16 %v416_v37, %v416_v37  ;;  %v442_v48 = vpack.c.bf16 %v417_v38, %v417_v38  ;;  %v419_v49 = vmax.f32 %v394_v39, 0.0  ;;  %v678_v50 = vunpack.c.h.bf16 %v724_v20 }
  0x1b   : > { %465 = vst.msk [vmem:[%s859_s28] sm:$0xf] %vm464_vm0, %v439_v42  ;;  %v443_v52 = vpack.c.bf16 %v418_v44, %v418_v44  ;;  %v420_v53 = vmax.f32 %v395_v45, 0.0  ;;  %v371_v54 = vmul.f32 %v838_v0, %v630_v40  ;;  %v633_v55 = vunpack.c.l.bf16 %v714_v41  ;;  %v719_v44 = vld [vmem:[%s830_s22 + $0x48] sm:$0xff]  }
  0x1c   : > { %466 = vst.msk [vmem:[%s859_s28 + $0x4] sm:$0xf] %vm464_vm0, %v440_v43  ;;  %v444_v57 = vpack.c.bf16 %v419_v49, %v419_v49  ;;  %v681_v58 = vunpack.c.l.bf16 %v725_v46  ;;  %v634_v59 = vunpack.c.h.bf16 %v714_v41  ;;  %v682_v60 = vunpack.c.h.bf16 %v725_v46  ;;  %v730_v45 = vld [vmem:[%s836_s25 + $0x48] sm:$0xff]  }
  0x1d   : > { %467 = vst.msk [vmem:[%s859_s28 + $0x8] sm:$0xf] %vm464_vm0, %v441_v47  ;;  %v445_v62 = vpack.c.bf16 %v420_v53, %v420_v53  ;;  %v396_v63 = vadd.f32 %v678_v50, %v371_v54  ;;  %v372_v1 = vmul.f32 %v838_v0, %v633_v55  ;;  %v637_v2 = vunpack.c.l.bf16 %v715_v51  ;;  %v720_v54 = vld [vmem:[%s830_s22 + $0x50] sm:$0xff]  }
  0x1e   : > { %468 = vst.msk [vmem:[%s859_s28 + $0xc] sm:$0xf] %vm464_vm0, %v442_v48  ;;  %v373_v4 = vmul.f32 %v838_v0, %v634_v59  ;;  %v685_v5 = vunpack.c.l.bf16 %v726_v56  ;;  %v638_v6 = vunpack.c.h.bf16 %v715_v51  ;;  %v686_v7 = vunpack.c.h.bf16 %v726_v56  ;;  %v731_v59 = vld [vmem:[%s836_s25 + $0x50] sm:$0xff]  }
  0x1f   : > { %469 = vst.msk [vmem:[%s859_s28 + $0x10] sm:$0xf] %vm464_vm0, %v443_v52  ;;  %v421_v8 = vmax.f32 %v396_v63, 0.0  ;;  %v397_v9 = vadd.f32 %v681_v58, %v372_v1  ;;  %v374_v10 = vmul.f32 %v838_v0, %v637_v2  ;;  %v641_v11 = vunpack.c.l.bf16 %v716_v61 }
  0x20   : > { %470 = vst.msk [vmem:[%s859_s28 + $0x14] sm:$0xf] %vm464_vm0, %v444_v57  ;;  %v398_v12 = vadd.f32 %v682_v60, %v373_v4  ;;  %v375_v13 = vmul.f32 %v838_v0, %v638_v6  ;;  %v689_v14 = vunpack.c.l.bf16 %v727_v3  ;;  %v642_v15 = vunpack.c.h.bf16 %v716_v61 }
  0x21   : > { %471 = vst.msk [vmem:[%s859_s28 + $0x18] sm:$0xf] %vm464_vm0, %v445_v62  ;;  %v446_v17 = vpack.c.bf16 %v421_v8, %v421_v8  ;;  %v422_v18 = vmax.f32 %v397_v9, 0.0  ;;  %v399_v19 = vadd.f32 %v685_v5, %v374_v10  ;;  %v376_v20 = vmul.f32 %v838_v0, %v641_v11  ;;  %v721_v9 = vld [vmem:[%s830_s22 + $0x58] sm:$0xff]  }
  0x22   : > { %v423_v22 = vmax.f32 %v398_v12, 0.0  ;;  %v400_v23 = vadd.f32 %v686_v7, %v375_v13  ;;  %v690_v24 = vunpack.c.h.bf16 %v727_v3  ;;  %v377_v25 = vmul.f32 %v838_v0, %v642_v15 }
  0x23   : > { %472 = vst.msk [vmem:[%s859_s28 + $0x1c] sm:$0xf] %vm464_vm0, %v446_v17  ;;  %v447_v26 = vpack.c.bf16 %v422_v18, %v422_v18  ;;  %v424_v27 = vmax.f32 %v399_v19, 0.0  ;;  %v401_v28 = vadd.f32 %v689_v14, %v376_v20  ;;  %v645_v29 = vunpack.c.l.bf16 %v717_v16  ;;  %v732_v14 = vld [vmem:[%s836_s25 + $0x58] sm:$0xff]  }
  0x24   : > { %v448_v31 = vpack.c.bf16 %v423_v22, %v423_v22  ;;  %v425_v32 = vmax.f32 %v400_v23, 0.0  ;;  %v402_v33 = vadd.f32 %v690_v24, %v377_v25  ;;  %v693_v34 = vunpack.c.l.bf16 %v728_v21  ;;  %v284_v23 = vld [vmem:[%s830_s22 + $0x60] sm:$0x3] }
  0x25   : > { %473 = vst.msk [vmem:[%s859_s28 + $0x20] sm:$0xf] %vm464_vm0, %v447_v26  ;;  %v449_v36 = vpack.c.bf16 %v424_v27, %v424_v27  ;;  %v426_v37 = vmax.f32 %v401_v28, 0.0  ;;  %v378_v38 = vmul.f32 %v838_v0, %v645_v29  ;;  %v646_v39 = vunpack.c.h.bf16 %v717_v16  ;;  %v334_v28 = vld [vmem:[%s836_s25 + $0x60] sm:$0x3] }
  0x26   : > { %474 = vst.msk [vmem:[%s859_s28 + $0x24] sm:$0xf] %vm464_vm0, %v448_v31  ;;  %v450_v40 = vpack.c.bf16 %v425_v32, %v425_v32  ;;  %v427_v41 = vmax.f32 %v402_v33, 0.0  ;;  %v694_v42 = vunpack.c.h.bf16 %v728_v21  ;;  %v649_v43 = vunpack.c.l.bf16 %v718_v30 }
  0x27   : > { %475 = vst.msk [vmem:[%s859_s28 + $0x28] sm:$0xf] %vm464_vm0, %v449_v36  ;;  %v451_v46 = vpack.c.bf16 %v426_v37, %v426_v37  ;;  %v403_v47 = vadd.f32 %v693_v34, %v378_v38  ;;  %v379_v48 = vmul.f32 %v838_v0, %v646_v39  ;;  %v697_v49 = vunpack.c.l.bf16 %v729_v35 }
  0x28   : > { %476 = vst.msk [vmem:[%s859_s28 + $0x2c] sm:$0xf] %vm464_vm0, %v450_v40  ;;  %v452_v50 = vpack.c.bf16 %v427_v41, %v427_v41  ;;  %v380_v51 = vmul.f32 %v838_v0, %v649_v43  ;;  %v650_v52 = vunpack.c.h.bf16 %v718_v30  ;;  %v698_v53 = vunpack.c.h.bf16 %v729_v35 }
  0x29   : > { %477 = vst.msk [vmem:[%s859_s28 + $0x30] sm:$0xf] %vm464_vm0, %v451_v46  ;;  %v428_v55 = vmax.f32 %v403_v47, 0.0  ;;  %v404_v56 = vadd.f32 %v694_v42, %v379_v48  ;;  %v653_v57 = vunpack.c.l.bf16 %v719_v44  ;;  %v701_v58 = vunpack.c.l.bf16 %v730_v45 }
  0x2a   : > { %478 = vst.msk [vmem:[%s859_s28 + $0x34] sm:$0xf] %vm464_vm0, %v452_v50  ;;  %v405_v60 = vadd.f32 %v697_v49, %v380_v51  ;;  %v381_v61 = vmul.f32 %v838_v0, %v650_v52  ;;  %v654_v62 = vunpack.c.h.bf16 %v719_v44  ;;  %v702_v63 = vunpack.c.h.bf16 %v730_v45 }
  0x2b   : > { %v453_v1 = vpack.c.bf16 %v428_v55, %v428_v55  ;;  %v429_v2 = vmax.f32 %v404_v56, 0.0  ;;  %v382_v3 = vmul.f32 %v838_v0, %v653_v57  ;;  %v657_v4 = vunpack.c.l.bf16 %v720_v54 }
  0x2c   : > { %v430_v5 = vmax.f32 %v405_v60, 0.0  ;;  %v406_v6 = vadd.f32 %v698_v53, %v381_v61  ;;  %v383_v7 = vmul.f32 %v838_v0, %v654_v62  ;;  %v705_v8 = vunpack.c.l.bf16 %v731_v59 }
  0x2d   : > { %479 = vst.msk [vmem:[%s859_s28 + $0x38] sm:$0xf] %vm464_vm0, %v453_v1  ;;  %v454_v10 = vpack.c.bf16 %v429_v2, %v429_v2  ;;  %v407_v11 = vadd.f32 %v701_v58, %v382_v3  ;;  %v384_v12 = vmul.f32 %v838_v0, %v657_v4  ;;  %v658_v13 = vunpack.c.h.bf16 %v720_v54 }
  0x2e   : > { %v455_v15 = vpack.c.bf16 %v430_v5, %v430_v5  ;;  %v431_v16 = vmax.f32 %v406_v6, 0.0  ;;  %v408_v17 = vadd.f32 %v702_v63, %v383_v7  ;;  %v706_v18 = vunpack.c.h.bf16 %v731_v59 }
  0x2f   : > { %480 = vst.msk [vmem:[%s859_s28 + $0x3c] sm:$0xf] %vm464_vm0, %v454_v10  ;;  %v432_v19 = vmax.f32 %v407_v11, 0.0  ;;  %v409_v20 = vadd.f32 %v705_v8, %v384_v12  ;;  %v385_v21 = vmul.f32 %v838_v0, %v658_v13  ;;  %v661_v22 = vunpack.c.l.bf16 %v721_v9 }
  0x30   : > { %481 = vst.msk [vmem:[%s859_s28 + $0x40] sm:$0xf] %vm464_vm0, %v455_v15  ;;  %v456_v24 = vpack.c.bf16 %v431_v16, %v431_v16  ;;  %v433_v25 = vmax.f32 %v408_v17, 0.0  ;;  %v709_v26 = vunpack.c.l.bf16 %v732_v14  ;;  %v662_v27 = vunpack.c.h.bf16 %v721_v9 }
  0x31   : > { %v457_v29 = vpack.c.bf16 %v432_v19, %v432_v19  ;;  %v434_v30 = vmax.f32 %v409_v20, 0.0  ;;  %v410_v31 = vadd.f32 %v706_v18, %v385_v21  ;;  %v386_v32 = vmul.f32 %v838_v0, %v661_v22 }
  0x32   : > { %482 = vst.msk [vmem:[%s859_s28 + $0x44] sm:$0xf] %vm464_vm0, %v456_v24  ;;  %v458_v33 = vpack.c.bf16 %v433_v25, %v433_v25  ;;  %v710_v34 = vunpack.c.h.bf16 %v732_v14  ;;  %v387_v35 = vmul.f32 %v838_v0, %v662_v27  ;;  %v309_v36 = vunpack.c.l.bf16 %v284_v23 }
  0x33   : > { %483 = vst.msk [vmem:[%s859_s28 + $0x48] sm:$0xf] %vm464_vm0, %v457_v29  ;;  %v459_v37 = vpack.c.bf16 %v434_v30, %v434_v30  ;;  %v435_v38 = vmax.f32 %v410_v31, 0.0  ;;  %v411_v39 = vadd.f32 %v709_v26, %v386_v32  ;;  %v359_v40 = vunpack.c.l.bf16 %v334_v28 }
  0x34   : > { %484 = vst.msk [vmem:[%s859_s28 + $0x4c] sm:$0xf] %vm464_vm0, %v458_v33  ;;  %v412_v41 = vadd.f32 %v710_v34, %v387_v35  ;;  %v388_v42 = vmul.f32 %v838_v0, %v309_v36 }
  0x35   : > { %485 = vst.msk [vmem:[%s859_s28 + $0x50] sm:$0xf] %vm464_vm0, %v459_v37  ;;  %v460_v43 = vpack.c.bf16 %v435_v38, %v435_v38  ;;  %v436_v44 = vmax.f32 %v411_v39, 0.0 }
  0x36   : > { %v437_v45 = vmax.f32 %v412_v41, 0.0  ;;  %v413_v46 = vadd.f32 %v388_v42, %v359_v40 }
  0x37   : > { %486 = vst.msk [vmem:[%s859_s28 + $0x54] sm:$0xf] %vm464_vm0, %v460_v43  ;;  %v461_v47 = vpack.c.bf16 %v436_v44, %v436_v44 }
  0x38   : > { %v462_v48 = vpack.c.bf16 %v437_v45, %v437_v45  ;;  %v438_v49 = vmax.f32 %v413_v46, 0.0 }
  0x39   : > { %487 = vst.msk [vmem:[%s859_s28 + $0x58] sm:$0xf] %vm464_vm0, %v461_v47 }
  0x3a   : > { %488 = vst.msk [vmem:[%s859_s28 + $0x5c] sm:$0xf] %vm464_vm0, %v462_v48  ;;  %v463_v50 = vpack.c.bf16 %v438_v49, %v438_v49 }
  0x3c   : > { %490 = vst.msk [vmem:[%s859_s28 + $0x60] sm:$0x3] %vm489_vm1, %v463_v50 }
  0x3d PF: > { %s13_s14 = sadd.s32 1, %s781_s14   ;;  %s959_s12 = smov %s777_s13 }
  0x3e   : > { %p10_p5 = scmp.ge.s32.totalorder %s13_s14, 4   ;;  %s960_s13 = smov %s962_s15 }
  0x40   :  { %12 = sbr.rel (!%p10_p5) target bundleno = 2 (0x2), region = 68 }

// kernel: _lambda_.24
= control target key start
LH: loop header
LB: loop body
LE: loop exit
PB: predicated region body
PF: predicated region fallthrough
CT: control target
= control target key end

     0   :  { %s833_s1 = inlined_call_operand.vmem [shape: bf16[1,256,128], index: 1, kind: input, shape index: {}]   ;;  %s834_s0 = inlined_call_operand.vmem [shape: bf16[1,104,256], index: 0, kind: input, shape index: {}]   ;;  %s835_s2 = inlined_call_operand.vmem [shape: f32[1,128], index: 2, kind: input, shape index: {}]   ;;  %s836_s3 = inlined_call_operand.vmem [shape: bf16[104,128], index: 3, kind: output, shape index: {}]  }
   0x1   :  { %v605_v0 = vld [vmem:[%s833_s1 + $0x38] sm:$0xff]  ;;  %v604_v2 = vld [vmem:[%s833_s1 + $0x30] sm:$0xff]  ;;  %v603_v4 = vld [vmem:[%s833_s1 + $0x28] sm:$0xff] }
   0x2   :  { %v613_v1 = vld [vmem:[%s833_s1 + $0x78] sm:$0xff]  ;;  %277 = vmatpush.bf16.msra.mxu0 %v605_v0  ;;  %649 = vmatpush.bf16.msra.mxu2 %v605_v0  ;;  %v612_v3 = vld [vmem:[%s833_s1 + $0x70] sm:$0xff]  ;;  %v611_v5 = vld [vmem:[%s833_s1 + $0x68] sm:$0xff] }
   0x3   :  { %320 = vmatpush.bf16.msra.mxu1 %v613_v1  ;;  %657 = vmatpush.bf16.msra.mxu3 %v613_v1  ;;  %v602_v6 = vld [vmem:[%s833_s1 + $0x20] sm:$0xff]  ;;  %v601_v8 = vld [vmem:[%s833_s1 + $0x18] sm:$0xff]  ;;  %v600_v10 = vld [vmem:[%s833_s1 + $0x10] sm:$0xff] }
   0x4   :  { %v610_v7 = vld [vmem:[%s833_s1 + $0x60] sm:$0xff]  ;;  %v609_v9 = vld [vmem:[%s833_s1 + $0x58] sm:$0xff]  ;;  %v608_v11 = vld [vmem:[%s833_s1 + $0x50] sm:$0xff] }
   0x5   :  { %v599_v12 = vld [vmem:[%s833_s1 + $0x8] sm:$0xff]  ;;  %v598_v14 = vld [vmem:[%s833_s1] sm:$0xff]  ;;  %v500_v18 = vld [vmem:[%s834_s0 + $0x30] sm:$0xf] }
   0x6   :  { %278 = vmatpush.bf16.msra.mxu0 %v604_v2  ;;  %650 = vmatpush.bf16.msra.mxu2 %v604_v2  ;;  %v607_v13 = vld [vmem:[%s833_s1 + $0x48] sm:$0xff]  ;;  %v606_v15 = vld [vmem:[%s833_s1 + $0x40] sm:$0xff]  ;;  %v593_v19 = vld [vmem:[%s834_s0 + $0x34] sm:$0xf0] }
   0x7   :  { %321 = vmatpush.bf16.msra.mxu1 %v612_v3  ;;  %658 = vmatpush.bf16.msra.mxu3 %v612_v3  ;;  %v476_v16 = vld [vmem:[%s834_s0] sm:$0xf]  ;;  %v587_v17 = vld [vmem:[%s834_s0 + $0x4] sm:$0xf0]  ;;  %v586_v20 = vld [vmem:[%s834_s0 + $0x4] sm:$0xf]  ;;  %v501_v25 = vor.u32 %v593_v19, %v500_v18 }
   0x8   :  { %v478_v21 = vld [vmem:[%s834_s0 + $0x8] sm:$0xf0]  ;;  %v594_v22 = vld [vmem:[%s834_s0 + $0x44] sm:$0xf]  ;;  %v477_v24 = vor.u32 %v587_v17, %v476_v16  ;;  %v484_v28 = vld [vmem:[%s834_s0 + $0x10] sm:$0xf] }
   0x9   :  { %v510_v23 = vld [vmem:[%s834_s0 + $0x48] sm:$0xf0]  ;;  %v481_v26 = vor.u32 %v586_v20, %v478_v21  ;;  %v589_v29 = vld [vmem:[%s834_s0 + $0x14] sm:$0xf0]  ;;  %v508_v30 = vld [vmem:[%s834_s0 + $0x40] sm:$0xf] }
   0xa   :  { %279 = vmatpush.bf16.msra.mxu0 %v603_v4  ;;  %651 = vmatpush.bf16.msra.mxu2 %v603_v4  ;;  %v513_v27 = vor.u32 %v594_v22, %v510_v23  ;;  %v595_v31 = vld [vmem:[%s834_s0 + $0x44] sm:$0xf0]  ;;  %v588_v32 = vld [vmem:[%s834_s0 + $0x14] sm:$0xf]  ;;  %v486_v33 = vld [vmem:[%s834_s0 + $0x18] sm:$0xf0]  ;;  %v485_v36 = vor.u32 %v589_v29, %v484_v28 }
   0xb   :  { %322 = vmatpush.bf16.msra.mxu1 %v611_v5  ;;  %659 = vmatpush.bf16.msra.mxu3 %v611_v5  ;;  %v596_v34 = vld [vmem:[%s834_s0 + $0x54] sm:$0xf]  ;;  %v518_v35 = vld [vmem:[%s834_s0 + $0x58] sm:$0xf0]  ;;  %v509_v37 = vor.u32 %v595_v31, %v508_v30  ;;  %v489_v38 = vor.u32 %v588_v32, %v486_v33  ;;  %v81_v40 = vld [vmem:[%s834_s0 + $0x60] sm:$0xff] }
   0xc   :  { %v521_v39 = vor.u32 %v596_v34, %v518_v35  ;;  %v492_v41 = vld [vmem:[%s834_s0 + $0x20] sm:$0xf]  ;;  %v591_v42 = vld [vmem:[%s834_s0 + $0x24] sm:$0xf0]  ;;  %v516_v43 = vld [vmem:[%s834_s0 + $0x50] sm:$0xf]  ;;  %v152_v45 = vunpack.c.h.b16 %v81_v40  ;;  %v151_v52 = vunpack.c.l.b16 %v81_v40 }
   0xd   :  { %v597_v44 = vld [vmem:[%s834_s0 + $0x54] sm:$0xf0]  ;;  %v590_v46 = vld [vmem:[%s834_s0 + $0x24] sm:$0xf]  ;;  %v494_v47 = vld [vmem:[%s834_s0 + $0x28] sm:$0xf0]  ;;  %v493_v48 = vor.u32 %v591_v42, %v492_v41 }
   0xe   :  { %280 = vmatpush.bf16.msra.mxu0 %v602_v6  ;;  %652 = vmatpush.bf16.msra.mxu2 %v602_v6  ;;  %v517_v49 = vor.u32 %v597_v44, %v516_v43  ;;  %v497_v50 = vor.u32 %v590_v46, %v494_v47  ;;  %v166_v51 = vpack.c.b16 %v152_v45, %v152_v45  ;;  %v592_v53 = vld [vmem:[%s834_s0 + $0x34] sm:$0xf]  ;;  %v502_v54 = vld [vmem:[%s834_s0 + $0x38] sm:$0xf0]  ;;  %v665_v62 = vld [vmem:[%s835_s2] ss:$0 sm:$0xff] }
   0xf   :  { %323 = vmatpush.bf16.msra.mxu1 %v610_v7  ;;  %660 = vmatpush.bf16.msra.mxu3 %v610_v7  ;;  %v165_v55 = vpack.c.b16 %v151_v52, %v151_v52  ;;  %v505_v56 = vor.u32 %v592_v53, %v502_v54 }
  0x12   :  { %281 = vmatpush.bf16.msra.mxu0 %v601_v8  ;;  %653 = vmatpush.bf16.msra.mxu2 %v601_v8 }
  0x13   :  { %324 = vmatpush.bf16.msra.mxu1 %v609_v9  ;;  %661 = vmatpush.bf16.msra.mxu3 %v609_v9 }
  0x16   :  { %282 = vmatpush.bf16.msra.mxu0 %v600_v10  ;;  %654 = vmatpush.bf16.msra.mxu2 %v600_v10 }
  0x17   :  { %325 = vmatpush.bf16.msra.mxu1 %v608_v11  ;;  %662 = vmatpush.bf16.msra.mxu3 %v608_v11 }
  0x1a   :  { %283 = vmatpush.bf16.msra.mxu0 %v599_v12  ;;  %655 = vmatpush.bf16.msra.mxu2 %v599_v12 }
  0x1b   :  { %326 = vmatpush.bf16.msra.mxu1 %v607_v13  ;;  %663 = vmatpush.bf16.msra.mxu3 %v607_v13 }
  0x1e   :  { %284 = vmatpush.bf16.msra.mxu0 %v598_v14  ;;  %656 = vmatpush.bf16.msra.mxu2 %v598_v14 }
  0x1f   :  { %327 = vmatpush.bf16.msra.mxu1 %v606_v15  ;;  %664 = vmatpush.bf16.msra.mxu3 %v606_v15 }
  0x21   :  { %285 = vmatmul.bf16.vlgmr.msra.gmra.mxu0 %v477_v24  ;;  %300 = vmatmul.bf16.vlgmr.msra.gmra.mxu2 %v501_v25 }
  0x22   :  { %328 = vmatmul.bf16.vlgmr.msra.gmra.mxu1 %v481_v26  ;;  %348 = vmatmul.bf16.vlgmr.msra.gmra.mxu3 %v513_v27 }
  0x31   :  { %290 = vmatmul.bf16.gmra.mxu0 %v485_v36  ;;  %305 = vmatmul.bf16.gmra.mxu2 %v509_v37 }
  0x32   :  { %333 = vmatmul.bf16.gmra.mxu1 %v489_v38  ;;  %353 = vmatmul.bf16.gmra.mxu3 %v521_v39 }
  0x41   :  { %295 = vmatmul.bf16.gmra.mxu0 %v493_v48  ;;  %310 = vmatmul.bf16.gmra.mxu2 %v517_v49 }
  0x42   :  { %338 = vmatmul.bf16.gmra.mxu1 %v497_v50  ;;  %358 = vmatmul.bf16.gmra.mxu3 %v166_v51 }
  0x51   :  { %315 = vmatmul.bf16.gmra.mxu2 %v165_v55 }
  0x52   :  { %343 = vmatmul.bf16.gmra.mxu1 %v505_v56 }
  0x9e   :  { %v286_v57 = vpop.f32.mrf.mxu0 }
  0x9f   :  { %v329_v58 = vpop.f32.mrf.mxu1 }
  0xa0   :  { %v330_v61 = vadd.f32 %v329_v58, %v286_v57 }
  0xa2   :  { %v409_v2 = vadd.f32 %v665_v62, %v330_v61 }
  0xa4   :  { %v301_v59 = vpop.f32.mrf.mxu2 }
  0xa5   :  { %v349_v60 = vpop.f32.mrf.mxu3 }
  0xa6   :  { %v288_v63 = vpop.f32.mrf.mxu0 }
  0xa7   :  { %v331_v0 = vpop.f32.mrf.mxu1 }
  0xa8   :  { %v332_v1 = vadd.f32 %v331_v0, %v288_v63 }
  0xaa   :  { %v410_v3 = vadd.f32 %v665_v62, %v332_v1 }
  0xac   :  { %v617_v4 = vpack.c.bf16 %v410_v3, %v409_v2  ;;  %v303_v5 = vpop.f32.mrf.mxu2 }
  0xad   :  { %v351_v6 = vpop.f32.mrf.mxu3 }
  0xae   :  { %618 = vst [vmem:[%s836_s3] sm:$0xff] %v617_v4   ;;  %v291_v7 = vpop.f32.mrf.mxu0 }
  0xaf   :  { %v334_v8 = vpop.f32.mrf.mxu1 }
  0xb0   :  { %v335_v11 = vadd.f32 %v334_v8, %v291_v7 }
  0xb2   :  { %v411_v15 = vadd.f32 %v665_v62, %v335_v11 }
  0xb4   :  { %v306_v9 = vpop.f32.mrf.mxu2 }
  0xb5   :  { %v354_v10 = vpop.f32.mrf.mxu3  ;;  %v350_v17 = vadd.f32 %v349_v60, %v306_v9 }
  0xb6   :  { %v293_v12 = vpop.f32.mrf.mxu0 }
  0xb7   :  { %v336_v13 = vpop.f32.mrf.mxu1  ;;  %v417_v23 = vadd.f32 %v665_v62, %v350_v17 }
  0xb8   :  { %v337_v14 = vadd.f32 %v336_v13, %v293_v12 }
  0xba   :  { %v412_v16 = vadd.f32 %v665_v62, %v337_v14 }
  0xbc   :  { %v622_v18 = vpack.c.bf16 %v412_v16, %v411_v15  ;;  %v308_v19 = vpop.f32.mrf.mxu2 }
  0xbd   :  { %v352_v20 = vadd.f32 %v351_v6, %v308_v19  ;;  %v356_v21 = vpop.f32.mrf.mxu3 }
  0xbe   :  { %644 = vst [vmem:[%s836_s3 + $0x8] sm:$0xff] %v622_v18   ;;  %v296_v22 = vpop.f32.mrf.mxu0 }
  0xbf   :  { %v418_v24 = vadd.f32 %v665_v62, %v352_v20  ;;  %v339_v25 = vpop.f32.mrf.mxu1 }
  0xc0   :  { %v340_v29 = vadd.f32 %v339_v25, %v296_v22 }
  0xc1   :  { %v637_v26 = vpack.c.bf16 %v418_v24, %v417_v23 }
  0xc2   :  { %v413_v33 = vadd.f32 %v665_v62, %v340_v29 }
  0xc3   :  { %647 = vst [vmem:[%s836_s3 + $0x20] sm:$0xff] %v637_v26  }
  0xc4   :  { %v311_v27 = vpop.f32.mrf.mxu2 }
  0xc5   :  { %v359_v28 = vpop.f32.mrf.mxu3  ;;  %v355_v35 = vadd.f32 %v354_v10, %v311_v27 }
  0xc6   :  { %v298_v30 = vpop.f32.mrf.mxu0 }
  0xc7   :  { %v341_v31 = vpop.f32.mrf.mxu1  ;;  %v419_v40 = vadd.f32 %v665_v62, %v355_v35 }
  0xc8   :  { %v342_v32 = vadd.f32 %v341_v31, %v298_v30 }
  0xca   :  { %v414_v34 = vadd.f32 %v665_v62, %v342_v32 }
  0xcc   :  { %v627_v36 = vpack.c.bf16 %v414_v34, %v413_v33  ;;  %v313_v37 = vpop.f32.mrf.mxu2 }
  0xcd   :  { %v357_v38 = vadd.f32 %v356_v21, %v313_v37  ;;  %v361_v39 = vpop.f32.mrf.mxu3 }
  0xce   :  { %645 = vst [vmem:[%s836_s3 + $0x10] sm:$0xff] %v627_v36  }
  0xcf   :  { %v420_v41 = vadd.f32 %v665_v62, %v357_v38  ;;  %v344_v42 = vpop.f32.mrf.mxu1 }
  0xd0   :  { %v345_v46 = vadd.f32 %v344_v42, %v301_v59 }
  0xd1   :  { %v642_v43 = vpack.c.bf16 %v420_v41, %v419_v40 }
  0xd2   :  { %v415_v51 = vadd.f32 %v665_v62, %v345_v46 }
  0xd3   :  { %648 = vst [vmem:[%s836_s3 + $0x28] sm:$0xff] %v642_v43  }
  0xd4   :  { %v316_v44 = vpop.f32.mrf.mxu2 }
  0xd5   :  { %v360_v45 = vadd.f32 %v359_v28, %v316_v44 }
  0xd7   :  { %v421_v47 = vadd.f32 %v665_v62, %v360_v45  ;;  %v346_v48 = vpop.f32.mrf.mxu1 }
  0xd8   :  { %v347_v49 = vadd.f32 %v346_v48, %v303_v5 }
  0xd9   :  { %v434_v50 = vpack.c.bf16 %v421_v47, %v421_v47 }
  0xda   :  { %v416_v52 = vadd.f32 %v665_v62, %v347_v49 }
  0xdb   :  { %447 = vst [vmem:[%s836_s3 + $0x30] sm:$0xf] %v434_v50 }
  0xdc   :  { %v632_v53 = vpack.c.bf16 %v416_v52, %v415_v51  ;;  %v318_v54 = vpop.f32.mrf.mxu2 }
  0xde   :  { %646 = vst [vmem:[%s836_s3 + $0x18] sm:$0xff] %v632_v53  }

// kernel: _lambda_.28
= control target key start
LH: loop header
LB: loop body
LE: loop exit
PB: predicated region body
PF: predicated region fallthrough
CT: control target
= control target key end

     0   :  { %s559_s18 = smov 0   ;;  %s561_s19 = smov 0   ;;  %s622_s0 = inlined_call_operand.vmem [shape: bf16[2,49,32], index: 0, kind: input, shape index: {}]   ;;  %s623_s1 = inlined_call_operand.vmem [shape: bf16[32,8], index: 1, kind: input, shape index: {}]   ;;  %s624_s2 = inlined_call_operand.vmem [shape: f32[1,8], index: 2, kind: input, shape index: {}]   ;;  %s625_s3 = inlined_call_operand.vmem [shape: bf16[8,32], index: 3, kind: input, shape index: {}]   ;;  %s626_s4 = inlined_call_operand.vmem [shape: f32[1,32], index: 4, kind: input, shape index: {}]   ;;  %s627_s5 = inlined_call_operand.vmem [shape: f32[2,1,32], index: 5, kind: output, shape index: {}]  }
   0x1   :  { %s563_s20 = smov 0  }
   0x2 LB: > { %s27_s21 = sadd.s32 1, %s522_s19  ;;  %p443_p0 = scmp.ge.s32.totalorder %s526_s20, 1  ;;  %s526_s20 = sphi %s563_s20, %s15_s20   ;;  %s522_s19 = sphi %s561_s19, %s629_s19   ;;  %s518_s18 = sphi %s559_s18, %s628_s18  }
   0x3   : > { %p29_p1 = scmp.ge.s32.totalorder %s27_s21, 2  ;;  %p206_p2 = scmp.lt.s32.totalorder %s526_s20, 3 }
   0x5   : > { %s631_s21 = smov (%p29_p1, %s27_s21), 0  ;;  %p207_p3 = pnand %p443_p0, %p206_p2 }
   0x6   : > { %p237_p4 = scmp.lt.s32.totalorder (!%p207_p3), %s518_s18, 1 }
   0x7   : > { %210 = sbr.rel (%p207_p3) target bundleno = 347 (0x15b), region = 40 }
   0xc   : > { %v459_v0 = vld [vmem:[%s623_s1 + $0x8] sm:$0xff]  ;;  %vm254_vm0 = vcmask 253952   ;;  %v528_v1 = vmov 0.0   ;;  %v458_v2 = vld [vmem:[%s623_s1] sm:$0xff]  ;;  %s633_s18 = smov (!%p237_p4, %s518_s18), 1  ;;  %vm271_vm1 = vcmask 261120  }
   0xd   : > { %255 = vst.msk [vmem:[#allocation2] sm:$0x1] %vm254_vm0, %v528_v1  ;;  %326 = vmatpush.bf16.msra.mxu0 %v459_v0  ;;  %s474_s26 = smul.u32 28, %s633_s18  ;;  %v335_v38 = vld [vmem:[%s625_s3] sm:$0xf]  ;;  %vm341_vm2 = vcmask 1043456   ;;  %s248_s13 = scalar_lea.vmem %s627_s5, %s633_s18 }
   0xe   : > { %v343_v39 = vsel %vm341_vm2, %v335_v38, 0  ;;  %v304_v40 = vld [vmem:[%s624_s2] sm:$0x1]  ;;  %vm337_vm3 = vcmask 64512  }
   0xf   : > { %s244_s29 = scalar_lea.vmem %s622_s0, %s474_s26  ;;  %352 = vmatpush.bf16.msra.mxu1 %v343_v39  ;;  %v336_v46 = vld [vmem:[%s626_s4] sm:$0x1] }
  0x10   : > { %v461_v3 = vld [vmem:[%s244_s29] sm:$0xff]   ;;  %v472_v4 = vld [vmem:[%s244_s29 + $0x8] sm:$0xff]   ;;  %v473_v5 = vld [vmem:[%s244_s29 + $0x10] sm:$0xff]  }
  0x11   : > { %327 = vmatpush.bf16.msra.mxu0 %v458_v2  ;;  %v462_v6 = vunpack.c.l.bf16 %v461_v3  ;;  %v463_v7 = vunpack.c.h.bf16 %v461_v3  ;;  %v466_v8 = vunpack.c.l.bf16 %v472_v4  ;;  %v467_v9 = vunpack.c.h.bf16 %v472_v4  ;;  %v263_v14 = vld [vmem:[%s244_s29 + $0x18] sm:$0x1] }
  0x12   : > { %v470_v10 = vunpack.c.l.bf16 %v473_v5  ;;  %v471_v16 = vunpack.c.h.bf16 %v473_v5  ;;  %v270_v19 = vunpack.c.l.bf16 %v263_v14 }
  0x13   : > { %v272_v11 = vsel %vm271_vm1, %v462_v6, 0.0  ;;  %v273_v12 = vsel %vm271_vm1, %v463_v7, 0.0  ;;  %v275_v13 = vsel %vm271_vm1, %v466_v8, 0.0  ;;  %v277_v17 = vsel %vm271_vm1, %v467_v9, 0.0 }
  0x14   : > { %v274_v15 = vadd.f32 %v273_v12, %v272_v11  ;;  %v279_v20 = vsel %vm271_vm1, %v470_v10, 0.0  ;;  %v281_v22 = vsel %vm271_vm1, %v471_v16, 0.0  ;;  %v284_v24 = vsel %vm254_vm0, %v270_v19, 0.0  ;;  %v256_v32 = vld [vmem:[#allocation2] sm:$0x1] }
  0x16   : > { %v276_v18 = vadd.f32 %v275_v13, %v274_v15 }
  0x18   : > { %v278_v21 = vadd.f32 %v277_v17, %v276_v18 }
  0x1a   : > { %v280_v23 = vadd.f32 %v279_v20, %v278_v21 }
  0x1c   : > { %v282_v25 = vadd.f32 %v281_v22, %v280_v23 }
  0x1e   : > { %v285_v26 = vadd.f32 %v284_v24, %v282_v25 }
  0x20   : > { %v286_v27 = vrot.slane %v285_v26, 4 }
  0x22   : > { %v287_v28 = vadd.f32 %v286_v27, %v285_v26 }
  0x24   : > { %v288_v29 = vrot.slane %v287_v28, 2 }
  0x26   : > { %v289_v30 = vadd.f32 %v288_v29, %v287_v28 }
  0x28   : > { %v290_v31 = vrot.slane %v289_v30, 1 }
  0x2a   : > { %v291_v33 = vadd.f32 %v290_v31, %v289_v30 }
  0x2c   : > { %v292_v34 = vadd.f32 %v291_v33, %v256_v32 }
  0x2e   : > { %293 = vst.msk [vmem:[#allocation2] sm:$0x1] %vm254_vm0, %v292_v34 }
  0x35   : > { %v297_v35 = vld [vmem:[#allocation2] sm:$0x1] }
  0x36   : > { %v298_v36 = vmul.f32 0.020408163, %v297_v35 }
  0x38   : > { %v299_v37 = vpack.c.bf16 %v298_v36, %v298_v36 }
  0x3a   : > { %453 = vmatmul.msk.bf16.vlgmr.msra.gmra.mxu0 %vm271_vm1, %v299_v37 }
  0xb7   : > { %v329_v41 = vpop.f32.mrf.mxu0 }
  0xb8   : > { %v330_v42 = vadd.f32 %v329_v41, %v304_v40 }
  0xba   : > { %v333_v43 = vmax.f32 %v330_v42, 0.0 }
  0xbc   : > { %v334_v44 = vpack.c.bf16 %v333_v43, %v333_v43 }
  0xbe   : > { %454 = vmatmul.msk.bf16.vlgmr.msra.gmra.mxu1 %vm337_vm3, %v334_v44 }
  0xbf   : > { %v331_v45 = vpop.f32.mrf.mxu0 }
 0x13b   : > { %v354_v47 = vpop.f32.mrf.mxu1 }
 0x13c   : > { %v355_v48 = vadd.f32 %v354_v47, %v336_v46 }
 0x13e   : > { %v455_v49 = vmul.f32 -1.442695, %v355_v48 }
 0x140   : > { %500 = vpow2.f32 %v455_v49 }
 0x143   : > { %v356_v50 = vpop.f32.mrf.mxu1 }
 0x146   : > { %v501_v51 = vpop.eup %500 }
 0x147   : > { %v361_v52 = vadd.f32 1.0, %v501_v51 }
 0x149   : > { %502 = vrcp.f32 %v361_v52  ;;  %v373_v56 = vand.u32 2147483648, %v361_v52  ;;  %v371_v58 = vand.u32 2147483647, %v361_v52  ;;  %vm367_vm5 = vweird.f32 %v361_v52 }
 0x14b   : > { %v374_v60 = vor.u32 1.1754944e-38, %v373_v56  ;;  %vm372_vm7 = vcmp.eq.f32.partialorder %v371_v58, 8.507059e+37 }
 0x14f   : > { %v503_v53 = vpop.eup %502 }
 0x150   : > { %v363_v54 = vmul.f32 %v503_v53, %v361_v52  ;;  %vm368_vm4 = vweird.f32 %v503_v53 }
 0x151   : > { %vm369_vm6 = vmor %vm367_vm5, %vm368_vm4 }
 0x152   : > { %v364_v55 = vsub.f32 1.0, %v363_v54 }
 0x154   : > { %v365_v57 = vmul.f32 %v503_v53, %v364_v55 }
 0x156   : > { %v366_v59 = vadd.f32 %v503_v53, %v365_v57 }
 0x158   : > { %v370_v61 = vsel %vm369_vm6, %v503_v53, %v366_v59 }
 0x159   : > { %v375_v62 = vsel %vm372_vm7, %v374_v60, %v370_v61 }
 0x15a   : > { %377 = vst.msk [vmem:[%s248_s13] sm:$0x1] %vm254_vm0, %v375_v62 }
 0x15b PF: > { %s15_s20 = sadd.s32 1, %s526_s20   ;;  %s628_s18 = smov %s522_s19 }
 0x15c   : > { %p12_p5 = scmp.ge.s32.totalorder %s15_s20, 4   ;;  %s629_s19 = smov %s631_s21 }
 0x15e   :  { %14 = sbr.rel (!%p12_p5) target bundleno = 2 (0x2), region = 78 }

// kernel: _lambda_.26
= control target key start
LH: loop header
LB: loop body
LE: loop exit
PB: predicated region body
PF: predicated region fallthrough
CT: control target
= control target key end

     0   :  { %s1033_s12 = smov 0   ;;  %s1035_s13 = smov 0   ;;  %s1151_s0 = inlined_call_operand.vmem [shape: bf16[2,104,128], index: 0, kind: input, shape index: {}]   ;;  %s1152_s1 = inlined_call_operand.vmem [shape: bf16[2,128,128], index: 1, kind: input, shape index: {}]   ;;  %s1153_s2 = inlined_call_operand.vmem [shape: f32[1,256], index: 2, kind: input, shape index: {}]   ;;  %s1154_s3 = inlined_call_operand.vmem [shape: bf16[104,256], index: 3, kind: output, shape index: {}]  }
   0x1   :  { %s1037_s14 = smov 0   ;;  %s1039_s15 = smov 0  }
   0x2   :  { %s1041_s16 = smov 0  }
   0x3 LB: > { %s789_s17 = sadd.s32 4294967295, %s1011_s16   ;;  %s39_s18 = sadd.s32 1, %s1007_s15  ;;  %s1011_s16 = sphi %s1041_s16, %s13_s16   ;;  %s1007_s15 = sphi %s1039_s15, %s1159_s15   ;;  %s1003_s14 = sphi %s1037_s14, %s1158_s14   ;;  %s999_s13 = sphi %s1035_s13, %s1157_s13   ;;  %s995_s12 = sphi %s1033_s12, %s1156_s12  }
   0x4   : > { %p41_p0 = scmp.ge.s32.totalorder %s39_s18, 2  ;;  %s138_s19 = sadd.s32 1, %s999_s13 }
   0x5   : > { %p148_p1 = scmp.ne.s32.totalorder %s999_s13, %s995_s12  ;;  %p149_p2 = scmp.eq.s32.totalorder %s789_s17, 1 }
   0x6   : > { %s1161_s18 = smov (%p41_p0, %s39_s18), 0  ;;  %p793_p4 = scmp.ge.s32.totalorder %s1011_s16, 1 }
   0x7   : > { %p1065_p3 = por %p149_p2, %p148_p1  ;;  %s134_s21 = ssub.s32 %s1007_s15, %s1161_s18 }
   0x8   : > { %p213_p5 = scmp.lt.s32.totalorder %s1011_s16, 3  ;;  %p136_p6 = scmp.eq.s32.totalorder %s134_s21, 0 }
   0xa   : > { %p214_p7 = pnand %p793_p4, %p213_p5 }
   0xb   : > { %s1074_s22 = scalar_select %p136_p6, %s999_s13, %s138_s19  }
   0xc   : > { %217 = sbr.rel (%p214_p7) target bundleno = 225 (0xe1), region = 32  ;;  %p260_p8 = scmp.lt.s32.totalorder (!%p214_p7), %s1003_s14, 1 }
   0xd   : > { %s256_s10 = sand.u32 (!%p214_p7), 1, %s995_s12  }
   0xe   : > { %s930_s11 = smul.u32 (!%p214_p7), 52, %s256_s10 }
  0x10   : > { %s1108_s17 = scalar_lea.vmem (!%p214_p7), [#allocation3], %s930_s11 }
  0x11   : > { %s1078_s23 = scalar_select %p260_p8, %s1003_s14, 1 }
  0x12   : > { %s853_s12 = sshll.u32 (%p1065_p3), %s1003_s14, 2 }
  0x13   : > { %s856_s24 = sshll.u32 %s1078_s23, 6  ;;  %s288_s27 = scalar_lea.vmem %s1153_s2, %s1078_s23 }
  0x14   : > { %s1088_s30 = scalar_lea.vmem %s1152_s1, %s856_s24  ;;  %s931_s4 = smul.u32 52, %s1078_s23  ;;  %v972_v19 = vld [vmem:[%s288_s27] ss:$0 sm:$0xff] }
  0x15   : > { %v870_v0 = vld [vmem:[%s1088_s30 + $0x38] sm:$0xff]  ;;  %v869_v1 = vld [vmem:[%s1088_s30 + $0x30] sm:$0xff]  ;;  %v868_v2 = vld [vmem:[%s1088_s30 + $0x28] sm:$0xff]  ;;  %s592_s23 = scalar_lea.vmem (%p1065_p3), %s1154_s3, %s853_s12 }
  0x16   : > { %906 = vmatpush.bf16.msra.mxu1 %v870_v0  ;;  %907 = vmatpush.bf16.msra.mxu2 %v870_v0  ;;  %v867_v3 = vld [vmem:[%s1088_s30 + $0x20] sm:$0xff]  ;;  %v866_v4 = vld [vmem:[%s1088_s30 + $0x18] sm:$0xff]  ;;  %v865_v5 = vld [vmem:[%s1088_s30 + $0x10] sm:$0xff]  ;;  %s270_s7 = scalar_lea.vmem %s1151_s0, %s931_s4 }
  0x17   : > { %908 = vmatpush.bf16.msra.mxu3 %v870_v0  ;;  %439 = vmatpush.bf16.msra.mxu0 %v870_v0  ;;  %v864_v6 = vld [vmem:[%s1088_s30 + $0x8] sm:$0xff]  ;;  %v863_v7 = vld [vmem:[%s1088_s30] sm:$0xff]  ;;  %v860_v9 = vld [vmem:[%s270_s7 + $0x18] sm:$0xff] }
  0x18   : > { %v858_v8 = vld [vmem:[%s270_s7 + $0x8] sm:$0xff]  ;;  %v857_v11 = vld [vmem:[%s270_s7] sm:$0xff]  ;;  %v334_v12 = vld [vmem:[%s270_s7 + $0x30] sm:$0xf] }
  0x19   : > { %v862_v10 = vld [vmem:[%s270_s7 + $0x28] sm:$0xff]  ;;  %v376_v13 = vunpack.c.l.b16 %v334_v12  ;;  %v859_v14 = vld [vmem:[%s270_s7 + $0x10] sm:$0xff]  ;;  %v861_v15 = vld [vmem:[%s270_s7 + $0x20] sm:$0xff] }
  0x1a   : > { %909 = vmatpush.bf16.msra.mxu1 %v869_v1  ;;  %910 = vmatpush.bf16.msra.mxu2 %v869_v1 }
  0x1b   : > { %911 = vmatpush.bf16.msra.mxu3 %v869_v1  ;;  %440 = vmatpush.bf16.msra.mxu0 %v869_v1  ;;  %v383_v16 = vpack.c.b16 %v376_v13, %v376_v13 }
  0x1e   : > { %912 = vmatpush.bf16.msra.mxu1 %v868_v2  ;;  %913 = vmatpush.bf16.msra.mxu2 %v868_v2 }
  0x1f   : > { %914 = vmatpush.bf16.msra.mxu3 %v868_v2  ;;  %441 = vmatpush.bf16.msra.mxu0 %v868_v2 }
  0x22   : > { %915 = vmatpush.bf16.msra.mxu1 %v867_v3  ;;  %916 = vmatpush.bf16.msra.mxu2 %v867_v3 }
  0x23   : > { %917 = vmatpush.bf16.msra.mxu3 %v867_v3  ;;  %442 = vmatpush.bf16.msra.mxu0 %v867_v3 }
  0x26   : > { %918 = vmatpush.bf16.msra.mxu1 %v866_v4  ;;  %919 = vmatpush.bf16.msra.mxu2 %v866_v4 }
  0x27   : > { %920 = vmatpush.bf16.msra.mxu3 %v866_v4  ;;  %443 = vmatpush.bf16.msra.mxu0 %v866_v4 }
  0x2a   : > { %921 = vmatpush.bf16.msra.mxu1 %v865_v5  ;;  %922 = vmatpush.bf16.msra.mxu2 %v865_v5 }
  0x2b   : > { %923 = vmatpush.bf16.msra.mxu3 %v865_v5  ;;  %444 = vmatpush.bf16.msra.mxu0 %v865_v5 }
  0x2e   : > { %924 = vmatpush.bf16.msra.mxu1 %v864_v6  ;;  %925 = vmatpush.bf16.msra.mxu2 %v864_v6 }
  0x2f   : > { %926 = vmatpush.bf16.msra.mxu3 %v864_v6  ;;  %445 = vmatpush.bf16.msra.mxu0 %v864_v6 }
  0x32   : > { %927 = vmatpush.bf16.msra.mxu1 %v863_v7  ;;  %928 = vmatpush.bf16.msra.mxu2 %v863_v7 }
  0x33   : > { %929 = vmatpush.bf16.msra.mxu3 %v863_v7  ;;  %446 = vmatpush.bf16.msra.mxu0 %v863_v7 }
  0x35   : > { %452 = vmatmul.bf16.vlgmr.msra.gmra.mxu1 %v858_v8  ;;  %462 = vmatmul.bf16.vlgmr.msra.gmra.mxu2 %v860_v9 }
  0x36   : > { %472 = vmatmul.bf16.vlgmr.msra.gmra.mxu3 %v862_v10  ;;  %447 = vmatmul.bf16.vlgmr.msra.gmra.mxu0 %v857_v11 }
  0x45   : > { %457 = vmatmul.bf16.gmra.mxu1 %v859_v14  ;;  %467 = vmatmul.bf16.gmra.mxu2 %v861_v15 }
  0x46   : > { %477 = vmatmul.bf16.gmra.mxu3 %v383_v16 }
  0xb2   : > { %v453_v17 = vpop.f32.mrf.mxu1 }
  0xb3   : > { %v448_v18 = vpop.f32.mrf.mxu0  ;;  %v530_v22 = vadd.f32 %v972_v19, %v453_v17 }
  0xb4   : > { %v528_v21 = vadd.f32 %v972_v19, %v448_v18 }
  0xb5   : > { %v543_v29 = vmax.f32 %v530_v22, 0.0 }
  0xb6   : > { %v541_v27 = vmax.f32 %v528_v21, 0.0 }
  0xb8   : > { %v463_v20 = vpop.f32.mrf.mxu2 }
  0xb9   : > { %v473_v23 = vpop.f32.mrf.mxu3  ;;  %v534_v33 = vadd.f32 %v972_v19, %v463_v20 }
  0xba   : > { %v455_v24 = vpop.f32.mrf.mxu1  ;;  %v538_v31 = vadd.f32 %v972_v19, %v473_v23 }
  0xbb   : > { %v531_v25 = vadd.f32 %v972_v19, %v455_v24  ;;  %v450_v26 = vpop.f32.mrf.mxu0  ;;  %v547_v42 = vmax.f32 %v534_v33, 0.0 }
  0xbc   : > { %v529_v28 = vadd.f32 %v972_v19, %v450_v26  ;;  %v551_v39 = vmax.f32 %v538_v31, 0.0 }
  0xbd   : > { %v544_v30 = vmax.f32 %v531_v25, 0.0 }
  0xbe   : > { %v542_v32 = vmax.f32 %v529_v28, 0.0 }
  0xbf   : > { %v879_v34 = vpack.c.bf16 %v544_v30, %v543_v29 }
  0xc0   : > { %v465_v35 = vpop.f32.mrf.mxu2  ;;  %v874_v36 = vpack.c.bf16 %v542_v32, %v541_v27 }
  0xc1   : > { %901 = vst [vmem:[%s1108_s17 + $0x8] sm:$0xff] %v879_v34   ;;  %v535_v37 = vadd.f32 %v972_v19, %v465_v35  ;;  %v475_v38 = vpop.f32.mrf.mxu3 }
  0xc2   : > { %v539_v40 = vadd.f32 %v972_v19, %v475_v38  ;;  %v458_v41 = vpop.f32.mrf.mxu1  ;;  %875 = vst [vmem:[%s1108_s17] sm:$0xff] %v874_v36  }
  0xc3   : > { %v548_v43 = vmax.f32 %v535_v37, 0.0  ;;  %v532_v48 = vadd.f32 %v972_v19, %v458_v41 }
  0xc4   : > { %v552_v44 = vmax.f32 %v539_v40, 0.0 }
  0xc5   : > { %v889_v45 = vpack.c.bf16 %v548_v43, %v547_v42  ;;  %v545_v54 = vmax.f32 %v532_v48, 0.0 }
  0xc6   : > { %v899_v46 = vpack.c.bf16 %v552_v44, %v551_v39 }
  0xc7   : > { %903 = vst [vmem:[%s1108_s17 + $0x18] sm:$0xff] %v889_v45  }
  0xc8   : > { %905 = vst [vmem:[%s1108_s17 + $0x28] sm:$0xff] %v899_v46   ;;  %v468_v47 = vpop.f32.mrf.mxu2  ;;  %v613_v3 = vld [vmem:[%s1108_s17 + $0x8] sm:$0xf] (%p1065_p3)  ;;  %v615_v4 = vld [vmem:[%s1108_s17 + $0xc] sm:$0xf] (%p1065_p3) }
  0xc9   : > { %v478_v49 = vpop.f32.mrf.mxu3  ;;  %v536_v57 = vadd.f32 %v972_v19, %v468_v47  ;;  %v609_v1 = vld [vmem:[%s1108_s17] sm:$0xf] (%p1065_p3)  ;;  %v611_v2 = vld [vmem:[%s1108_s17 + $0x4] sm:$0xf] (%p1065_p3)  ;;  %614 = vst [vmem:[%s592_s23 + $0x10] sm:$0xf] (%p1065_p3), %v613_v3 }
  0xca   : > { %v540_v50 = vadd.f32 %v972_v19, %v478_v49  ;;  %v460_v51 = vpop.f32.mrf.mxu1  ;;  %610 = vst [vmem:[%s592_s23] sm:$0xf] (%p1065_p3), %v609_v1 }
  0xcb   : > { %v533_v52 = vadd.f32 %v972_v19, %v460_v51  ;;  %v549_v62 = vmax.f32 %v536_v57, 0.0  ;;  %612 = vst [vmem:[%s592_s23 + $0x8] sm:$0xf] (%p1065_p3), %v611_v2 }
  0xcc   : > { %v553_v53 = vmax.f32 %v540_v50, 0.0  ;;  %616 = vst [vmem:[%s592_s23 + $0x18] sm:$0xf] (%p1065_p3), %v615_v4 }
  0xcd   : > { %v546_v55 = vmax.f32 %v533_v52, 0.0 }
  0xce   : > { %v566_v56 = vpack.c.bf16 %v553_v53, %v553_v53  ;;  %v621_v7 = vld [vmem:[%s1108_s17 + $0x18] sm:$0xf] (%p1065_p3)  ;;  %v623_v8 = vld [vmem:[%s1108_s17 + $0x1c] sm:$0xf] (%p1065_p3) }
  0xcf   : > { %v884_v58 = vpack.c.bf16 %v546_v55, %v545_v54  ;;  %622 = vst [vmem:[%s592_s23 + $0x30] sm:$0xf] (%p1065_p3), %v621_v7  ;;  %v629_v11 = vld [vmem:[%s1108_s17 + $0x28] sm:$0xf] (%p1065_p3)  ;;  %v631_v12 = vld [vmem:[%s1108_s17 + $0x2c] sm:$0xf] (%p1065_p3) }
  0xd0   : > { %579 = vst [vmem:[%s1108_s17 + $0x30] sm:$0xf] %v566_v56  ;;  %v470_v59 = vpop.f32.mrf.mxu2 }
  0xd1   : > { %902 = vst [vmem:[%s1108_s17 + $0x10] sm:$0xff] %v884_v58   ;;  %v537_v60 = vadd.f32 %v972_v19, %v470_v59  ;;  %v480_v61 = vpop.f32.mrf.mxu3 }
  0xd2   : > { %624 = vst [vmem:[%s592_s23 + $0x38] sm:$0xf] (%p1065_p3), %v623_v8 }
  0xd3   : > { %v550_v63 = vmax.f32 %v537_v60, 0.0  ;;  %586 = sbr.rel (!%p1065_p3) target bundleno = 225 (0xe1), region = 44  ;;  %630 = vst [vmem:[%s592_s23 + $0x50] sm:$0xf] (%p1065_p3), %v629_v11 }
  0xd4   : > { %632 = vst [vmem:[%s592_s23 + $0x58] sm:$0xf] (%p1065_p3), %v631_v12 }
  0xd5   : > { %v894_v0 = vpack.c.bf16 %v550_v63, %v549_v62 }
  0xd7   : > { %904 = vst [vmem:[%s1108_s17 + $0x20] sm:$0xff] %v894_v0   ;;  %v633_v13 = vld [vmem:[%s1108_s17 + $0x30] sm:$0xf] (%p1065_p3) }
  0xd8   : > { %v617_v5 = vld [vmem:[%s1108_s17 + $0x10] sm:$0xf]  ;;  %v619_v6 = vld [vmem:[%s1108_s17 + $0x14] sm:$0xf]  ;;  %634 = vst [vmem:[%s592_s23 + $0x60] sm:$0xf] %v633_v13 }
  0xd9   : > { %618 = vst [vmem:[%s592_s23 + $0x20] sm:$0xf] %v617_v5 }
  0xda   : > { %620 = vst [vmem:[%s592_s23 + $0x28] sm:$0xf] %v619_v6 }
  0xde   : > { %v625_v9 = vld [vmem:[%s1108_s17 + $0x20] sm:$0xf]  ;;  %v627_v10 = vld [vmem:[%s1108_s17 + $0x24] sm:$0xf] }
  0xdf   : > { %626 = vst [vmem:[%s592_s23 + $0x40] sm:$0xf] %v625_v9 }
  0xe0   : > { %628 = vst [vmem:[%s592_s23 + $0x48] sm:$0xf] %v627_v10 }
  0xe1 PF: > { %s13_s16 = sadd.s32 1, %s1011_s16   ;;  %s1156_s12 = smov %s999_s13 }
  0xe2   : > { %p10_p9 = scmp.ge.s32.totalorder %s13_s16, 4   ;;  %s1157_s13 = smov %s1074_s22 }
  0xe3   : > { %s1158_s14 = smov %s1007_s15  ;;  %s1159_s15 = smov %s1161_s18 }
  0xe4   :  { %12 = sbr.rel (!%p10_p9) target bundleno = 3 (0x3), region = 117 }

// kernel: _lambda_.27
= control target key start
LH: loop header
LB: loop body
LE: loop exit
PB: predicated region body
PF: predicated region fallthrough
CT: control target
= control target key end

     0   :  { %s559_s1 = inlined_call_operand.vmem [shape: bf16[1,128,128], index: 1, kind: input, shape index: {}]   ;;  %s560_s2 = inlined_call_operand.vmem [shape: f32[1,128], index: 2, kind: input, shape index: {}]   ;;  %s561_s0 = inlined_call_operand.vmem [shape: bf16[1,104,128], index: 0, kind: input, shape index: {}]   ;;  %s562_s3 = inlined_call_operand.vmem [shape: bf16[104,128], index: 3, kind: output, shape index: {}]  }
   0x1   :  { %v409_v0 = vld [vmem:[%s559_s1 + $0x38] sm:$0xff]  ;;  %v408_v1 = vld [vmem:[%s559_s1 + $0x30] sm:$0xff]  ;;  %v407_v2 = vld [vmem:[%s559_s1 + $0x28] sm:$0xff] }
   0x2   :  { %445 = vmatpush.bf16.msra.mxu1 %v409_v0  ;;  %446 = vmatpush.bf16.msra.mxu2 %v409_v0  ;;  %v406_v3 = vld [vmem:[%s559_s1 + $0x20] sm:$0xff]  ;;  %v405_v4 = vld [vmem:[%s559_s1 + $0x18] sm:$0xff]  ;;  %v404_v5 = vld [vmem:[%s559_s1 + $0x10] sm:$0xff] }
   0x3   :  { %447 = vmatpush.bf16.msra.mxu3 %v409_v0  ;;  %186 = vmatpush.bf16.msra.mxu0 %v409_v0  ;;  %v403_v6 = vld [vmem:[%s559_s1 + $0x8] sm:$0xff]  ;;  %v402_v7 = vld [vmem:[%s559_s1] sm:$0xff]  ;;  %v399_v9 = vld [vmem:[%s561_s0 + $0x18] sm:$0xff] }
   0x4   :  { %v397_v8 = vld [vmem:[%s561_s0 + $0x8] sm:$0xff]  ;;  %v396_v11 = vld [vmem:[%s561_s0] sm:$0xff]  ;;  %v81_v12 = vld [vmem:[%s561_s0 + $0x30] sm:$0xf] }
   0x5   :  { %v401_v10 = vld [vmem:[%s561_s0 + $0x28] sm:$0xff]  ;;  %v123_v13 = vunpack.c.l.b16 %v81_v12  ;;  %v398_v14 = vld [vmem:[%s561_s0 + $0x10] sm:$0xff]  ;;  %v400_v15 = vld [vmem:[%s561_s0 + $0x20] sm:$0xff] }
   0x6   :  { %448 = vmatpush.bf16.msra.mxu1 %v408_v1  ;;  %449 = vmatpush.bf16.msra.mxu2 %v408_v1  ;;  %v469_v19 = vld [vmem:[%s560_s2] ss:$0 sm:$0xff] }
   0x7   :  { %450 = vmatpush.bf16.msra.mxu3 %v408_v1  ;;  %187 = vmatpush.bf16.msra.mxu0 %v408_v1  ;;  %v130_v16 = vpack.c.b16 %v123_v13, %v123_v13 }
   0xa   :  { %451 = vmatpush.bf16.msra.mxu1 %v407_v2  ;;  %452 = vmatpush.bf16.msra.mxu2 %v407_v2 }
   0xb   :  { %453 = vmatpush.bf16.msra.mxu3 %v407_v2  ;;  %188 = vmatpush.bf16.msra.mxu0 %v407_v2 }
   0xe   :  { %454 = vmatpush.bf16.msra.mxu1 %v406_v3  ;;  %455 = vmatpush.bf16.msra.mxu2 %v406_v3 }
   0xf   :  { %456 = vmatpush.bf16.msra.mxu3 %v406_v3  ;;  %189 = vmatpush.bf16.msra.mxu0 %v406_v3 }
  0x12   :  { %457 = vmatpush.bf16.msra.mxu1 %v405_v4  ;;  %458 = vmatpush.bf16.msra.mxu2 %v405_v4 }
  0x13   :  { %459 = vmatpush.bf16.msra.mxu3 %v405_v4  ;;  %190 = vmatpush.bf16.msra.mxu0 %v405_v4 }
  0x16   :  { %460 = vmatpush.bf16.msra.mxu1 %v404_v5  ;;  %461 = vmatpush.bf16.msra.mxu2 %v404_v5 }
  0x17   :  { %462 = vmatpush.bf16.msra.mxu3 %v404_v5  ;;  %191 = vmatpush.bf16.msra.mxu0 %v404_v5 }
  0x1a   :  { %463 = vmatpush.bf16.msra.mxu1 %v403_v6  ;;  %464 = vmatpush.bf16.msra.mxu2 %v403_v6 }
  0x1b   :  { %465 = vmatpush.bf16.msra.mxu3 %v403_v6  ;;  %192 = vmatpush.bf16.msra.mxu0 %v403_v6 }
  0x1e   :  { %466 = vmatpush.bf16.msra.mxu1 %v402_v7  ;;  %467 = vmatpush.bf16.msra.mxu2 %v402_v7 }
  0x1f   :  { %468 = vmatpush.bf16.msra.mxu3 %v402_v7  ;;  %193 = vmatpush.bf16.msra.mxu0 %v402_v7 }
  0x21   :  { %199 = vmatmul.bf16.vlgmr.msra.gmra.mxu1 %v397_v8  ;;  %209 = vmatmul.bf16.vlgmr.msra.gmra.mxu2 %v399_v9 }
  0x22   :  { %219 = vmatmul.bf16.vlgmr.msra.gmra.mxu3 %v401_v10  ;;  %194 = vmatmul.bf16.vlgmr.msra.gmra.mxu0 %v396_v11 }
  0x31   :  { %204 = vmatmul.bf16.gmra.mxu1 %v398_v14  ;;  %214 = vmatmul.bf16.gmra.mxu2 %v400_v15 }
  0x32   :  { %224 = vmatmul.bf16.gmra.mxu3 %v130_v16 }
  0x9e   :  { %v200_v17 = vpop.f32.mrf.mxu1 }
  0x9f   :  { %v195_v18 = vpop.f32.mrf.mxu0  ;;  %v277_v24 = vadd.f32 %v469_v19, %v200_v17 }
  0xa0   :  { %v275_v23 = vadd.f32 %v469_v19, %v195_v18 }
  0xa4   :  { %v210_v20 = vpop.f32.mrf.mxu2 }
  0xa5   :  { %v220_v21 = vpop.f32.mrf.mxu3  ;;  %v281_v31 = vadd.f32 %v469_v19, %v210_v20 }
  0xa6   :  { %v202_v22 = vpop.f32.mrf.mxu1  ;;  %v285_v34 = vadd.f32 %v469_v19, %v220_v21 }
  0xa7   :  { %v278_v25 = vadd.f32 %v469_v19, %v202_v22  ;;  %v197_v26 = vpop.f32.mrf.mxu0 }
  0xa8   :  { %v276_v27 = vadd.f32 %v469_v19, %v197_v26 }
  0xa9   :  { %v418_v28 = vpack.c.bf16 %v278_v25, %v277_v24 }
  0xaa   :  { %v413_v29 = vpack.c.bf16 %v276_v27, %v275_v23 }
  0xab   :  { %440 = vst [vmem:[%s562_s3 + $0x8] sm:$0xff] %v418_v28  }
  0xac   :  { %v212_v30 = vpop.f32.mrf.mxu2  ;;  %414 = vst [vmem:[%s562_s3] sm:$0xff] %v413_v29  }
  0xad   :  { %v282_v32 = vadd.f32 %v469_v19, %v212_v30  ;;  %v222_v33 = vpop.f32.mrf.mxu3 }
  0xae   :  { %v286_v35 = vadd.f32 %v469_v19, %v222_v33  ;;  %v205_v36 = vpop.f32.mrf.mxu1 }
  0xaf   :  { %v428_v37 = vpack.c.bf16 %v282_v32, %v281_v31  ;;  %v279_v43 = vadd.f32 %v469_v19, %v205_v36 }
  0xb0   :  { %v438_v38 = vpack.c.bf16 %v286_v35, %v285_v34 }
  0xb1   :  { %442 = vst [vmem:[%s562_s3 + $0x18] sm:$0xff] %v428_v37  }
  0xb2   :  { %444 = vst [vmem:[%s562_s3 + $0x28] sm:$0xff] %v438_v38  }
  0xb4   :  { %v215_v39 = vpop.f32.mrf.mxu2 }
  0xb5   :  { %v225_v40 = vpop.f32.mrf.mxu3  ;;  %v283_v48 = vadd.f32 %v469_v19, %v215_v39 }
  0xb6   :  { %v287_v41 = vadd.f32 %v469_v19, %v225_v40  ;;  %v207_v42 = vpop.f32.mrf.mxu1 }
  0xb7   :  { %v280_v44 = vadd.f32 %v469_v19, %v207_v42 }
  0xb8   :  { %v300_v45 = vpack.c.bf16 %v287_v41, %v287_v41 }
  0xb9   :  { %v423_v46 = vpack.c.bf16 %v280_v44, %v279_v43 }
  0xba   :  { %313 = vst [vmem:[%s562_s3 + $0x30] sm:$0xf] %v300_v45 }
  0xbb   :  { %441 = vst [vmem:[%s562_s3 + $0x10] sm:$0xff] %v423_v46  }
  0xbc   :  { %v217_v47 = vpop.f32.mrf.mxu2 }
  0xbd   :  { %v284_v49 = vadd.f32 %v469_v19, %v217_v47  ;;  %v227_v50 = vpop.f32.mrf.mxu3 }
  0xbf   :  { %v433_v51 = vpack.c.bf16 %v284_v49, %v283_v48 }
  0xc1   :  { %443 = vst [vmem:[%s562_s3 + $0x20] sm:$0xff] %v433_v51  }

// kernel: _lambda_.29
= control target key start
LH: loop header
LB: loop body
LE: loop exit
PB: predicated region body
PF: predicated region fallthrough
CT: control target
= control target key end

     0   :  { %s555_s12 = smov 0   ;;  %s557_s13 = smov 0   ;;  %s606_s0 = inlined_call_operand.vmem [shape: bf16[2,49,32], index: 0, kind: input, shape index: {}]   ;;  %s607_s1 = inlined_call_operand.vmem [shape: f32[2,1,32], index: 1, kind: input, shape index: {}]   ;;  %s608_s2 = inlined_call_operand.vmem [shape: bf16[2,49,32], index: 2, kind: input, shape index: {}]   ;;  %s609_s3 = inlined_call_operand.vmem [shape: bf16[2,49,32], index: 3, kind: output, shape index: {}]  }
   0x1   :  { %s559_s14 = smov 0  }
   0x2 LB: > { %s25_s15 = sadd.s32 1, %s529_s13  ;;  %p451_p0 = scmp.ge.s32.totalorder %s533_s14, 1  ;;  %s533_s14 = sphi %s559_s14, %s13_s14   ;;  %s529_s13 = sphi %s557_s13, %s611_s13   ;;  %s525_s12 = sphi %s555_s12, %s610_s12  }
   0x3   : > { %p27_p1 = scmp.ge.s32.totalorder %s25_s15, 2  ;;  %p183_p2 = scmp.lt.s32.totalorder %s533_s14, 3 }
   0x5   : > { %s613_s15 = smov (%p27_p1, %s25_s15), 0  ;;  %p184_p3 = pnand %p451_p0, %p183_p2 }
   0x6   : > { %p228_p4 = scmp.lt.s32.totalorder (!%p184_p3), %s525_s12, 1 }
   0x7   : > { %187 = sbr.rel (%p184_p3) target bundleno = 34 (0x22), region = 32 }
   0xc   : > { %s615_s12 = smov (!%p228_p4, %s525_s12), 1  ;;  %vm320_vm0 = vcmask 257024   ;;  %vm327_vm1 = vcmask 253952   ;;  %vm328_vm2 = vsmask.f32 256 }
   0xd   : > { %s573_s16 = smul.u32 28, %s615_s12  ;;  %s239_s19 = scalar_lea.vmem %s607_s1, %s615_s12  ;;  %vm329_vm3 = vmand %vm327_vm1, %vm328_vm2 }
   0xe   : > { %v510_v0 = vld [vmem:[%s239_s19] ss:$0 sm:$0xff] }
   0xf   : > { %s235_s22 = scalar_lea.vmem %s606_s0, %s573_s16  ;;  %s248_s25 = scalar_lea.vmem %s608_s2, %s573_s16 }
  0x10   : > { %v458_v1 = vld [vmem:[%s235_s22] sm:$0xff]   ;;  %v481_v3 = vld [vmem:[%s235_s22 + $0x8] sm:$0xff]   ;;  %v482_v9 = vld [vmem:[%s235_s22 + $0x10] sm:$0xff]   ;;  %s258_s28 = scalar_lea.vmem %s609_s3, %s573_s16 }
  0x11   : > { %v470_v2 = vld [vmem:[%s248_s25] sm:$0xff]   ;;  %v459_v4 = vunpack.c.l.bf16 %v458_v1  ;;  %v460_v6 = vunpack.c.h.bf16 %v458_v1  ;;  %v483_v8 = vld [vmem:[%s248_s25 + $0x8] sm:$0xff]   ;;  %v484_v10 = vld [vmem:[%s248_s25 + $0x10] sm:$0xff]   ;;  %v463_v11 = vunpack.c.l.bf16 %v481_v3  ;;  %v464_v13 = vunpack.c.h.bf16 %v481_v3 }
  0x12   : > { %v471_v5 = vunpack.c.l.bf16 %v470_v2  ;;  %v472_v7 = vunpack.c.h.bf16 %v470_v2  ;;  %v475_v12 = vunpack.c.l.bf16 %v483_v8  ;;  %v476_v14 = vunpack.c.h.bf16 %v483_v8  ;;  %v266_v15 = vld [vmem:[%s235_s22 + $0x18] sm:$0x1] }
  0x13   : > { %v292_v16 = vmul.f32 %v510_v0, %v459_v4  ;;  %v293_v17 = vmul.f32 %v510_v0, %v460_v6  ;;  %v467_v18 = vunpack.c.l.bf16 %v482_v9  ;;  %v479_v19 = vunpack.c.l.bf16 %v484_v10  ;;  %v280_v20 = vld [vmem:[%s248_s25 + $0x18] sm:$0x1] }
  0x14   : > { %v294_v21 = vmul.f32 %v510_v0, %v463_v11  ;;  %v295_v22 = vmul.f32 %v510_v0, %v464_v13  ;;  %v468_v23 = vunpack.c.h.bf16 %v482_v9  ;;  %v480_v24 = vunpack.c.h.bf16 %v484_v10  ;;  %v330_v50 = vld [vmem:[%s258_s28 + $0x18] sm:$0x1] }
  0x15   : > { %v299_v25 = vadd.f32 %v471_v5, %v292_v16  ;;  %v300_v26 = vadd.f32 %v472_v7, %v293_v17  ;;  %v296_v27 = vmul.f32 %v510_v0, %v467_v18  ;;  %v273_v28 = vunpack.c.l.bf16 %v266_v15 }
  0x16   : > { %v301_v29 = vadd.f32 %v475_v12, %v294_v21  ;;  %v302_v30 = vadd.f32 %v476_v14, %v295_v22  ;;  %v297_v31 = vmul.f32 %v510_v0, %v468_v23  ;;  %v287_v32 = vunpack.c.l.bf16 %v280_v20 }
  0x17   : > { %v306_v33 = vmax.f32 %v299_v25, 0.0  ;;  %v307_v34 = vmax.f32 %v300_v26, 0.0  ;;  %v303_v35 = vadd.f32 %v479_v19, %v296_v27  ;;  %v298_v36 = vmul.f32 %v510_v0, %v273_v28 }
  0x18   : > { %v308_v37 = vmax.f32 %v301_v29, 0.0  ;;  %v309_v38 = vmax.f32 %v302_v30, 0.0  ;;  %v304_v39 = vadd.f32 %v480_v24, %v297_v31 }
  0x19   : > { %v313_v40 = vpack.c.bf16 %v306_v33, %v306_v33  ;;  %v314_v41 = vpack.c.bf16 %v307_v34, %v307_v34  ;;  %v310_v42 = vmax.f32 %v303_v35, 0.0  ;;  %v305_v43 = vadd.f32 %v298_v36, %v287_v32 }
  0x1a   : > { %v315_v44 = vpack.c.bf16 %v308_v37, %v308_v37  ;;  %v316_v45 = vpack.c.bf16 %v309_v38, %v309_v38  ;;  %v311_v46 = vmax.f32 %v304_v39, 0.0 }
  0x1b   : > { %321 = vst.msk [vmem:[%s258_s28] sm:$0xf] %vm320_vm0, %v313_v40  ;;  %v317_v47 = vpack.c.bf16 %v310_v42, %v310_v42  ;;  %v312_v48 = vmax.f32 %v305_v43, 0.0 }
  0x1c   : > { %322 = vst.msk [vmem:[%s258_s28 + $0x4] sm:$0xf] %vm320_vm0, %v314_v41  ;;  %v318_v49 = vpack.c.bf16 %v311_v46, %v311_v46 }
  0x1d   : > { %323 = vst.msk [vmem:[%s258_s28 + $0x8] sm:$0xf] %vm320_vm0, %v315_v44  ;;  %v319_v51 = vpack.c.bf16 %v312_v48, %v312_v48 }
  0x1e   : > { %324 = vst.msk [vmem:[%s258_s28 + $0xc] sm:$0xf] %vm320_vm0, %v316_v45 }
  0x1f   : > { %325 = vst.msk [vmem:[%s258_s28 + $0x10] sm:$0xf] %vm320_vm0, %v317_v47  ;;  %v331_v52 = vsel %vm329_vm3, %v319_v51, %v330_v50 }
  0x20   : > { %326 = vst.msk [vmem:[%s258_s28 + $0x14] sm:$0xf] %vm320_vm0, %v318_v49 }
  0x21   : > { %332 = vst [vmem:[%s258_s28 + $0x18] sm:$0x1] %v331_v52 }
  0x22 PF: > { %s13_s14 = sadd.s32 1, %s533_s14   ;;  %s610_s12 = smov %s529_s13 }
  0x23   : > { %p10_p5 = scmp.ge.s32.totalorder %s13_s14, 4   ;;  %s611_s13 = smov %s613_s15 }
  0x25   :  { %12 = sbr.rel (!%p10_p5) target bundleno = 2 (0x2), region = 68 }

// kernel: _lambda_.30
= control target key start
LH: loop header
LB: loop body
LE: loop exit
PB: predicated region body
PF: predicated region fallthrough
CT: control target
= control target key end

     0   :  { %s335_s6 = smov 0   ;;  %s337_s7 = smov 0   ;;  %s382_s0 = inlined_call_operand.vmem [shape: bf16[2,49,32], index: 0, kind: input, shape index: {}]   ;;  %s383_s1 = inlined_call_operand.vmem [shape: f32[2,1,32], index: 1, kind: output, shape index: {}]  }
   0x1   :  { %s339_s8 = smov 0  }
   0x2 LB: > { %s23_s9 = sadd.s32 1, %s318_s7  ;;  %p256_p0 = scmp.ge.s32.totalorder %s322_s8, 1  ;;  %s322_s8 = sphi %s339_s8, %s11_s8   ;;  %s318_s7 = sphi %s337_s7, %s385_s7   ;;  %s314_s6 = sphi %s335_s6, %s384_s6  }
   0x3   : > { %p25_p1 = scmp.ge.s32.totalorder %s23_s9, 2  ;;  %p106_p2 = scmp.lt.s32.totalorder %s322_s8, 3 }
   0x5   : > { %s387_s9 = smov (%p25_p1, %s23_s9), 0  ;;  %p107_p3 = pnand %p256_p0, %p106_p2 }
   0x6   : > { %p129_p4 = scmp.lt.s32.totalorder (!%p107_p3), %s314_s6, 1 }
   0x7   : > { %110 = sbr.rel (%p107_p3) target bundleno = 57 (0x39), region = 24 }
   0xc   : > { %vm145_vm0 = vcmask 253952   ;;  %v324_v0 = vmov 0.0   ;;  %s389_s6 = smov (!%p129_p4, %s314_s6), 1  ;;  %vm162_vm1 = vcmask 261120  }
   0xd   : > { %146 = vst.msk [vmem:[#allocation2] sm:$0x1] %vm145_vm0, %v324_v0  ;;  %s274_s10 = smul.u32 28, %s389_s6  ;;  %s140_s16 = scalar_lea.vmem %s383_s1, %s389_s6 }
   0xf   : > { %s136_s13 = scalar_lea.vmem %s382_s0, %s274_s10 }
  0x10   : > { %v261_v1 = vld [vmem:[%s136_s13] sm:$0xff]   ;;  %v272_v2 = vld [vmem:[%s136_s13 + $0x8] sm:$0xff]   ;;  %v273_v3 = vld [vmem:[%s136_s13 + $0x10] sm:$0xff]  }
  0x11   : > { %v262_v4 = vunpack.c.l.bf16 %v261_v1  ;;  %v263_v5 = vunpack.c.h.bf16 %v261_v1  ;;  %v266_v6 = vunpack.c.l.bf16 %v272_v2  ;;  %v267_v7 = vunpack.c.h.bf16 %v272_v2  ;;  %v154_v12 = vld [vmem:[%s136_s13 + $0x18] sm:$0x1] }
  0x12   : > { %v270_v8 = vunpack.c.l.bf16 %v273_v3  ;;  %v271_v14 = vunpack.c.h.bf16 %v273_v3  ;;  %v161_v17 = vunpack.c.l.bf16 %v154_v12 }
  0x13   : > { %v163_v9 = vsel %vm162_vm1, %v262_v4, 0.0  ;;  %v164_v10 = vsel %vm162_vm1, %v263_v5, 0.0  ;;  %v166_v11 = vsel %vm162_vm1, %v266_v6, 0.0  ;;  %v168_v15 = vsel %vm162_vm1, %v267_v7, 0.0 }
  0x14   : > { %v165_v13 = vadd.f32 %v164_v10, %v163_v9  ;;  %v170_v18 = vsel %vm162_vm1, %v270_v8, 0.0  ;;  %v172_v20 = vsel %vm162_vm1, %v271_v14, 0.0  ;;  %v175_v22 = vsel %vm145_vm0, %v161_v17, 0.0  ;;  %v147_v30 = vld [vmem:[#allocation2] sm:$0x1] }
  0x16   : > { %v167_v16 = vadd.f32 %v166_v11, %v165_v13 }
  0x18   : > { %v169_v19 = vadd.f32 %v168_v15, %v167_v16 }
  0x1a   : > { %v171_v21 = vadd.f32 %v170_v18, %v169_v19 }
  0x1c   : > { %v173_v23 = vadd.f32 %v172_v20, %v171_v21 }
  0x1e   : > { %v176_v24 = vadd.f32 %v175_v22, %v173_v23 }
  0x20   : > { %v177_v25 = vrot.slane %v176_v24, 4 }
  0x22   : > { %v178_v26 = vadd.f32 %v177_v25, %v176_v24 }
  0x24   : > { %v179_v27 = vrot.slane %v178_v26, 2 }
  0x26   : > { %v180_v28 = vadd.f32 %v179_v27, %v178_v26 }
  0x28   : > { %v181_v29 = vrot.slane %v180_v28, 1 }
  0x2a   : > { %v182_v31 = vadd.f32 %v181_v29, %v180_v28 }
  0x2c   : > { %v183_v32 = vadd.f32 %v182_v31, %v147_v30 }
  0x2e   : > { %184 = vst.msk [vmem:[#allocation2] sm:$0x1] %vm145_vm0, %v183_v32 }
  0x35   : > { %v188_v33 = vld [vmem:[#allocation2] sm:$0x1] }
  0x36   : > { %v189_v34 = vmul.f32 0.020408163, %v188_v33 }
  0x38   : > { %190 = vst.msk [vmem:[%s140_s16] sm:$0x1] %vm145_vm0, %v189_v34 }
  0x39 PF: > { %s11_s8 = sadd.s32 1, %s322_s8   ;;  %s384_s6 = smov %s318_s7 }
  0x3a   : > { %p8_p5 = scmp.ge.s32.totalorder %s11_s8, 4   ;;  %s385_s7 = smov %s387_s9 }
  0x3c   :  { %10 = sbr.rel (!%p8_p5) target bundleno = 2 (0x2), region = 62 }

// kernel: _lambda_.31
= control target key start
LH: loop header
LB: loop body
LE: loop exit
PB: predicated region body
PF: predicated region fallthrough
CT: control target
= control target key end

     0   :  { %s255_s1 = inlined_call_operand.vmem [shape: bf16[1,128,128], index: 1, kind: input, shape index: {}]   ;;  %s256_s2 = inlined_call_operand.vmem [shape: f32[1,128], index: 2, kind: input, shape index: {}]   ;;  %s257_s0 = inlined_call_operand.vmem [shape: bf16[1,8,128], index: 0, kind: input, shape index: {}]   ;;  %s258_s3 = inlined_call_operand.vmem [shape: f32[8,128], index: 3, kind: output, shape index: {}]  }
   0x1   :  { %v200_v0 = vld [vmem:[%s255_s1 + $0x38] sm:$0xff]  ;;  %v199_v1 = vld [vmem:[%s255_s1 + $0x30] sm:$0xff]  ;;  %v198_v2 = vld [vmem:[%s255_s1 + $0x28] sm:$0xff] }
   0x2   :  { %110 = vmatpush.bf16.msra.mxu0 %v200_v0  ;;  %v197_v3 = vld [vmem:[%s255_s1 + $0x20] sm:$0xff]  ;;  %v196_v4 = vld [vmem:[%s255_s1 + $0x18] sm:$0xff]  ;;  %v195_v5 = vld [vmem:[%s255_s1 + $0x10] sm:$0xff] }
   0x3   :  { %v194_v6 = vld [vmem:[%s255_s1 + $0x8] sm:$0xff]  ;;  %v193_v7 = vld [vmem:[%s255_s1] sm:$0xff] }
   0x4   :  { %v45_v8 = vld [vmem:[%s257_s0] sm:$0xf] }
   0x5   :  { %v201_v9 = vld [vmem:[%s256_s2] ss:$0 sm:$0xff] }
   0x6   :  { %111 = vmatpush.bf16.msra.mxu0 %v199_v1 }
   0xa   :  { %112 = vmatpush.bf16.msra.mxu0 %v198_v2 }
   0xe   :  { %113 = vmatpush.bf16.msra.mxu0 %v197_v3 }
  0x12   :  { %114 = vmatpush.bf16.msra.mxu0 %v196_v4 }
  0x16   :  { %115 = vmatpush.bf16.msra.mxu0 %v195_v5 }
  0x1a   :  { %116 = vmatpush.bf16.msra.mxu0 %v194_v6 }
  0x1e   :  { %117 = vmatpush.bf16.msra.mxu0 %v193_v7 }
  0x21   :  { %118 = vmatmul.bf16.vlgmr.msra.gmra.mxu0 %v45_v8 }
  0x9e   :  { %v119_v10 = vpop.f32.mrf.mxu0 }
  0x9f   :  { %v133_v11 = vadd.f32 %v201_v9, %v119_v10 }
  0xa1   :  { %134 = vst [vmem:[%s258_s3] sm:$0xff] %v133_v11 }
  0xa6   :  { %v121_v12 = vpop.f32.mrf.mxu0 }

</bundles_post_ra>
